<compile_context>
chip_gen: v6e
topology: v6e:2x2x1
jax: 0.10.0
libtpu: 0.0.40
codegen_flags: <defaults>
</compile_context>

<pallas_src>
import functools

import jax
import jax.numpy as jnp
from jax.experimental import pallas as pl
from jax.experimental.pallas import tpu as pltpu


def _head_kernel(x_ref, w_ref, b_ref, o_ref, *, nclass):
    # x_ref : [TB, C, HW] f32   (backbone feature tile, NCHW flattened; HW=49 on lanes)
    # w_ref : [C, NPAD]  bf16   (Linear weight, transposed, pre-scaled by 1/HW, zero-padded)
    # b_ref : [1, NPAD]  f32    (Linear bias, zero-padded)
    # o_ref : [TB, NPAD] f32
    #
    # AvgPool2d(7, stride=1) on a 7x7 map == mean over all 49 positions; the 1/49 scale is
    # folded into w_ref, so only the sum remains.  Cross-lane reduce -> XLU slot (idle
    # here); accumulation stays f32 (v5e has no bf16 VPU/EUP).
    pooled = jnp.sum(x_ref[...], axis=2)                       # [TB, C] f32, lane-dense C
    # bf16 x bf16 operands with f32 accumulation: native single-pass MXU mode.
    logits = jnp.dot(pooled.astype(jnp.bfloat16), w_ref[...],
                     preferred_element_type=jnp.float32) + b_ref[...]   # [TB, NPAD] f32
    probs = jax.nn.sigmoid(logits)
    # Zero the padded output lanes (instead of leaving sigmoid(0)=0.5).
    col = jax.lax.broadcasted_iota(jnp.int32, o_ref.shape, 1)
    o_ref[...] = jnp.where(col < nclass, probs, 0.0)


def prepare_head_params(w, b, hw, lane_pad=128):
    """One-time parameter prep (do at load time, NOT per forward).

    w: [nclass, C] (nn.Linear weight), b: [nclass].
    Returns wt_padded [C, NPAD] in bf16 with the 1/hw pooling scale folded in, and
    b_padded [1, NPAD] in f32; NPAD is nclass rounded up to a multiple of `lane_pad`.
    """
    nclass, C = w.shape
    npad = max(lane_pad, ((nclass + lane_pad - 1) // lane_pad) * lane_pad)
    wt = jnp.zeros((C, npad), jnp.float32)
    wt = wt.at[:, :nclass].set(jnp.transpose(w).astype(jnp.float32) * (1.0 / float(hw)))
    bp = jnp.zeros((1, npad), jnp.float32)
    bp = bp.at[:, :nclass].set(b.astype(jnp.float32))
    return wt.astype(jnp.bfloat16), bp


@functools.partial(jax.jit, static_argnames=("nclass", "block_b"))
def densenet_head(feats_nchw, wt_padded, b_padded, *, nclass, block_b=None):
    """feats_nchw: [B, 1024, 7, 7] f32; wt_padded: [1024, NPAD] bf16; b_padded: [1, NPAD] f32."""
    B, C, H, W = feats_nchw.shape
    HW = H * W
    NPAD = wt_padded.shape[1]

    # Free metadata-only reshape; the kernel consumes the backbone output in place —
    # no separate transpose/cast HLO pass.
    x = feats_nchw.reshape(B, C, HW)

    if block_b is None:
        # Padded f32 VMEM tile is ~512 KB/sample (49 -> 128 lane padding); cap at 16 rows:
        # 2 x 8 MiB double-buffered + 0.25 MiB bf16 weight fits the default scoped VMEM on
        # v5e/v6e and v7x (64 MiB physical / 32 MiB scoped).  Do not reuse larger settings
        # tuned on v5e/v6e without re-checking v7x's budget.
        block_b = B if B <= 16 else 16
    grid = (pl.cdiv(B, block_b),)

    cost = pl.CostEstimate(
        flops=2 * B * C * NPAD + B * C * HW,            # matmul + pool adds
        transcendentals=B * NPAD,                       # sigmoid
        bytes_accessed=(B * C * HW * 4                  # f32 feature map, read once
                        + C * NPAD * 2                  # bf16 weight
                        + NPAD * 4                      # f32 bias
                        + B * NPAD * 4),                # f32 output
    )

    # Only let the batch grid shard across v7x's two TensorCores once the feature bytes
    # dominate the per-core replicated weight fetch; at small B keep a single sequence.
    semantics = ("parallel",) if B >= 32 else ("arbitrary",)

    out = pl.pallas_call(
        functools.partial(_head_kernel, nclass=nclass),
        out_shape=jax.ShapeDtypeStruct((B, NPAD), jnp.float32),
        grid=grid,
        in_specs=[
            pl.BlockSpec((block_b, C, HW), lambda i: (i, 0, 0)),
            pl.BlockSpec((C, NPAD), lambda i: (0, 0)),
            pl.BlockSpec((1, NPAD), lambda i: (0, 0)),
        ],
        out_specs=pl.BlockSpec((block_b, NPAD), lambda i: (i, 0)),
        compiler_params=pltpu.CompilerParams(dimension_semantics=semantics),
        cost_estimate=cost,
    )(x, wt_padded, b_padded)

    return out[:, :nclass]                              # drop zero-padded lanes


if __name__ == "__main__":
    # Shapes implied by the forward: densenet121 features -> [B, 1024, 7, 7];
    # classifier maps 1024 -> nclass (use nclass=14, CheXNet-style).
    B, C, H, W = 2, 1024, 7, 7
    NCLASS = 14

    key = jax.random.PRNGKey(0)
    kx, kw, kb = jax.random.split(key, 3)

    # Deterministic stand-in for the backbone output (pretrained weights not loadable).
    feats = jax.random.normal(kx, (B, C, H, W), dtype=jnp.float32)

    # nn.Linear(1024, nclass) default init: U(-1/sqrt(in), 1/sqrt(in)).
    bound = 1.0 / (C ** 0.5)
    w = jax.random.uniform(kw, (NCLASS, C), minval=-bound, maxval=bound, dtype=jnp.float32)
    b = jax.random.uniform(kb, (NCLASS,), minval=-bound, maxval=bound, dtype=jnp.float32)

    # One-time parameter prep (transpose + 1/49 fold + lane pad + bf16).
    wt_pad, b_pad = prepare_head_params(w, b, hw=H * W)

    out = densenet_head(feats, wt_pad, b_pad, nclass=NCLASS)
    out = jax.block_until_ready(out)

    # Pure-JAX reference (f32 end-to-end) for correctness; tolerance covers the bf16
    # MXU operands (weight + pooled activations).
    pooled_ref = jnp.mean(feats.reshape(B, C, H * W), axis=-1)
    ref = jax.nn.sigmoid(pooled_ref @ w.T + b)

    assert out.shape == (B, NCLASS)
    assert bool(jnp.all((out >= 0.0) & (out <= 1.0)))
    assert bool(jnp.allclose(out, ref, atol=3e-2, rtol=3e-2)), (
        float(jnp.max(jnp.abs(out - ref))))
    print("KERNEL_OK")
</pallas_src>

<mosaic_0001>
module attributes {stable_mosaic.version = 11 : i64} {
  func.func @_head_kernel(%arg0: i32, %arg1: memref<2x1024x49xf32, #tpu.memory_space<vmem>>, %arg2: memref<1024x128xbf16, #tpu.memory_space<vmem>>, %arg3: memref<1x128xf32, #tpu.memory_space<vmem>>, %arg4: memref<2x128xf32, #tpu.memory_space<vmem>>) attributes {dimension_semantics = [#tpu.dimension_semantics<arbitrary>], iteration_bounds = array<i64: 1>, scalar_prefetch = 0 : i64, scratch_operands = 0 : i64, tpu.core_type = #tpu.core_type<tc>, window_params = [{transform_indices = @transform_0, window_bounds = array<i64: 2, 1024, 49>}, {pipeline_mode = #tpu.pipeline_mode<synchronous>, transform_indices = @transform_1, window_bounds = array<i64: 1024, 128>}, {pipeline_mode = #tpu.pipeline_mode<synchronous>, transform_indices = @transform_2, window_bounds = array<i64: 1, 128>}, {transform_indices = @transform_3, window_bounds = array<i64: 2, 128>}]} {
    %c0 = arith.constant 0 : index
    %c0_0 = arith.constant 0 : index
    %c0_1 = arith.constant 0 : index
    %0 = vector.load %arg1[%c0, %c0_0, %c0_1] : memref<2x1024x49xf32, #tpu.memory_space<vmem>>, vector<2x1024x49xf32>
    %cst = arith.constant dense<0.000000e+00> : vector<2x1024xf32>
    %1 = vector.multi_reduction <add>, %0, %cst [2] : vector<2x1024x49xf32> to vector<2x1024xf32>
    %2 = arith.truncf %1 : vector<2x1024xf32> to vector<2x1024xbf16>
    %c0_2 = arith.constant 0 : index
    %c0_3 = arith.constant 0 : index
    %3 = vector.load %arg2[%c0_2, %c0_3] : memref<1024x128xbf16, #tpu.memory_space<vmem>>, vector<1024x128xbf16>
    %cst_4 = arith.constant dense<0.000000e+00> : vector<2x128xf32>
    %4 = tpu.matmul %2, %3, %cst_4 {dimension_numbers = #tpu.dot_dimension_numbers<[1], [0], [0], [1], [0, 0, 1, 1], [], []>} : vector<2x1024xbf16>, vector<1024x128xbf16>, vector<2x128xf32> -> vector<2x128xf32>
    %c0_5 = arith.constant 0 : index
    %c0_6 = arith.constant 0 : index
    %5 = vector.load %arg3[%c0_5, %c0_6] : memref<1x128xf32, #tpu.memory_space<vmem>>, vector<1x128xf32>
    %6 = vector.broadcast %5 : vector<1x128xf32> to vector<2x128xf32>
    %7 = arith.addf %4, %6 : vector<2x128xf32>
    %8 = arith.negf %7 : vector<2x128xf32>
    %9 = math.exp %8 : vector<2x128xf32>
    %cst_7 = arith.constant 1.000000e+00 : f32
    %10 = vector.broadcast %cst_7 : f32 to vector<2x128xf32>
    %11 = arith.addf %10, %9 : vector<2x128xf32>
    %12 = arith.divf %10, %11 : vector<2x128xf32>
    %13 = tpu.iota {dimensions = array<i32: 1>} : vector<2x128xi32>
    %c14_i32 = arith.constant 14 : i32
    %14 = vector.broadcast %c14_i32 : i32 to vector<2x128xi32>
    %15 = arith.cmpi slt, %13, %14 : vector<2x128xi32>
    %cst_8 = arith.constant 0.000000e+00 : f32
    %16 = vector.broadcast %cst_8 : f32 to vector<2x128xf32>
    %17 = arith.select %15, %12, %16 : vector<2x128xi1>, vector<2x128xf32>
    %c0_9 = arith.constant 0 : index
    %c0_10 = arith.constant 0 : index
    %18 = vector.load %arg4[%c0_9, %c0_10] : memref<2x128xf32, #tpu.memory_space<vmem>>, vector<2x128xf32>
    tpu.vector_store %arg4[%c0_9, %c0_10], %17 {strides = array<i32>} : memref<2x128xf32, #tpu.memory_space<vmem>>, vector<2x128xf32>,
    return
  }
  func.func @transform_0(%arg0: i32) -> (i32, i32, i32) {
    %c0_i32 = arith.constant 0 : i32
    %c0_i32_0 = arith.constant 0 : i32
    %c0_i32_1 = arith.constant 0 : i32
    return %arg0, %c0_i32, %c0_i32_0 : i32, i32, i32
  }
  func.func @transform_1(%arg0: i32) -> (i32, i32) {
    %c0_i32 = arith.constant 0 : i32
    %c0_i32_0 = arith.constant 0 : i32
    %c0_i32_1 = arith.constant 0 : i32
    return %c0_i32, %c0_i32_0 : i32, i32
  }
  func.func @transform_2(%arg0: i32) -> (i32, i32) {
    %c0_i32 = arith.constant 0 : i32
    %c0_i32_0 = arith.constant 0 : i32
    %c0_i32_1 = arith.constant 0 : i32
    return %c0_i32, %c0_i32_0 : i32, i32
  }
  func.func @transform_3(%arg0: i32) -> (i32, i32) {
    %c0_i32 = arith.constant 0 : i32
    %c0_i32_0 = arith.constant 0 : i32
    return %arg0, %c0_i32 : i32, i32
  }
}

</mosaic_0001>

<bundles_post_ra>
// kernel: densenet_head.1
= control target key start
LH: loop header
LB: loop body
LE: loop exit
PB: predicated region body
PF: predicated region fallthrough
CT: control target
= control target key end

     0   :  { %vm272_vm0 = vcmask 400384   ;;  %s5899_s0 = inlined_call_operand.vmem [shape: f32[2,1024,49], index: 0, kind: input, shape index: {}]   ;;  %s5900_s1 = inlined_call_operand.vmem [shape: bf16[1024,128], index: 1, kind: input, shape index: {}]   ;;  %s5901_s2 = inlined_call_operand.vmem [shape: f32[1,128], index: 2, kind: input, shape index: {}]   ;;  %s5902_s3 = inlined_call_operand.hbm [shape: f32[2,128], index: 3, kind: output, shape index: {}]  }
   0x1   :  { %v18_v0 = vld [vmem:[%s5899_s0 + $0x10] sm:$0xff]  ;;  %v16_v1 = vld [vmem:[%s5899_s0] sm:$0xff]  ;;  %v19_v2 = vld [vmem:[%s5899_s0 + $0x18] sm:$0xff] }
   0x2   :  { %v279_v3 = vsel %vm272_vm0, %v18_v0, 0.0  ;;  %v273_v4 = vsel %vm272_vm0, %v16_v1, 0.0  ;;  %v17_v5 = vld [vmem:[%s5899_s0 + $0x8] sm:$0xff]  ;;  %v282_v6 = vsel %vm272_vm0, %v19_v2, 0.0  ;;  %v20_v9 = vld [vmem:[%s5899_s0 + $0x20] sm:$0xff]  ;;  %v23_v12 = vld [vmem:[%s5899_s0 + $0x38] sm:$0xff] }
   0x3   :  { %280 = vadd.xlane.f32.xlu1 %v279_v3  ;;  %274 = vadd.xlane.f32.xlu0 %v273_v4  ;;  %v276_v7 = vsel %vm272_vm0, %v17_v5, 0.0  ;;  %v21_v8 = vld [vmem:[%s5899_s0 + $0x28] sm:$0xff]  ;;  %v285_v11 = vsel %vm272_vm0, %v20_v9, 0.0  ;;  %v22_v13 = vld [vmem:[%s5899_s0 + $0x30] sm:$0xff]  ;;  %v294_v14 = vsel %vm272_vm0, %v23_v12, 0.0  ;;  %v24_v17 = vld [vmem:[%s5899_s0 + $0x40] sm:$0xff] }
   0x4   :  { %v288_v10 = vsel %vm272_vm0, %v21_v8, 0.0  ;;  %v291_v15 = vsel %vm272_vm0, %v22_v13, 0.0  ;;  %v25_v16 = vld [vmem:[%s5899_s0 + $0x48] sm:$0xff]  ;;  %v297_v19 = vsel %vm272_vm0, %v24_v17, 0.0  ;;  %v27_v20 = vld [vmem:[%s5899_s0 + $0x58] sm:$0xff]  ;;  %v26_v21 = vld [vmem:[%s5899_s0 + $0x50] sm:$0xff] }
   0x5   :  { %v300_v18 = vsel %vm272_vm0, %v25_v16, 0.0  ;;  %v306_v22 = vsel %vm272_vm0, %v27_v20, 0.0  ;;  %v303_v23 = vsel %vm272_vm0, %v26_v21, 0.0  ;;  %v29_v24 = vld [vmem:[%s5899_s0 + $0x68] sm:$0xff]  ;;  %v28_v25 = vld [vmem:[%s5899_s0 + $0x60] sm:$0xff]  ;;  %v31_v28 = vld [vmem:[%s5899_s0 + $0x78] sm:$0xff] }
   0x6   :  { %v312_v26 = vsel %vm272_vm0, %v29_v24, 0.0  ;;  %v309_v27 = vsel %vm272_vm0, %v28_v25, 0.0  ;;  %v30_v29 = vld [vmem:[%s5899_s0 + $0x70] sm:$0xff]  ;;  %v318_v30 = vsel %vm272_vm0, %v31_v28, 0.0  ;;  %v33_v32 = vld [vmem:[%s5899_s0 + $0x88] sm:$0xff]  ;;  %v32_v33 = vld [vmem:[%s5899_s0 + $0x80] sm:$0xff] }
   0x7   :  { %283 = vadd.xlane.f32.xlu1 %v282_v6  ;;  %277 = vadd.xlane.f32.xlu0 %v276_v7  ;;  %v315_v31 = vsel %vm272_vm0, %v30_v29, 0.0  ;;  %v324_v34 = vsel %vm272_vm0, %v33_v32, 0.0  ;;  %v321_v35 = vsel %vm272_vm0, %v32_v33, 0.0  ;;  %v35_v36 = vld [vmem:[%s5899_s0 + $0x98] sm:$0xff]  ;;  %v34_v37 = vld [vmem:[%s5899_s0 + $0x90] sm:$0xff]  ;;  %v37_v40 = vld [vmem:[%s5899_s0 + $0xa8] sm:$0xff] }
   0x8   :  { %v330_v38 = vsel %vm272_vm0, %v35_v36, 0.0  ;;  %v327_v39 = vsel %vm272_vm0, %v34_v37, 0.0  ;;  %v36_v41 = vld [vmem:[%s5899_s0 + $0xa0] sm:$0xff]  ;;  %v336_v42 = vsel %vm272_vm0, %v37_v40, 0.0  ;;  %v39_v43 = vld [vmem:[%s5899_s0 + $0xb8] sm:$0xff]  ;;  %v38_v45 = vld [vmem:[%s5899_s0 + $0xb0] sm:$0xff] }
   0x9   :  { %v333_v44 = vsel %vm272_vm0, %v36_v41, 0.0  ;;  %v342_v46 = vsel %vm272_vm0, %v39_v43, 0.0  ;;  %v41_v47 = vld [vmem:[%s5899_s0 + $0xc8] sm:$0xff]  ;;  %v339_v48 = vsel %vm272_vm0, %v38_v45, 0.0  ;;  %v40_v49 = vld [vmem:[%s5899_s0 + $0xc0] sm:$0xff]  ;;  %v43_v51 = vld [vmem:[%s5899_s0 + $0xd8] sm:$0xff] }
   0xa   :  { %v348_v50 = vsel %vm272_vm0, %v41_v47, 0.0  ;;  %v345_v52 = vsel %vm272_vm0, %v40_v49, 0.0  ;;  %v42_v53 = vld [vmem:[%s5899_s0 + $0xd0] sm:$0xff]  ;;  %v354_v54 = vsel %vm272_vm0, %v43_v51, 0.0  ;;  %v45_v55 = vld [vmem:[%s5899_s0 + $0xe8] sm:$0xff]  ;;  %v44_v57 = vld [vmem:[%s5899_s0 + $0xe0] sm:$0xff] }
   0xb   :  { %289 = vadd.xlane.f32.xlu1 %v288_v10  ;;  %286 = vadd.xlane.f32.xlu0 %v285_v11  ;;  %v351_v56 = vsel %vm272_vm0, %v42_v53, 0.0  ;;  %v360_v58 = vsel %vm272_vm0, %v45_v55, 0.0  ;;  %v47_v59 = vld [vmem:[%s5899_s0 + $0xf8] sm:$0xff]  ;;  %v357_v60 = vsel %vm272_vm0, %v44_v57, 0.0  ;;  %v46_v61 = vld [vmem:[%s5899_s0 + $0xf0] sm:$0xff]  ;;  %v49_v63 = vld [vmem:[%s5899_s0 + $0x108] sm:$0xff] }
   0xc   :  { %v366_v62 = vsel %vm272_vm0, %v47_v59, 0.0  ;;  %v363_v0 = vsel %vm272_vm0, %v46_v61, 0.0  ;;  %v48_v1 = vld [vmem:[%s5899_s0 + $0x100] sm:$0xff]  ;;  %v372_v2 = vsel %vm272_vm0, %v49_v63, 0.0  ;;  %v51_v3 = vld [vmem:[%s5899_s0 + $0x118] sm:$0xff]  ;;  %v50_v5 = vld [vmem:[%s5899_s0 + $0x110] sm:$0xff] }
   0xd   :  { %v369_v4 = vsel %vm272_vm0, %v48_v1, 0.0  ;;  %v378_v6 = vsel %vm272_vm0, %v51_v3, 0.0  ;;  %v53_v7 = vld [vmem:[%s5899_s0 + $0x128] sm:$0xff]  ;;  %v375_v8 = vsel %vm272_vm0, %v50_v5, 0.0  ;;  %v52_v9 = vld [vmem:[%s5899_s0 + $0x120] sm:$0xff]  ;;  %v55_v11 = vld [vmem:[%s5899_s0 + $0x138] sm:$0xff] }
   0xe   :  { %v384_v10 = vsel %vm272_vm0, %v53_v7, 0.0  ;;  %v381_v12 = vsel %vm272_vm0, %v52_v9, 0.0  ;;  %v54_v13 = vld [vmem:[%s5899_s0 + $0x130] sm:$0xff]  ;;  %v56_v17 = vld [vmem:[%s5899_s0 + $0x140] sm:$0xff]  ;;  %v63_v28 = vld [vmem:[%s5899_s0 + $0x178] sm:$0xff] }
   0xf   :  { %295 = vadd.xlane.f32.xlu1 %v294_v14  ;;  %292 = vadd.xlane.f32.xlu0 %v291_v15  ;;  %v390_v14 = vsel %vm272_vm0, %v55_v11, 0.0  ;;  %v57_v15 = vld [vmem:[%s5899_s0 + $0x148] sm:$0xff]  ;;  %v387_v16 = vsel %vm272_vm0, %v54_v13, 0.0  ;;  %v393_v20 = vsel %vm272_vm0, %v56_v17, 0.0  ;;  %v58_v21 = vld [vmem:[%s5899_s0 + $0x150] sm:$0xff]  ;;  %v60_v25 = vld [vmem:[%s5899_s0 + $0x160] sm:$0xff] }
  0x10   :  { %v399_v24 = vsel %vm272_vm0, %v58_v21, 0.0  ;;  %v62_v29 = vld [vmem:[%s5899_s0 + $0x170] sm:$0xff] }
  0x13   :  { %301 = vadd.xlane.f32.xlu1 %v300_v18  ;;  %298 = vadd.xlane.f32.xlu0 %v297_v19  ;;  %v396_v18 = vsel %vm272_vm0, %v57_v15, 0.0  ;;  %v59_v19 = vld [vmem:[%s5899_s0 + $0x158] sm:$0xff] }
  0x17   :  { %307 = vadd.xlane.f32.xlu1 %v306_v22  ;;  %304 = vadd.xlane.f32.xlu0 %v303_v23  ;;  %v402_v22 = vsel %vm272_vm0, %v59_v19, 0.0  ;;  %v61_v23 = vld [vmem:[%s5899_s0 + $0x168] sm:$0xff] }
  0x1b   :  { %313 = vadd.xlane.f32.xlu1 %v312_v26  ;;  %310 = vadd.xlane.f32.xlu0 %v309_v27  ;;  %v408_v26 = vsel %vm272_vm0, %v61_v23, 0.0  ;;  %v405_v27 = vsel %vm272_vm0, %v60_v25, 0.0 }
  0x1f   :  { %319 = vadd.xlane.f32.xlu1 %v318_v30  ;;  %316 = vadd.xlane.f32.xlu0 %v315_v31 }
  0x23   :  { %325 = vadd.xlane.f32.xlu1 %v324_v34  ;;  %322 = vadd.xlane.f32.xlu0 %v321_v35 }
  0x27   :  { %331 = vadd.xlane.f32.xlu1 %v330_v38  ;;  %328 = vadd.xlane.f32.xlu0 %v327_v39 }
  0x2b   :  { %337 = vadd.xlane.f32.xlu1 %v336_v42  ;;  %334 = vadd.xlane.f32.xlu0 %v333_v44 }
  0x2f   :  { %343 = vadd.xlane.f32.xlu1 %v342_v46  ;;  %340 = vadd.xlane.f32.xlu0 %v339_v48 }
  0x33   :  { %349 = vadd.xlane.f32.xlu1 %v348_v50  ;;  %346 = vadd.xlane.f32.xlu0 %v345_v52 }
  0x37   :  { %355 = vadd.xlane.f32.xlu1 %v354_v54  ;;  %352 = vadd.xlane.f32.xlu0 %v351_v56 }
  0x3b   :  { %361 = vadd.xlane.f32.xlu1 %v360_v58  ;;  %358 = vadd.xlane.f32.xlu0 %v357_v60 }
  0x3f   :  { %367 = vadd.xlane.f32.xlu1 %v366_v62  ;;  %364 = vadd.xlane.f32.xlu0 %v363_v0 }
  0x43   :  { %373 = vadd.xlane.f32.xlu1 %v372_v2  ;;  %370 = vadd.xlane.f32.xlu0 %v369_v4 }
  0x47   :  { %379 = vadd.xlane.f32.xlu1 %v378_v6  ;;  %376 = vadd.xlane.f32.xlu0 %v375_v8 }
  0x4b   :  { %385 = vadd.xlane.f32.xlu1 %v384_v10  ;;  %382 = vadd.xlane.f32.xlu0 %v381_v12 }
  0x4f   :  { %391 = vadd.xlane.f32.xlu1 %v390_v14  ;;  %388 = vadd.xlane.f32.xlu0 %v387_v16 }
  0x53   :  { %397 = vadd.xlane.f32.xlu1 %v396_v18  ;;  %394 = vadd.xlane.f32.xlu0 %v393_v20 }
  0x57   :  { %403 = vadd.xlane.f32.xlu1 %v402_v22  ;;  %400 = vadd.xlane.f32.xlu0 %v399_v24 }
  0x58   :  { %8 = vsyncpa [#allocation3], 0  ;;  %v414_v30 = vsel %vm272_vm0, %v63_v28, 0.0  ;;  %v411_v31 = vsel %vm272_vm0, %v62_v29, 0.0  ;;  %v65_v32 = vld [vmem:[%s5899_s0 + $0x188] sm:$0xff]  ;;  %v64_v33 = vld [vmem:[%s5899_s0 + $0x180] sm:$0xff]  ;;  %v1688_v10 = vlaneseq }
  0x59   :  { %v420_v34 = vsel %vm272_vm0, %v65_v32, 0.0  ;;  %v417_v35 = vsel %vm272_vm0, %v64_v33, 0.0  ;;  %v67_v36 = vld [vmem:[%s5899_s0 + $0x198] sm:$0xff]  ;;  %v66_v37 = vld [vmem:[%s5899_s0 + $0x190] sm:$0xff]  ;;  %v69_v40 = vld [vmem:[%s5899_s0 + $0x1a8] sm:$0xff]  ;;  %vm1699_vm1 = vcmask 130112  }
  0x5a   :  { %v426_v38 = vsel %vm272_vm0, %v67_v36, 0.0  ;;  %v423_v39 = vsel %vm272_vm0, %v66_v37, 0.0  ;;  %v68_v41 = vld [vmem:[%s5899_s0 + $0x1a0] sm:$0xff]  ;;  %v432_v42 = vsel %vm272_vm0, %v69_v40, 0.0  ;;  %v71_v44 = vld [vmem:[%s5899_s0 + $0x1b8] sm:$0xff]  ;;  %v70_v45 = vld [vmem:[%s5899_s0 + $0x1b0] sm:$0xff] }
  0x5b   :  { %409 = vadd.xlane.f32.xlu1 %v408_v26  ;;  %406 = vadd.xlane.f32.xlu0 %v405_v27  ;;  %v429_v43 = vsel %vm272_vm0, %v68_v41, 0.0  ;;  %v438_v46 = vsel %vm272_vm0, %v71_v44, 0.0  ;;  %v435_v47 = vsel %vm272_vm0, %v70_v45, 0.0  ;;  %v73_v48 = vld [vmem:[%s5899_s0 + $0x1c8] sm:$0xff]  ;;  %v72_v49 = vld [vmem:[%s5899_s0 + $0x1c0] sm:$0xff]  ;;  %v75_v52 = vld [vmem:[%s5899_s0 + $0x1d8] sm:$0xff] }
  0x5c   :  { %v444_v50 = vsel %vm272_vm0, %v73_v48, 0.0  ;;  %v441_v51 = vsel %vm272_vm0, %v72_v49, 0.0  ;;  %v74_v53 = vld [vmem:[%s5899_s0 + $0x1d0] sm:$0xff]  ;;  %v450_v54 = vsel %vm272_vm0, %v75_v52, 0.0  ;;  %v77_v56 = vld [vmem:[%s5899_s0 + $0x1e8] sm:$0xff]  ;;  %v76_v57 = vld [vmem:[%s5899_s0 + $0x1e0] sm:$0xff] }
  0x5d   :  { %v447_v55 = vsel %vm272_vm0, %v74_v53, 0.0  ;;  %v456_v58 = vsel %vm272_vm0, %v77_v56, 0.0  ;;  %v453_v59 = vsel %vm272_vm0, %v76_v57, 0.0  ;;  %v79_v60 = vld [vmem:[%s5899_s0 + $0x1f8] sm:$0xff]  ;;  %v78_v61 = vld [vmem:[%s5899_s0 + $0x1f0] sm:$0xff]  ;;  %v81_v0 = vld [vmem:[%s5899_s0 + $0x208] sm:$0xff] }
  0x5e   :  { %v462_v62 = vsel %vm272_vm0, %v79_v60, 0.0  ;;  %v459_v63 = vsel %vm272_vm0, %v78_v61, 0.0  ;;  %v80_v1 = vld [vmem:[%s5899_s0 + $0x200] sm:$0xff]  ;;  %v468_v2 = vsel %vm272_vm0, %v81_v0, 0.0  ;;  %v83_v4 = vld [vmem:[%s5899_s0 + $0x218] sm:$0xff]  ;;  %v82_v5 = vld [vmem:[%s5899_s0 + $0x210] sm:$0xff] }
  0x5f   :  { %415 = vadd.xlane.f32.xlu1 %v414_v30  ;;  %412 = vadd.xlane.f32.xlu0 %v411_v31  ;;  %v465_v3 = vsel %vm272_vm0, %v80_v1, 0.0  ;;  %v474_v6 = vsel %vm272_vm0, %v83_v4, 0.0  ;;  %v471_v7 = vsel %vm272_vm0, %v82_v5, 0.0  ;;  %v85_v8 = vld [vmem:[%s5899_s0 + $0x228] sm:$0xff]  ;;  %v84_v9 = vld [vmem:[%s5899_s0 + $0x220] sm:$0xff]  ;;  %v87_v13 = vld [vmem:[%s5899_s0 + $0x238] sm:$0xff] }
  0x60   :  { %v480_v11 = vsel %vm272_vm0, %v85_v8, 0.0  ;;  %v477_v12 = vsel %vm272_vm0, %v84_v9, 0.0  ;;  %v86_v14 = vld [vmem:[%s5899_s0 + $0x230] sm:$0xff]  ;;  %v4128_v15 = vand.u32 127, %v1688_v10  ;;  %v486_v18 = vsel %vm272_vm0, %v87_v13, 0.0  ;;  %v89_v23 = vld [vmem:[%s5899_s0 + $0x248] sm:$0xff] }
  0x61   :  { %v483_v19 = vsel %vm272_vm0, %v86_v14, 0.0  ;;  %v4132_v20 = vshrl.u32 %v1688_v10, 7  ;;  %v88_v24 = vld [vmem:[%s5899_s0 + $0x240] sm:$0xff]  ;;  %vm1706_vm2 = vcmask 195712   ;;  %v492_v30 = vsel %vm272_vm0, %v89_v23, 0.0  ;;  %v91_v36 = vld [vmem:[%s5899_s0 + $0x258] sm:$0xff] }
  0x62   :  { %5912 = vst [vmem:[#allocation5_spill] sm:$0xff] %v4128_v15  ;;  %v1701_v21 = vadd.s32 4294967280, %v4128_v15  ;;  %v1694_v22 = vadd.s32 4294967288, %v4128_v15  ;;  %v1708_v25 = vadd.s32 4294967272, %v4128_v15  ;;  %v1715_v26 = vadd.s32 4294967264, %v4128_v15  ;;  %v90_v37 = vld [vmem:[%s5899_s0 + $0x250] sm:$0xff] }
  0x63   :  { %421 = vadd.xlane.f32.xlu1 %v420_v34  ;;  %418 = vadd.xlane.f32.xlu0 %v417_v35  ;;  %v4146_v28 = vsub.s32 %v4128_v15, %v4132_v20  ;;  %v489_v31 = vsel %vm272_vm0, %v88_v24, 0.0  ;;  %vm1713_vm3 = vcmask 261312   ;;  %vm1720_vm4 = vcmask 326912   ;;  %v145_v5 = vld [vmem:[%s5899_s0 + $0x408] sm:$0xff] }
  0x64   :  { %v4151_v32 = vsub.s32 %v1701_v21, %v4132_v20  ;;  %v4154_v34 = vsub.s32 %v1694_v22, %v4132_v20  ;;  %v1722_v40 = vadd.s32 4294967256, %v4128_v15  ;;  %vm5910_vm5 = vcmask 392512  }
  0x65   :  { %v495_v48 = vsel %vm272_vm0, %v90_v37, 0.0  ;;  %v1729_v49 = vadd.s32 4294967248, %v4128_v15  ;;  %vm1734_vm6 = vcmask 458112   ;;  %v1750_v4 = vadd.s32 4294967224, %v4128_v15 }
  0x66   :  { %5913 = vst [vmem:[#allocation6_spill] sm:$0xff] %v4151_v32  ;;  %v4183_v56 = vsub.s32 %v1722_v40, %v4132_v20  ;;  %vm1741_vm7 = vcmask 523712   ;;  %vm1748_vm8 = vcmask 589312   ;;  %vm1755_vm9 = vcmask 654912  }
  0x67   :  { %427 = vadd.xlane.f32.xlu1 %v426_v38  ;;  %424 = vadd.xlane.f32.xlu0 %v423_v39  ;;  %v4163_v38 = vsub.s32 %v1708_v25, %v4132_v20  ;;  %v4166_v39 = vsub.s32 %v1715_v26, %v4132_v20  ;;  %v4200_v8 = vsub.s32 %v1729_v49, %v4132_v20  ;;  %v1757_v25 = vadd.s32 4294967216, %v4128_v15  ;;  %v146_v49 = vld [vmem:[%s5899_s0 + $0x410] sm:$0xff] }
  0x68   :  { %v4217_v23 = vsub.s32 %v1750_v4, %v4132_v20  ;;  %v1764_v26 = vadd.s32 4294967208, %v4128_v15  ;;  %vm1762_vm10 = vcmask 720512   ;;  %vm1769_vm11 = vcmask 786112  }
  0x69   :  { %5914 = vst [vmem:[#allocation7_spill] sm:$0xff] %v4163_v38  ;;  %5915 = vst [vmem:[#allocation8_spill] sm:$0xff] %v4166_v39  ;;  %vm1776_vm12 = vcmask 851712   ;;  %vm1783_vm13 = vcmask 917312   ;;  %vm1790_vm14 = vcmask 982912   ;;  %vm1797_vm15 = vcmask 1048512  }
  0x6b   :  { %433 = vadd.xlane.f32.xlu1 %v432_v42  ;;  %430 = vadd.xlane.f32.xlu0 %v429_v43 }
  0x6f   :  { %439 = vadd.xlane.f32.xlu1 %v438_v46  ;;  %436 = vadd.xlane.f32.xlu0 %v435_v47  ;;  %v498_v47 = vsel %vm272_vm0, %v91_v36, 0.0 }
  0x73   :  { %445 = vadd.xlane.f32.xlu1 %v444_v50  ;;  %442 = vadd.xlane.f32.xlu0 %v441_v51  ;;  %v161_v50 = vld [vmem:[%s5899_s0 + $0x488] sm:$0xff]  ;;  %v160_v51 = vld [vmem:[%s5899_s0 + $0x480] sm:$0xff] }
  0x74   :  { %v708_v61 = vsel %vm272_vm0, %v161_v50, 0.0 }
  0x77   :  { %451 = vadd.xlane.f32.xlu1 %v450_v54  ;;  %448 = vadd.xlane.f32.xlu0 %v447_v55  ;;  %v1736_v55 = vadd.s32 4294967240, %v4128_v15 }
  0x79   :  { %v4203_v9 = vsub.s32 %v1736_v55, %v4132_v20 }
  0x7b   :  { %457 = vadd.xlane.f32.xlu1 %v456_v58  ;;  %454 = vadd.xlane.f32.xlu0 %v453_v59  ;;  %v1743_v58 = vadd.s32 4294967232, %v4128_v15 }
  0x7d   :  { %v4208_v13 = vsub.s32 %v1743_v58, %v4132_v20 }
  0x7f   :  { %463 = vadd.xlane.f32.xlu1 %v462_v62  ;;  %460 = vadd.xlane.f32.xlu0 %v459_v63  ;;  %v705_v62 = vsel %vm272_vm0, %v160_v51, 0.0 }
  0x83   :  { %469 = vadd.xlane.f32.xlu1 %v468_v2  ;;  %466 = vadd.xlane.f32.xlu0 %v465_v3 }
  0x87   :  { %475 = vadd.xlane.f32.xlu1 %v474_v6  ;;  %472 = vadd.xlane.f32.xlu0 %v471_v7  ;;  %v144_v6 = vld [vmem:[%s5899_s0 + $0x400] sm:$0xff] }
  0x8b   :  { %481 = vadd.xlane.f32.xlu1 %v480_v11  ;;  %478 = vadd.xlane.f32.xlu0 %v477_v12 }
  0x8c   :  { %v281_v16 = vpop.xlane.xlu1 %280  ;;  %v275_v17 = vpop.xlane.xlu0 %274 }
  0x8f   :  { %487 = vadd.xlane.f32.xlu1 %v486_v18  ;;  %484 = vadd.xlane.f32.xlu0 %v483_v19  ;;  %v657_v18 = vsel %vm272_vm0, %v144_v6, 0.0  ;;  %v163_v19 = vld [vmem:[%s5899_s0 + $0x498] sm:$0xff]  ;;  %v193_v6 = vld [vmem:[%s5899_s0 + $0x588] sm:$0xff] }
  0x90   :  { %v284_v27 = vpop.xlane.xlu1 %283  ;;  %v278_v29 = vpop.xlane.xlu0 %277 }
  0x91   :  { %v1042_v33 = vpack.c.bf16 %v284_v27, %v281_v16  ;;  %v1041_v35 = vpack.c.bf16 %v278_v29, %v275_v17  ;;  %v660_v17 = vsel %vm272_vm0, %v145_v5, 0.0  ;;  %v162_v27 = vld [vmem:[%s5899_s0 + $0x490] sm:$0xff]  ;;  %v1792_v5 = vadd.s32 4294967176, %v4128_v15 }
  0x93   :  { %v1434_v41 = vunpack.c.l.b16 %v1042_v33  ;;  %v1435_v42 = vunpack.c.h.b16 %v1042_v33  ;;  %v1432_v43 = vunpack.c.l.b16 %v1041_v35  ;;  %v1433_v44 = vunpack.c.h.b16 %v1041_v35  ;;  %493 = vadd.xlane.f32.xlu1 %v492_v30  ;;  %490 = vadd.xlane.f32.xlu0 %v489_v31 }
  0x94   :  { %v290_v45 = vpop.xlane.xlu1 %289  ;;  %v287_v46 = vpop.xlane.xlu0 %286  ;;  %v714_v35 = vsel %vm272_vm0, %v163_v19, 0.0  ;;  %v804_v19 = vsel %vm272_vm0, %v193_v6, 0.0 }
  0x95   :  { %v1705_v52 = vrot.slane %v1434_v41, %v4151_v32  ;;  %v1693_v53 = vrot.slane %v1432_v43, %v4146_v28  ;;  %v1698_v54 = vrot.slane %v1433_v44, %v4154_v34  ;;  %v1043_v57 = vpack.c.bf16 %v290_v45, %v287_v46 }
  0x96   :  { %v1712_v59 = vrot.slane %v1435_v42, %v4163_v38  ;;  %v711_v41 = vsel %vm272_vm0, %v162_v27, 0.0  ;;  %v147_v42 = vld [vmem:[%s5899_s0 + $0x418] sm:$0xff]  ;;  %v4235_v45 = vsub.s32 %v1757_v25, %v4132_v20  ;;  %v4277_v25 = vsub.s32 %v1792_v5, %v4132_v20  ;;  %v165_v27 = vld [vmem:[%s5899_s0 + $0x4a8] sm:$0xff] }
  0x97   :  { %v1700_v60 = vsel %vm1699_vm1, %v1698_v54, %v1693_v53  ;;  %499 = vadd.xlane.f32.xlu1 %v498_v47  ;;  %496 = vadd.xlane.f32.xlu0 %v495_v48  ;;  %v1436_v0 = vunpack.c.l.b16 %v1043_v57  ;;  %v1437_v1 = vunpack.c.h.b16 %v1043_v57  ;;  %v1771_v47 = vadd.s32 4294967200, %v4128_v15 }
  0x98   :  { %v1707_v63 = vsel %vm1706_vm2, %v1705_v52, %v1700_v60  ;;  %v296_v2 = vpop.xlane.xlu1 %295  ;;  %v293_v3 = vpop.xlane.xlu0 %292  ;;  %v1778_v48 = vadd.s32 4294967192, %v4128_v15  ;;  %v4245_v52 = vsub.s32 %v1764_v26, %v4132_v20  ;;  %v666_v54 = vsel %vm272_vm0, %v147_v42, 0.0 }
  0x99   :  { %v1714_v7 = vsel %vm1713_vm3, %v1712_v59, %v1707_v63  ;;  %v1044_v10 = vpack.c.bf16 %v296_v2, %v293_v3  ;;  %v1719_v11 = vrot.slane %v1436_v0, %v4166_v39  ;;  %v1726_v12 = vrot.slane %v1437_v1, %v4183_v56 }
  0x9a   :  { %v663_v59 = vsel %vm272_vm0, %v146_v49, 0.0  ;;  %v4255_v63 = vsub.s32 %v1778_v48, %v4132_v20  ;;  %v1785_v1 = vadd.s32 4294967184, %v4128_v15 }
  0x9b   :  { %v1438_v14 = vunpack.c.l.b16 %v1044_v10  ;;  %v1439_v16 = vunpack.c.h.b16 %v1044_v10  ;;  %709 = vadd.xlane.f32.xlu1 %v708_v61  ;;  %706 = vadd.xlane.f32.xlu0 %v705_v62  ;;  %v1721_v21 = vsel %vm1720_vm4, %v1719_v11, %v1714_v7  ;;  %v4252_v62 = vsub.s32 %v1771_v47, %v4132_v20  ;;  %v192_v7 = vld [vmem:[%s5899_s0 + $0x580] sm:$0xff] }
  0x9c   :  { %v302_v22 = vpop.xlane.xlu1 %301  ;;  %v299_v24 = vpop.xlane.xlu0 %298  ;;  %v1728_v29 = vsel %vm5910_vm5, %v1726_v12, %v1721_v21  ;;  %v801_v21 = vsel %vm272_vm0, %v192_v7, 0.0 }
  0x9d   :  { %v1733_v30 = vrot.slane %v1438_v14, %v4200_v8  ;;  %v1740_v31 = vrot.slane %v1439_v16, %v4203_v9  ;;  %v1045_v33 = vpack.c.bf16 %v302_v22, %v299_v24 }
  0x9f   :  { %v1735_v36 = vsel %vm1734_vm6, %v1733_v30, %v1728_v29  ;;  %v1440_v37 = vunpack.c.l.b16 %v1045_v33  ;;  %v1441_v40 = vunpack.c.h.b16 %v1045_v33  ;;  %661 = vadd.xlane.f32.xlu1 %v660_v17  ;;  %658 = vadd.xlane.f32.xlu0 %v657_v18  ;;  %v4270_v17 = vsub.s32 %v1785_v1, %v4132_v20  ;;  %v164_v29 = vld [vmem:[%s5899_s0 + $0x4a0] sm:$0xff] }
  0xa0   :  { %v1742_v43 = vsel %vm1741_vm7, %v1740_v31, %v1735_v36  ;;  %v308_v44 = vpop.xlane.xlu1 %307  ;;  %v305_v46 = vpop.xlane.xlu0 %304 }
  0xa1   :  { %v1747_v50 = vrot.slane %v1440_v37, %v4208_v13  ;;  %v1754_v51 = vrot.slane %v1441_v40, %v4217_v23  ;;  %v1046_v53 = vpack.c.bf16 %v308_v44, %v305_v46  ;;  %v720_v37 = vsel %vm272_vm0, %v165_v27, 0.0  ;;  %v177_v44 = vld [vmem:[%s5899_s0 + $0x508] sm:$0xff]  ;;  %v176_v46 = vld [vmem:[%s5899_s0 + $0x500] sm:$0xff] }
  0xa2   :  { %v717_v40 = vsel %vm272_vm0, %v164_v29, 0.0 }
  0xa3   :  { %v1749_v55 = vsel %vm1748_vm8, %v1747_v50, %v1742_v43  ;;  %v1442_v57 = vunpack.c.l.b16 %v1046_v53  ;;  %v1443_v58 = vunpack.c.h.b16 %v1046_v53  ;;  %715 = vadd.xlane.f32.xlu1 %v714_v35  ;;  %712 = vadd.xlane.f32.xlu0 %v711_v41  ;;  %v753_v53 = vsel %vm272_vm0, %v176_v46, 0.0 }
  0xa4   :  { %v1756_v60 = vsel %vm1755_vm9, %v1754_v51, %v1749_v55  ;;  %v314_v61 = vpop.xlane.xlu1 %313  ;;  %v311_v0 = vpop.xlane.xlu0 %310  ;;  %v756_v51 = vsel %vm272_vm0, %v177_v44, 0.0 }
  0xa5   :  { %v1761_v2 = vrot.slane %v1442_v57, %v4235_v45  ;;  %v1768_v3 = vrot.slane %v1443_v58, %v4245_v52  ;;  %v1047_v4 = vpack.c.bf16 %v314_v61, %v311_v0  ;;  %v195_v57 = vld [vmem:[%s5899_s0 + $0x598] sm:$0xff]  ;;  %v194_v58 = vld [vmem:[%s5899_s0 + $0x590] sm:$0xff] }
  0xa6   :  { %v807_v5 = vsel %vm272_vm0, %v194_v58, 0.0 }
  0xa7   :  { %v1763_v10 = vsel %vm1762_vm10, %v1761_v2, %v1756_v60  ;;  %v1444_v11 = vunpack.c.l.b16 %v1047_v4  ;;  %v1445_v12 = vunpack.c.h.b16 %v1047_v4  ;;  %667 = vadd.xlane.f32.xlu1 %v666_v54  ;;  %664 = vadd.xlane.f32.xlu0 %v663_v59  ;;  %v810_v4 = vsel %vm272_vm0, %v195_v57, 0.0 }
  0xa8   :  { %v1770_v14 = vsel %vm1769_vm11, %v1768_v3, %v1763_v10  ;;  %v320_v16 = vpop.xlane.xlu1 %319  ;;  %v317_v18 = vpop.xlane.xlu0 %316 }
  0xa9   :  { %v1775_v22 = vrot.slane %v1444_v11, %v4252_v62  ;;  %v1782_v24 = vrot.slane %v1445_v12, %v4255_v63  ;;  %v1048_v26 = vpack.c.bf16 %v320_v16, %v317_v18  ;;  %v149_v11 = vld [vmem:[%s5899_s0 + $0x428] sm:$0xff]  ;;  %v148_v12 = vld [vmem:[%s5899_s0 + $0x420] sm:$0xff] }
  0xaa   :  { %v669_v27 = vsel %vm272_vm0, %v148_v12, 0.0 }
  0xab   :  { %v1777_v30 = vsel %vm1776_vm12, %v1775_v22, %v1770_v14  ;;  %v1446_v31 = vunpack.c.l.b16 %v1048_v26  ;;  %v1447_v33 = vunpack.c.h.b16 %v1048_v26  ;;  %805 = vadd.xlane.f32.xlu1 %v804_v19  ;;  %802 = vadd.xlane.f32.xlu0 %v801_v21  ;;  %v672_v26 = vsel %vm272_vm0, %v149_v11, 0.0 }
  0xac   :  { %v1784_v35 = vsel %vm1783_vm13, %v1782_v24, %v1777_v30  ;;  %v326_v36 = vpop.xlane.xlu1 %325  ;;  %v323_v20 = vpop.xlane.xlu0 %322 }
  0xad   :  { %v1789_v41 = vrot.slane %v1446_v31, %v4270_v17  ;;  %v1796_v42 = vrot.slane %v1447_v33, %v4277_v25  ;;  %v1049_v43 = vpack.c.bf16 %v326_v36, %v323_v20  ;;  %v179_v33 = vld [vmem:[%s5899_s0 + $0x518] sm:$0xff] }
  0xaf   :  { %v1448_v47 = vunpack.c.l.b16 %v1049_v43  ;;  %v1449_v48 = vunpack.c.h.b16 %v1049_v43  ;;  %721 = vadd.xlane.f32.xlu1 %v720_v37  ;;  %718 = vadd.xlane.f32.xlu0 %v717_v40  ;;  %v1791_v54 = vsel %vm1790_vm14, %v1789_v41, %v1784_v35  ;;  %v178_v35 = vld [vmem:[%s5899_s0 + $0x510] sm:$0xff]  ;;  %v762_v43 = vsel %vm272_vm0, %v179_v33, 0.0 }
  0xb0   :  { %v332_v49 = vpop.xlane.xlu1 %331  ;;  %v329_v50 = vpop.xlane.xlu0 %328  ;;  %v4307_v59 = vsel %vm1797_vm15, %v1796_v42, %v1791_v54  ;;  %v759_v44 = vsel %vm272_vm0, %v178_v35, 0.0 }
  0xb1   :  { %v1050_v55 = vpack.c.bf16 %v332_v49, %v329_v50  ;;  %v1802_v60 = vrot.slane %v1448_v47, %v4146_v28  ;;  %v1806_v61 = vrot.slane %v1449_v48, %v4154_v34  ;;  %v167_v49 = vld [vmem:[%s5899_s0 + $0x4b8] sm:$0xff]  ;;  %v166_v50 = vld [vmem:[%s5899_s0 + $0x4b0] sm:$0xff] }
  0xb3   :  { %v1450_v0 = vunpack.c.l.b16 %v1050_v55  ;;  %v1451_v1 = vunpack.c.h.b16 %v1050_v55  ;;  %757 = vadd.xlane.f32.xlu1 %v756_v51  ;;  %754 = vadd.xlane.f32.xlu0 %v753_v53  ;;  %v1807_v14 = vsel %vm1699_vm1, %v1806_v61, %v1802_v60  ;;  %v726_v60 = vsel %vm272_vm0, %v167_v49, 0.0 }
  0xb4   :  { %v338_v2 = vpop.xlane.xlu1 %337  ;;  %v335_v3 = vpop.xlane.xlu0 %334  ;;  %v723_v61 = vsel %vm272_vm0, %v166_v50, 0.0 }
  0xb5   :  { %v1811_v6 = vrot.slane %v1450_v0, %v4151_v32  ;;  %v1816_v7 = vrot.slane %v1451_v1, %v4163_v38  ;;  %v1051_v10 = vpack.c.bf16 %v338_v2, %v335_v3  ;;  %v197_v3 = vld [vmem:[%s5899_s0 + $0x5a8] sm:$0xff] }
  0xb7   :  { %v1812_v16 = vsel %vm1706_vm2, %v1811_v6, %v1807_v14  ;;  %v1452_v18 = vunpack.c.l.b16 %v1051_v10  ;;  %v1453_v19 = vunpack.c.h.b16 %v1051_v10  ;;  %811 = vadd.xlane.f32.xlu1 %v810_v4  ;;  %808 = vadd.xlane.f32.xlu0 %v807_v5  ;;  %v196_v4 = vld [vmem:[%s5899_s0 + $0x5a0] sm:$0xff]  ;;  %v816_v14 = vsel %vm272_vm0, %v197_v3, 0.0 }
  0xb8   :  { %v1817_v21 = vsel %vm1713_vm3, %v1816_v7, %v1812_v16  ;;  %v344_v22 = vpop.xlane.xlu1 %343  ;;  %v341_v24 = vpop.xlane.xlu0 %340  ;;  %v813_v16 = vsel %vm272_vm0, %v196_v4, 0.0 }
  0xb9   :  { %v1821_v29 = vrot.slane %v1452_v18, %v4166_v39  ;;  %v1826_v30 = vrot.slane %v1453_v19, %v4183_v56  ;;  %v1052_v31 = vpack.c.bf16 %v344_v22, %v341_v24  ;;  %v151_v22 = vld [vmem:[%s5899_s0 + $0x438] sm:$0xff]  ;;  %v150_v24 = vld [vmem:[%s5899_s0 + $0x430] sm:$0xff] }
  0xba   :  { %v678_v35 = vsel %vm272_vm0, %v151_v22, 0.0 }
  0xbb   :  { %v1822_v36 = vsel %vm1720_vm4, %v1821_v29, %v1817_v21  ;;  %v1454_v20 = vunpack.c.l.b16 %v1052_v31  ;;  %v1455_v37 = vunpack.c.h.b16 %v1052_v31  ;;  %673 = vadd.xlane.f32.xlu1 %v672_v26  ;;  %670 = vadd.xlane.f32.xlu0 %v669_v27 }
  0xbc   :  { %v1827_v40 = vsel %vm5910_vm5, %v1826_v30, %v1822_v36  ;;  %v350_v41 = vpop.xlane.xlu1 %349  ;;  %v347_v42 = vpop.xlane.xlu0 %346  ;;  %v675_v36 = vsel %vm272_vm0, %v150_v24, 0.0 }
  0xbd   :  { %v1831_v46 = vrot.slane %v1454_v20, %v4200_v8  ;;  %v1836_v47 = vrot.slane %v1455_v37, %v4203_v9  ;;  %v1053_v48 = vpack.c.bf16 %v350_v41, %v347_v42  ;;  %v181_v41 = vld [vmem:[%s5899_s0 + $0x528] sm:$0xff]  ;;  %v180_v42 = vld [vmem:[%s5899_s0 + $0x520] sm:$0xff] }
  0xbe   :  { %v765_v49 = vsel %vm272_vm0, %v180_v42, 0.0 }
  0xbf   :  { %v1832_v51 = vsel %vm1734_vm6, %v1831_v46, %v1827_v40  ;;  %v1456_v53 = vunpack.c.l.b16 %v1053_v48  ;;  %v1457_v54 = vunpack.c.h.b16 %v1053_v48  ;;  %763 = vadd.xlane.f32.xlu1 %v762_v43  ;;  %760 = vadd.xlane.f32.xlu0 %v759_v44  ;;  %v768_v48 = vsel %vm272_vm0, %v181_v41, 0.0 }
  0xc0   :  { %v1837_v55 = vsel %vm1741_vm7, %v1836_v47, %v1832_v51  ;;  %v356_v57 = vpop.xlane.xlu1 %355  ;;  %v353_v58 = vpop.xlane.xlu0 %352 }
  0xc1   :  { %v1841_v0 = vrot.slane %v1456_v53, %v4208_v13  ;;  %v1846_v1 = vrot.slane %v1457_v54, %v4217_v23  ;;  %v1054_v2 = vpack.c.bf16 %v356_v57, %v353_v58  ;;  %v168_v57 = vld [vmem:[%s5899_s0 + $0x4c0] sm:$0xff] }
  0xc2   :  { %v729_v3 = vsel %vm272_vm0, %v168_v57, 0.0 }
  0xc3   :  { %v1842_v5 = vsel %vm1748_vm8, %v1841_v0, %v1837_v55  ;;  %v1458_v6 = vunpack.c.l.b16 %v1054_v2  ;;  %v1459_v7 = vunpack.c.h.b16 %v1054_v2  ;;  %727 = vadd.xlane.f32.xlu1 %v726_v60  ;;  %724 = vadd.xlane.f32.xlu0 %v723_v61  ;;  %v169_v55 = vld [vmem:[%s5899_s0 + $0x4c8] sm:$0xff] }
  0xc4   :  { %v1847_v10 = vsel %vm1755_vm9, %v1846_v1, %v1842_v5  ;;  %v362_v11 = vpop.xlane.xlu1 %361  ;;  %v359_v12 = vpop.xlane.xlu0 %358  ;;  %v732_v2 = vsel %vm272_vm0, %v169_v55, 0.0 }
  0xc5   :  { %v1851_v18 = vrot.slane %v1458_v6, %v4235_v45  ;;  %v1856_v19 = vrot.slane %v1459_v7, %v4245_v52  ;;  %v1055_v21 = vpack.c.bf16 %v362_v11, %v359_v12  ;;  %v199_v6 = vld [vmem:[%s5899_s0 + $0x5b8] sm:$0xff]  ;;  %v198_v7 = vld [vmem:[%s5899_s0 + $0x5b0] sm:$0xff] }
  0xc6   :  { %v819_v22 = vsel %vm272_vm0, %v198_v7, 0.0 }
  0xc7   :  { %v1852_v26 = vsel %vm1762_vm10, %v1851_v18, %v1847_v10  ;;  %v1460_v27 = vunpack.c.l.b16 %v1055_v21  ;;  %v1461_v29 = vunpack.c.h.b16 %v1055_v21  ;;  %817 = vadd.xlane.f32.xlu1 %v816_v14  ;;  %814 = vadd.xlane.f32.xlu0 %v813_v16  ;;  %v822_v21 = vsel %vm272_vm0, %v199_v6, 0.0 }
  0xc8   :  { %v1857_v30 = vsel %vm1769_vm11, %v1856_v19, %v1852_v26  ;;  %v368_v31 = vpop.xlane.xlu1 %367  ;;  %v365_v33 = vpop.xlane.xlu0 %364 }
  0xc9   :  { %v1861_v20 = vrot.slane %v1460_v27, %v4252_v62  ;;  %v1866_v37 = vrot.slane %v1461_v29, %v4255_v63  ;;  %v1056_v40 = vpack.c.bf16 %v368_v31, %v365_v33  ;;  %v153_v29 = vld [vmem:[%s5899_s0 + $0x448] sm:$0xff] }
  0xca   :  { %v684_v41 = vsel %vm272_vm0, %v153_v29, 0.0 }
  0xcb   :  { %v1462_v43 = vunpack.c.l.b16 %v1056_v40  ;;  %v1463_v44 = vunpack.c.h.b16 %v1056_v40  ;;  %679 = vadd.xlane.f32.xlu1 %v678_v35  ;;  %676 = vadd.xlane.f32.xlu0 %v675_v36  ;;  %v1862_v50 = vsel %vm1776_vm12, %v1861_v20, %v1857_v30  ;;  %v152_v30 = vld [vmem:[%s5899_s0 + $0x440] sm:$0xff] }
  0xcc   :  { %v374_v46 = vpop.xlane.xlu1 %373  ;;  %v371_v47 = vpop.xlane.xlu0 %370  ;;  %v1867_v58 = vsel %vm1783_vm13, %v1866_v37, %v1862_v50  ;;  %v681_v42 = vsel %vm272_vm0, %v152_v30, 0.0 }
  0xcd   :  { %v1871_v51 = vrot.slane %v1462_v43, %v4270_v17  ;;  %v1876_v53 = vrot.slane %v1463_v44, %v4277_v25  ;;  %v1057_v54 = vpack.c.bf16 %v374_v46, %v371_v47  ;;  %v183_v47 = vld [vmem:[%s5899_s0 + $0x538] sm:$0xff] }
  0xce   :  { %v774_v57 = vsel %vm272_vm0, %v183_v47, 0.0 }
  0xcf   :  { %v1464_v60 = vunpack.c.l.b16 %v1057_v54  ;;  %v1465_v61 = vunpack.c.h.b16 %v1057_v54  ;;  %769 = vadd.xlane.f32.xlu1 %v768_v48  ;;  %766 = vadd.xlane.f32.xlu0 %v765_v49  ;;  %v1872_v4 = vsel %vm1790_vm14, %v1871_v51, %v1867_v58  ;;  %v182_v48 = vld [vmem:[%s5899_s0 + $0x530] sm:$0xff] }
  0xd0   :  { %v380_v0 = vpop.xlane.xlu1 %379  ;;  %v377_v1 = vpop.xlane.xlu0 %376  ;;  %v4404_v10 = vsel %vm1797_vm15, %v1876_v53, %v1872_v4  ;;  %v771_v58 = vsel %vm272_vm0, %v182_v48, 0.0 }
  0xd1   :  { %v1058_v5 = vpack.c.bf16 %v380_v0, %v377_v1  ;;  %v1881_v11 = vrot.slane %v1464_v60, %v4146_v28  ;;  %v1885_v12 = vrot.slane %v1465_v61, %v4154_v34  ;;  %v171_v1 = vld [vmem:[%s5899_s0 + $0x4d8] sm:$0xff] }
  0xd3   :  { %v1466_v14 = vunpack.c.l.b16 %v1058_v5  ;;  %v1467_v16 = vunpack.c.h.b16 %v1058_v5  ;;  %733 = vadd.xlane.f32.xlu1 %v732_v2  ;;  %730 = vadd.xlane.f32.xlu0 %v729_v3  ;;  %v1886_v31 = vsel %vm1699_vm1, %v1885_v12, %v1881_v11  ;;  %v170_v2 = vld [vmem:[%s5899_s0 + $0x4d0] sm:$0xff]  ;;  %v738_v12 = vsel %vm272_vm0, %v171_v1, 0.0 }
  0xd4   :  { %v386_v18 = vpop.xlane.xlu1 %385  ;;  %v383_v19 = vpop.xlane.xlu0 %382 }
  0xd5   :  { %v1890_v24 = vrot.slane %v1466_v14, %v4151_v32  ;;  %v1895_v26 = vrot.slane %v1467_v16, %v4163_v38  ;;  %v1059_v27 = vpack.c.bf16 %v386_v18, %v383_v19  ;;  %v735_v14 = vsel %vm272_vm0, %v170_v2, 0.0 }
  0xd7   :  { %v1891_v33 = vsel %vm1706_vm2, %v1890_v24, %v1886_v31  ;;  %v1468_v35 = vunpack.c.l.b16 %v1059_v27  ;;  %v1469_v36 = vunpack.c.h.b16 %v1059_v27  ;;  %823 = vadd.xlane.f32.xlu1 %v822_v21  ;;  %820 = vadd.xlane.f32.xlu0 %v819_v22  ;;  %v201_v21 = vld [vmem:[%s5899_s0 + $0x5c8] sm:$0xff]  ;;  %v200_v22 = vld [vmem:[%s5899_s0 + $0x5c0] sm:$0xff] }
  0xd8   :  { %v1896_v20 = vsel %vm1713_vm3, %v1895_v26, %v1891_v33  ;;  %v392_v37 = vpop.xlane.xlu1 %391  ;;  %v389_v40 = vpop.xlane.xlu0 %388  ;;  %v828_v33 = vsel %vm272_vm0, %v201_v21, 0.0 }
  0xd9   :  { %v1900_v43 = vrot.slane %v1468_v35, %v4166_v39  ;;  %v1905_v44 = vrot.slane %v1469_v36, %v4183_v56  ;;  %v1060_v46 = vpack.c.bf16 %v392_v37, %v389_v40  ;;  %v825_v35 = vsel %vm272_vm0, %v200_v22, 0.0  ;;  %v155_v40 = vld [vmem:[%s5899_s0 + $0x458] sm:$0xff] }
  0xdb   :  { %v1901_v49 = vsel %vm1720_vm4, %v1900_v43, %v1896_v20  ;;  %v1470_v50 = vunpack.c.l.b16 %v1060_v46  ;;  %v1471_v51 = vunpack.c.h.b16 %v1060_v46  ;;  %685 = vadd.xlane.f32.xlu1 %v684_v41  ;;  %682 = vadd.xlane.f32.xlu0 %v681_v42  ;;  %v154_v41 = vld [vmem:[%s5899_s0 + $0x450] sm:$0xff] }
  0xdc   :  { %v1906_v53 = vsel %vm5910_vm5, %v1905_v44, %v1901_v49  ;;  %v398_v54 = vpop.xlane.xlu1 %397  ;;  %v395_v55 = vpop.xlane.xlu0 %394  ;;  %v690_v49 = vsel %vm272_vm0, %v155_v40, 0.0 }
  0xdd   :  { %v1910_v60 = vrot.slane %v1470_v50, %v4200_v8  ;;  %v1915_v61 = vrot.slane %v1471_v51, %v4203_v9  ;;  %v1061_v0 = vpack.c.bf16 %v398_v54, %v395_v55  ;;  %v687_v50 = vsel %vm272_vm0, %v154_v41, 0.0  ;;  %v185_v55 = vld [vmem:[%s5899_s0 + $0x548] sm:$0xff] }
  0xdf   :  { %v1911_v3 = vsel %vm1734_vm6, %v1910_v60, %v1906_v53  ;;  %v1472_v4 = vunpack.c.l.b16 %v1061_v0  ;;  %v1473_v5 = vunpack.c.h.b16 %v1061_v0  ;;  %775 = vadd.xlane.f32.xlu1 %v774_v57  ;;  %772 = vadd.xlane.f32.xlu0 %v771_v58  ;;  %v184_v57 = vld [vmem:[%s5899_s0 + $0x540] sm:$0xff] }
  0xe0   :  { %v1916_v6 = vsel %vm1741_vm7, %v1915_v61, %v1911_v3  ;;  %v404_v7 = vpop.xlane.xlu1 %403  ;;  %v401_v11 = vpop.xlane.xlu0 %400  ;;  %v780_v3 = vsel %vm272_vm0, %v185_v55, 0.0 }
  0xe1   :  { %v1920_v16 = vrot.slane %v1472_v4, %v4208_v13  ;;  %v1925_v18 = vrot.slane %v1473_v5, %v4217_v23  ;;  %v1062_v19 = vpack.c.bf16 %v404_v7, %v401_v11  ;;  %v777_v4 = vsel %vm272_vm0, %v184_v57, 0.0  ;;  %v173_v11 = vld [vmem:[%s5899_s0 + $0x4e8] sm:$0xff] }
  0xe2   :  { %v744_v21 = vsel %vm272_vm0, %v173_v11, 0.0 }
  0xe3   :  { %v1921_v24 = vsel %vm1748_vm8, %v1920_v16, %v1916_v6  ;;  %v1474_v26 = vunpack.c.l.b16 %v1062_v19  ;;  %v1475_v27 = vunpack.c.h.b16 %v1062_v19  ;;  %739 = vadd.xlane.f32.xlu1 %v738_v12  ;;  %736 = vadd.xlane.f32.xlu0 %v735_v14  ;;  %v172_v12 = vld [vmem:[%s5899_s0 + $0x4e0] sm:$0xff] }
  0xe4   :  { %v1926_v29 = vsel %vm1755_vm9, %v1925_v18, %v1921_v24  ;;  %v410_v30 = vpop.xlane.xlu1 %409  ;;  %v407_v31 = vpop.xlane.xlu0 %406  ;;  %v741_v22 = vsel %vm272_vm0, %v172_v12, 0.0 }
  0xe5   :  { %v1930_v36 = vrot.slane %v1474_v26, %v4235_v45  ;;  %v1935_v20 = vrot.slane %v1475_v27, %v4245_v52  ;;  %v1063_v37 = vpack.c.bf16 %v410_v30, %v407_v31  ;;  %v203_v27 = vld [vmem:[%s5899_s0 + $0x5d8] sm:$0xff] }
  0xe6   :  { %v834_v40 = vsel %vm272_vm0, %v203_v27, 0.0 }
  0xe7   :  { %v1931_v42 = vsel %vm1762_vm10, %v1930_v36, %v1926_v29  ;;  %v1476_v43 = vunpack.c.l.b16 %v1063_v37  ;;  %v1477_v44 = vunpack.c.h.b16 %v1063_v37  ;;  %829 = vadd.xlane.f32.xlu1 %v828_v33  ;;  %826 = vadd.xlane.f32.xlu0 %v825_v35  ;;  %v202_v29 = vld [vmem:[%s5899_s0 + $0x5d0] sm:$0xff] }
  0xe8   :  { %v1936_v46 = vsel %vm1769_vm11, %v1935_v20, %v1931_v42  ;;  %v416_v47 = vpop.xlane.xlu1 %415  ;;  %v413_v48 = vpop.xlane.xlu0 %412  ;;  %v831_v41 = vsel %vm272_vm0, %v202_v29, 0.0  ;;  %v3731_v29 = vld [vmem:[%s5900_s1 + $0x78] sm:$0xff]  }
  0xe9   :  { %v1940_v51 = vrot.slane %v1476_v43, %v4252_v62  ;;  %v1945_v53 = vrot.slane %v1477_v44, %v4255_v63  ;;  %v1064_v54 = vpack.c.bf16 %v416_v47, %v413_v48  ;;  %v156_v47 = vld [vmem:[%s5899_s0 + $0x460] sm:$0xff]  ;;  %3642 = vmatprep.subr.bf16.mxu0 %v3731_v29 }
  0xea   :  { %v3737_v29 = vld [vmem:[%s5900_s1 + $0x60] sm:$0xff]  }
  0xeb   :  { %v1941_v58 = vsel %vm1776_vm12, %v1940_v51, %v1936_v46  ;;  %v1478_v60 = vunpack.c.l.b16 %v1064_v54  ;;  %v1479_v61 = vunpack.c.h.b16 %v1064_v54  ;;  %691 = vadd.xlane.f32.xlu1 %v690_v49  ;;  %688 = vadd.xlane.f32.xlu0 %v687_v50  ;;  %v157_v46 = vld [vmem:[%s5899_s0 + $0x468] sm:$0xff] }
  0xec   :  { %v1946_v0 = vsel %vm1783_vm13, %v1945_v53, %v1941_v58  ;;  %v422_v1 = vpop.xlane.xlu1 %421  ;;  %v419_v2 = vpop.xlane.xlu0 %418  ;;  %v696_v57 = vsel %vm272_vm0, %v157_v46, 0.0  ;;  %v693_v58 = vsel %vm272_vm0, %v156_v47, 0.0 }
  0xed   :  { %v1950_v5 = vrot.slane %v1478_v60, %v4270_v17  ;;  %v1955_v6 = vrot.slane %v1479_v61, %v4277_v25  ;;  %v1065_v7 = vpack.c.bf16 %v422_v1, %v419_v2  ;;  %v187_v1 = vld [vmem:[%s5899_s0 + $0x558] sm:$0xff]  ;;  %v186_v2 = vld [vmem:[%s5899_s0 + $0x550] sm:$0xff] }
  0xee   :  { %v786_v12 = vsel %vm272_vm0, %v187_v1, 0.0  ;;  %v158_v1 = vld [vmem:[%s5899_s0 + $0x470] sm:$0xff] }
  0xef   :  { %v1480_v14 = vunpack.c.l.b16 %v1065_v7  ;;  %v1481_v16 = vunpack.c.h.b16 %v1065_v7  ;;  %781 = vadd.xlane.f32.xlu1 %v780_v3  ;;  %778 = vadd.xlane.f32.xlu0 %v777_v4  ;;  %v1951_v24 = vsel %vm1790_vm14, %v1950_v5, %v1946_v0 }
  0xf0   :  { %v428_v18 = vpop.xlane.xlu1 %427  ;;  %v425_v19 = vpop.xlane.xlu0 %424  ;;  %v4501_v30 = vsel %vm1797_vm15, %v1955_v6, %v1951_v24 }
  0xf1   :  { %v1066_v26 = vpack.c.bf16 %v428_v18, %v425_v19  ;;  %v1960_v31 = vrot.slane %v1480_v14, %v4146_v28  ;;  %v1964_v33 = vrot.slane %v1481_v16, %v4154_v34  ;;  %v783_v14 = vsel %vm272_vm0, %v186_v2, 0.0 }
  0xf3   :  { %v1482_v35 = vunpack.c.l.b16 %v1066_v26  ;;  %v1483_v36 = vunpack.c.h.b16 %v1066_v26  ;;  %745 = vadd.xlane.f32.xlu1 %v744_v21  ;;  %742 = vadd.xlane.f32.xlu0 %v741_v22  ;;  %v1965_v48 = vsel %vm1699_vm1, %v1964_v33, %v1960_v31  ;;  %v175_v21 = vld [vmem:[%s5899_s0 + $0x4f8] sm:$0xff]  ;;  %v174_v22 = vld [vmem:[%s5899_s0 + $0x4f0] sm:$0xff] }
  0xf4   :  { %v434_v20 = vpop.xlane.xlu1 %433  ;;  %v431_v37 = vpop.xlane.xlu0 %430 }
  0xf5   :  { %v1969_v42 = vrot.slane %v1482_v35, %v4151_v32  ;;  %v1974_v43 = vrot.slane %v1483_v36, %v4163_v38  ;;  %v1067_v44 = vpack.c.bf16 %v434_v20, %v431_v37  ;;  %v750_v36 = vsel %vm272_vm0, %v175_v21, 0.0  ;;  %v3732_v37 = vld [vmem:[%s5900_s1 + $0x38] sm:$0xff]   ;;  %v189_v21 = vld [vmem:[%s5899_s0 + $0x568] sm:$0xff] }
  0xf6   :  { %v747_v20 = vsel %vm272_vm0, %v174_v22, 0.0  ;;  %3643 = vmatpush3.bf16.msra.mxu0 %v3732_v37  ;;  %v188_v22 = vld [vmem:[%s5899_s0 + $0x560] sm:$0xff] }
  0xf7   :  { %v1970_v49 = vsel %vm1706_vm2, %v1969_v42, %v1965_v48  ;;  %v1484_v50 = vunpack.c.l.b16 %v1067_v44  ;;  %v1485_v51 = vunpack.c.h.b16 %v1067_v44  ;;  %835 = vadd.xlane.f32.xlu1 %v834_v40  ;;  %832 = vadd.xlane.f32.xlu0 %v831_v41  ;;  %v204_v44 = vld [vmem:[%s5899_s0 + $0x5e0] sm:$0xff] }
  0xf8   :  { %v1975_v53 = vsel %vm1713_vm3, %v1974_v43, %v1970_v49  ;;  %v440_v54 = vpop.xlane.xlu1 %439  ;;  %v437_v55 = vpop.xlane.xlu0 %436  ;;  %v205_v43 = vld [vmem:[%s5899_s0 + $0x5e8] sm:$0xff]  ;;  %v3733_v49 = vld [vmem:[%s5900_s1 + $0x70] sm:$0xff]   ;;  %v3739_v37 = vld [vmem:[%s5900_s1 + $0x20] sm:$0xff]  }
  0xf9   :  { %v1979_v60 = vrot.slane %v1484_v50, %v4166_v39  ;;  %v1984_v61 = vrot.slane %v1485_v51, %v4183_v56  ;;  %v1068_v0 = vpack.c.bf16 %v440_v54, %v437_v55  ;;  %v840_v54 = vsel %vm272_vm0, %v205_v43, 0.0  ;;  %3644 = vmatprep.subr.bf16.mxu0 %v3733_v49 }
  0xfa   :  { %v837_v55 = vsel %vm272_vm0, %v204_v44, 0.0  ;;  %v207_v44 = vld [vmem:[%s5899_s0 + $0x5f8] sm:$0xff] }
  0xfb   :  { %v1980_v3 = vsel %vm1720_vm4, %v1979_v60, %v1975_v53  ;;  %v1486_v4 = vunpack.c.l.b16 %v1068_v0  ;;  %v1487_v5 = vunpack.c.h.b16 %v1068_v0  ;;  %697 = vadd.xlane.f32.xlu1 %v696_v57  ;;  %694 = vadd.xlane.f32.xlu0 %v693_v58  ;;  %v3734_v57 = vld [vmem:[%s5900_s1 + $0x30] sm:$0xff]   ;;  %v159_v0 = vld [vmem:[%s5899_s0 + $0x478] sm:$0xff] }
  0xfc   :  { %v1985_v6 = vsel %vm5910_vm5, %v1984_v61, %v1980_v3  ;;  %v446_v7 = vpop.xlane.xlu1 %445  ;;  %v443_v11 = vpop.xlane.xlu0 %442  ;;  %3645 = vmatpush3.bf16.msra.mxu0 %v3734_v57  ;;  %v846_v57 = vsel %vm272_vm0, %v207_v44, 0.0 }
  0xfd   :  { %v1989_v16 = vrot.slane %v1486_v4, %v4200_v8  ;;  %v1994_v18 = vrot.slane %v1487_v5, %v4203_v9  ;;  %v1069_v19 = vpack.c.bf16 %v446_v7, %v443_v11  ;;  %v3735_v5 = vld [vmem:[%s5900_s1 + $0x68] sm:$0xff]  }
  0xfe   :  { %3646 = vmatprep.subr.bf16.mxu0 %v3735_v5 }
  0xff   :  { %v1990_v24 = vsel %vm1734_vm6, %v1989_v16, %v1985_v6  ;;  %v1488_v26 = vunpack.c.l.b16 %v1069_v19  ;;  %v1489_v27 = vunpack.c.h.b16 %v1069_v19  ;;  %787 = vadd.xlane.f32.xlu1 %v786_v12  ;;  %784 = vadd.xlane.f32.xlu0 %v783_v14  ;;  %v702_v12 = vsel %vm272_vm0, %v159_v0, 0.0  ;;  %v3736_v16 = vld [vmem:[%s5900_s1 + $0x28] sm:$0xff]  }
 0x100   :  { %v1995_v31 = vsel %vm1741_vm7, %v1994_v18, %v1990_v24  ;;  %v452_v33 = vpop.xlane.xlu1 %451  ;;  %v449_v35 = vpop.xlane.xlu0 %448  ;;  %v699_v14 = vsel %vm272_vm0, %v158_v1, 0.0  ;;  %3647 = vmatpush3.bf16.msra.mxu0 %v3736_v16 }
 0x101   :  { %v1999_v40 = vrot.slane %v1488_v26, %v4208_v13  ;;  %v2004_v41 = vrot.slane %v1489_v27, %v4217_v23  ;;  %v1070_v42 = vpack.c.bf16 %v452_v33, %v449_v35  ;;  %3648 = vmatprep.subr.bf16.mxu0 %v3737_v29 }
 0x103   :  { %v2000_v46 = vsel %vm1748_vm8, %v1999_v40, %v1995_v31  ;;  %v1490_v47 = vunpack.c.l.b16 %v1070_v42  ;;  %v1491_v48 = vunpack.c.h.b16 %v1070_v42  ;;  %751 = vadd.xlane.f32.xlu1 %v750_v36  ;;  %748 = vadd.xlane.f32.xlu0 %v747_v20  ;;  %v3738_v31 = vld [vmem:[%s5900_s1 + $0xf8] sm:$0xff]   ;;  %v792_v36 = vsel %vm272_vm0, %v189_v21, 0.0 }
 0x104   :  { %v2005_v50 = vsel %vm1755_vm9, %v2004_v41, %v2000_v46  ;;  %v458_v51 = vpop.xlane.xlu1 %457  ;;  %v455_v53 = vpop.xlane.xlu0 %454  ;;  %v789_v20 = vsel %vm272_vm0, %v188_v22, 0.0  ;;  %v3740_v40 = vld [vmem:[%s5900_s1 + $0xb8] sm:$0xff]   ;;  %v206_v46 = vld [vmem:[%s5899_s0 + $0x5f0] sm:$0xff]  ;;  %3664 = vmatprep.subr.bf16.mxu1 %v3738_v31  ;;  %3649 = vmatpush3.bf16.msra.mxu0 %v3739_v37  ;;  %v97_v31 = vld [vmem:[%s5899_s0 + $0x288] sm:$0xff] }
 0x105   :  { %v2009_v58 = vrot.slane %v1490_v47, %v4235_v45  ;;  %v2014_v60 = vrot.slane %v1491_v48, %v4245_v52  ;;  %v1071_v61 = vpack.c.bf16 %v458_v51, %v455_v53  ;;  %3665 = vmatpush3.bf16.msra.mxu1 %v3740_v40  ;;  %v3741_v51 = vld [vmem:[%s5900_s1 + $0x58] sm:$0xff]   ;;  %v3742_v53 = vld [vmem:[%s5900_s1 + $0xf0] sm:$0xff]   ;;  %v3749_v40 = vld [vmem:[%s5900_s1 + $0x48] sm:$0xff]  }
 0x106   :  { %3650 = vmatprep.subr.bf16.mxu0 %v3741_v51  ;;  %3666 = vmatprep.subr.bf16.mxu1 %v3742_v53  ;;  %v3747_v22 = vld [vmem:[%s5900_s1 + $0x10] sm:$0xff]  }
 0x107   :  { %v2010_v2 = vsel %vm1762_vm10, %v2009_v58, %v2005_v50  ;;  %v1492_v3 = vunpack.c.l.b16 %v1071_v61  ;;  %v1493_v4 = vunpack.c.h.b16 %v1071_v61  ;;  %841 = vadd.xlane.f32.xlu1 %v840_v54  ;;  %838 = vadd.xlane.f32.xlu0 %v837_v55  ;;  %v843_v58 = vsel %vm272_vm0, %v206_v46, 0.0  ;;  %v3744_v61 = vld [vmem:[%s5900_s1 + $0xb0] sm:$0xff]  }
 0x108   :  { %v2015_v6 = vsel %vm1769_vm11, %v2014_v60, %v2010_v2  ;;  %v464_v7 = vpop.xlane.xlu1 %463  ;;  %v461_v11 = vpop.xlane.xlu0 %460  ;;  %v3743_v60 = vld [vmem:[%s5900_s1 + $0x18] sm:$0xff]   ;;  %v516_v46 = vsel %vm272_vm0, %v97_v31, 0.0 }
 0x109   :  { %v2019_v18 = vrot.slane %v1492_v3, %v4252_v62  ;;  %v1072_v19 = vpack.c.bf16 %v464_v7, %v461_v11  ;;  %v2024_v24 = vrot.slane %v1493_v4, %v4255_v63  ;;  %v191_v2 = vld [vmem:[%s5899_s0 + $0x578] sm:$0xff]  ;;  %v190_v3 = vld [vmem:[%s5899_s0 + $0x570] sm:$0xff]  ;;  %3651 = vmatpush3.bf16.msra.mxu0 %v3743_v60  ;;  %3667 = vmatpush3.bf16.msra.mxu1 %v3744_v61  ;;  %v3753_v61 = vld [vmem:[%s5900_s1 + $0x40] sm:$0xff]  }
 0x10a   :  { %v795_v21 = vsel %vm272_vm0, %v190_v3, 0.0 }
 0x10b   :  { %v1494_v26 = vunpack.c.l.b16 %v1072_v19  ;;  %v1495_v27 = vunpack.c.h.b16 %v1072_v19  ;;  %703 = vadd.xlane.f32.xlu1 %v702_v12  ;;  %700 = vadd.xlane.f32.xlu0 %v699_v14  ;;  %v2020_v41 = vsel %vm1776_vm12, %v2019_v18, %v2015_v6  ;;  %v3745_v12 = vld [vmem:[%s5900_s1 + $0x50] sm:$0xff]   ;;  %v3746_v14 = vld [vmem:[%s5900_s1 + $0xe8] sm:$0xff]   ;;  %v798_v19 = vsel %vm272_vm0, %v191_v2, 0.0 }
 0x10c   :  { %v470_v33 = vpop.xlane.xlu1 %469  ;;  %v467_v35 = vpop.xlane.xlu0 %466  ;;  %v2025_v48 = vsel %vm1783_vm13, %v2024_v24, %v2020_v41  ;;  %v3748_v24 = vld [vmem:[%s5900_s1 + $0xa8] sm:$0xff]   ;;  %3652 = vmatprep.subr.bf16.mxu0 %v3745_v12  ;;  %3668 = vmatprep.subr.bf16.mxu1 %v3746_v14  ;;  %v3750_v41 = vld [vmem:[%s5900_s1 + $0xe0] sm:$0xff]  }
 0x10d   :  { %v2029_v42 = vrot.slane %v1494_v26, %v4270_v17  ;;  %v1073_v43 = vpack.c.bf16 %v470_v33, %v467_v35  ;;  %v2034_v47 = vrot.slane %v1495_v27, %v4277_v25  ;;  %v96_v33 = vld [vmem:[%s5899_s0 + $0x280] sm:$0xff]  ;;  %3653 = vmatpush3.bf16.msra.mxu0 %v3747_v22  ;;  %3669 = vmatpush3.bf16.msra.mxu1 %v3748_v24 }
 0x10e   :  { %3654 = vmatprep.subr.bf16.mxu0 %v3749_v40  ;;  %3670 = vmatprep.subr.bf16.mxu1 %v3750_v41  ;;  %v209_v41 = vld [vmem:[%s5899_s0 + $0x608] sm:$0xff] }
 0x10f   :  { %v1496_v49 = vunpack.c.l.b16 %v1073_v43  ;;  %v1497_v50 = vunpack.c.h.b16 %v1073_v43  ;;  %793 = vadd.xlane.f32.xlu1 %v792_v36  ;;  %790 = vadd.xlane.f32.xlu0 %v789_v20  ;;  %v2030_v0 = vsel %vm1790_vm14, %v2029_v42, %v2025_v48  ;;  %v3751_v48 = vld [vmem:[%s5900_s1 + $0x8] sm:$0xff]  }
 0x110   :  { %v476_v54 = vpop.xlane.xlu1 %475  ;;  %v473_v55 = vpop.xlane.xlu0 %472  ;;  %v4642_v6 = vsel %vm1797_vm15, %v2034_v47, %v2030_v0  ;;  %v513_v47 = vsel %vm272_vm0, %v96_v33, 0.0  ;;  %v3754_v0 = vld [vmem:[%s5900_s1 + $0xd8] sm:$0xff]  }
 0x111   :  { %v1074_v1 = vpack.c.bf16 %v476_v54, %v473_v55  ;;  %v2039_v4 = vrot.slane %v1496_v49, %v4146_v28  ;;  %v2043_v5 = vrot.slane %v1497_v50, %v4154_v34  ;;  %v3752_v49 = vld [vmem:[%s5900_s1 + $0xa0] sm:$0xff]   ;;  %v225_v54 = vld [vmem:[%s5899_s0 + $0x688] sm:$0xff]  ;;  %3655 = vmatpush3.bf16.msra.mxu0 %v3751_v48 }
 0x112   :  { %v224_v55 = vld [vmem:[%s5899_s0 + $0x680] sm:$0xff]  ;;  %3671 = vmatpush3.bf16.msra.mxu1 %v3752_v49  ;;  %3656 = vmatprep.subr.bf16.mxu0 %v3753_v61  ;;  %v226_v61 = vld [vmem:[%s5899_s0 + $0x690] sm:$0xff] }
 0x113   :  { %v1498_v7 = vunpack.c.l.b16 %v1074_v1  ;;  %v1499_v11 = vunpack.c.h.b16 %v1074_v1  ;;  %847 = vadd.xlane.f32.xlu1 %v846_v57  ;;  %844 = vadd.xlane.f32.xlu0 %v843_v58  ;;  %v2044_v35 = vsel %vm1699_vm1, %v2043_v5, %v2039_v4  ;;  %v900_v4 = vsel %vm272_vm0, %v225_v54, 0.0  ;;  %v3760_v54 = vld [vmem:[%s5900_s1 + $0x88] sm:$0xff]  }
 0x114   :  { %v482_v16 = vpop.xlane.xlu1 %481  ;;  %v479_v18 = vpop.xlane.xlu0 %478  ;;  %v897_v5 = vsel %vm272_vm0, %v224_v55, 0.0  ;;  %3672 = vmatprep.subr.bf16.mxu1 %v3754_v0 }
 0x115   :  { %v2048_v26 = vrot.slane %v1498_v7, %v4151_v32  ;;  %v2053_v27 = vrot.slane %v1499_v11, %v4163_v38  ;;  %v1075_v29 = vpack.c.bf16 %v482_v16, %v479_v18  ;;  %v3755_v7 = vld [vmem:[%s5900_s1] sm:$0xff]   ;;  %v3756_v11 = vld [vmem:[%s5900_s1 + $0x98] sm:$0xff]  }
 0x116   :  { %v99_v18 = vld [vmem:[%s5899_s0 + $0x298] sm:$0xff]  ;;  %3657 = vmatpush3.bf16.msra.mxu0 %v3755_v7  ;;  %3673 = vmatpush3.bf16.msra.mxu1 %v3756_v11  ;;  %v903_v7 = vsel %vm272_vm0, %v226_v61, 0.0 }
 0x117   :  { %v2049_v36 = vsel %vm1706_vm2, %v2048_v26, %v2044_v35  ;;  %v1500_v20 = vunpack.c.l.b16 %v1075_v29  ;;  %v1501_v37 = vunpack.c.h.b16 %v1075_v29  ;;  %799 = vadd.xlane.f32.xlu1 %v798_v19  ;;  %796 = vadd.xlane.f32.xlu0 %v795_v21  ;;  %v98_v19 = vld [vmem:[%s5899_s0 + $0x290] sm:$0xff]  ;;  %v522_v33 = vsel %vm272_vm0, %v99_v18, 0.0 }
 0x118   :  { %v2054_v42 = vsel %vm1713_vm3, %v2053_v27, %v2049_v36  ;;  %v488_v43 = vpop.xlane.xlu1 %487  ;;  %v485_v44 = vpop.xlane.xlu0 %484  ;;  %v3757_v26 = vld [vmem:[%s5900_s1 + $0xd0] sm:$0xff]   ;;  %v519_v35 = vsel %vm272_vm0, %v98_v19, 0.0 }
 0x119   :  { %v2058_v50 = vrot.slane %v1500_v20, %v4166_v39  ;;  %v2063_v51 = vrot.slane %v1501_v37, %v4183_v56  ;;  %v1076_v53 = vpack.c.bf16 %v488_v43, %v485_v44  ;;  %v3758_v36 = vld [vmem:[%s5900_s1 + $0x90] sm:$0xff]   ;;  %3674 = vmatprep.subr.bf16.mxu1 %v3757_v26 }
 0x11a   :  { %3675 = vmatpush3.bf16.msra.mxu1 %v3758_v36 }
 0x11b   :  { %v2059_v57 = vsel %vm1720_vm4, %v2058_v50, %v2054_v42  ;;  %v1502_v58 = vunpack.c.l.b16 %v1076_v53  ;;  %v1503_v60 = vunpack.c.h.b16 %v1076_v53  ;;  %517 = vadd.xlane.f32.xlu1 %v516_v46  ;;  %514 = vadd.xlane.f32.xlu0 %v513_v47  ;;  %v208_v42 = vld [vmem:[%s5899_s0 + $0x600] sm:$0xff]  ;;  %v3759_v47 = vld [vmem:[%s5900_s1 + $0xc8] sm:$0xff]  }
 0x11c   :  { %v2064_v1 = vsel %vm5910_vm5, %v2063_v51, %v2059_v57  ;;  %v494_v2 = vpop.xlane.xlu1 %493  ;;  %v491_v3 = vpop.xlane.xlu0 %490  ;;  %v852_v51 = vsel %vm272_vm0, %v209_v41, 0.0  ;;  %v849_v53 = vsel %vm272_vm0, %v208_v42, 0.0  ;;  %3676 = vmatprep.subr.bf16.mxu1 %v3759_v47 }
 0x11d   :  { %v2068_v12 = vrot.slane %v1502_v58, %v4200_v8  ;;  %v2073_v14 = vrot.slane %v1503_v60, %v4203_v9  ;;  %v1077_v16 = vpack.c.bf16 %v494_v2, %v491_v3  ;;  %v227_v60 = vld [vmem:[%s5899_s0 + $0x698] sm:$0xff] }
 0x11e   :  { %3677 = vmatpush3.bf16.msra.mxu1 %v3760_v54 }
 0x11f   :  { %v2069_v21 = vsel %vm1734_vm6, %v2068_v12, %v2064_v1  ;;  %v1504_v22 = vunpack.c.l.b16 %v1077_v16  ;;  %v1505_v24 = vunpack.c.h.b16 %v1077_v16  ;;  %901 = vadd.xlane.f32.xlu1 %v900_v4  ;;  %898 = vadd.xlane.f32.xlu0 %v897_v5  ;;  %v3761_v1 = vld [vmem:[%s5900_s1 + $0xc0] sm:$0xff]   ;;  %v906_v5 = vsel %vm272_vm0, %v227_v60, 0.0  ;;  %v129_v12 = vld [vmem:[%s5899_s0 + $0x388] sm:$0xff] }
 0x120   :  { %v2074_v27 = vsel %vm1741_vm7, %v2073_v14, %v2069_v21  ;;  %v500_v29 = vpop.xlane.xlu1 %499  ;;  %v497_v31 = vpop.xlane.xlu0 %496  ;;  %v128_v14 = vld [vmem:[%s5899_s0 + $0x380] sm:$0xff]  ;;  %3678 = vmatprep.subr.bf16.mxu1 %v3761_v1 }
 0x121   :  { %v2078_v20 = vrot.slane %v1504_v22, %v4208_v13  ;;  %v2083_v37 = vrot.slane %v1505_v24, %v4217_v23  ;;  %v1078_v40 = vpack.c.bf16 %v500_v29, %v497_v31  ;;  %v3762_v16 = vld [vmem:[%s5900_s1 + $0x80] sm:$0xff]   ;;  %v612_v24 = vsel %vm272_vm0, %v129_v12, 0.0  ;;  %v211_v29 = vld [vmem:[%s5899_s0 + $0x618] sm:$0xff]  ;;  %v210_v31 = vld [vmem:[%s5899_s0 + $0x610] sm:$0xff] }
 0x122   :  { %v609_v26 = vsel %vm272_vm0, %v128_v14, 0.0  ;;  %3679 = vmatpush3.bf16.msra.mxu1 %v3762_v16  ;;  %v100_v12 = vld [vmem:[%s5899_s0 + $0x2a0] sm:$0xff] }
 0x123   :  { %v2079_v43 = vsel %vm1748_vm8, %v2078_v20, %v2074_v27  ;;  %v1506_v44 = vunpack.c.l.b16 %v1078_v40  ;;  %v1507_v46 = vunpack.c.h.b16 %v1078_v40  ;;  %523 = vadd.xlane.f32.xlu1 %v522_v33  ;;  %520 = vadd.xlane.f32.xlu0 %v519_v35 }
 0x124   :  { %v2084_v48 = vsel %vm1755_vm9, %v2083_v37, %v2079_v43  ;;  %v710_v49 = vpop.xlane.xlu1 %709  ;;  %v707_v50 = vpop.xlane.xlu0 %706  ;;  %v858_v43 = vsel %vm272_vm0, %v211_v29, 0.0  ;;  %v112_v29 = vld [vmem:[%s5899_s0 + $0x300] sm:$0xff] }
 0x125   :  { %v2088_v55 = vrot.slane %v1506_v44, %v4235_v45  ;;  %v2093_v57 = vrot.slane %v1507_v46, %v4245_v52  ;;  %v1113_v58 = vpack.c.bf16 %v710_v49, %v707_v50  ;;  %v855_v44 = vsel %vm272_vm0, %v210_v31, 0.0  ;;  %v257_v49 = vld [vmem:[%s5899_s0 + $0x788] sm:$0xff]  ;;  %v256_v50 = vld [vmem:[%s5899_s0 + $0x780] sm:$0xff] }
 0x126   :  { %v996_v1 = vsel %vm272_vm0, %v257_v49, 0.0 }
 0x127   :  { %v2089_v0 = vsel %vm1762_vm10, %v2088_v55, %v2084_v48  ;;  %853 = vadd.xlane.f32.xlu1 %v852_v51  ;;  %850 = vadd.xlane.f32.xlu0 %v849_v53  ;;  %v1576_v18 = vunpack.c.l.b16 %v1113_v58  ;;  %v1577_v19 = vunpack.c.h.b16 %v1113_v58 }
 0x128   :  { %v4756_v2 = vsel %vm1769_vm11, %v2093_v57, %v2089_v0  ;;  %v662_v3 = vpop.xlane.xlu1 %661  ;;  %v659_v4 = vpop.xlane.xlu0 %658 }
 0x129   :  { %5916 = vst [vmem:[#allocation9_spill] sm:$0xff] %v4756_v2  ;;  %v1105_v11 = vpack.c.bf16 %v662_v3, %v659_v4  ;;  %v2434_v33 = vrot.slane %v1576_v18, %v4146_v28  ;;  %v2438_v35 = vrot.slane %v1577_v19, %v4154_v34  ;;  %v993_v3 = vsel %vm272_vm0, %v256_v50, 0.0 }
 0x12b   :  { %907 = vadd.xlane.f32.xlu1 %v906_v5  ;;  %904 = vadd.xlane.f32.xlu0 %v903_v7  ;;  %v1560_v36 = vunpack.c.l.b16 %v1105_v11  ;;  %v1561_v20 = vunpack.c.h.b16 %v1105_v11  ;;  %v2439_v51 = vsel %vm1699_vm1, %v2438_v35, %v2434_v33  ;;  %v101_v11 = vld [vmem:[%s5899_s0 + $0x2a8] sm:$0xff] }
 0x12c   :  { %v716_v21 = vpop.xlane.xlu1 %715  ;;  %v713_v22 = vpop.xlane.xlu0 %712 }
 0x12d   :  { %v1114_v27 = vpack.c.bf16 %v716_v21, %v713_v22  ;;  %v2355_v53 = vrot.slane %v1560_v36, %v4146_v28  ;;  %v2359_v54 = vrot.slane %v1561_v20, %v4154_v34  ;;  %v528_v22 = vsel %vm272_vm0, %v101_v11, 0.0 }
 0x12f   :  { %v1578_v37 = vunpack.c.l.b16 %v1114_v27  ;;  %v1579_v40 = vunpack.c.h.b16 %v1114_v27  ;;  %613 = vadd.xlane.f32.xlu1 %v612_v24  ;;  %610 = vadd.xlane.f32.xlu0 %v609_v26  ;;  %v2360_v14 = vsel %vm1699_vm1, %v2359_v54, %v2355_v53  ;;  %v525_v24 = vsel %vm272_vm0, %v100_v12, 0.0  ;;  %v113_v27 = vld [vmem:[%s5899_s0 + $0x308] sm:$0xff] }
 0x130   :  { %v668_v41 = vpop.xlane.xlu1 %667  ;;  %v665_v42 = vpop.xlane.xlu0 %664  ;;  %v564_v20 = vsel %vm272_vm0, %v113_v27, 0.0 }
 0x131   :  { %v2443_v46 = vrot.slane %v1578_v37, %v4151_v32  ;;  %v2448_v47 = vrot.slane %v1579_v40, %v4163_v38  ;;  %v1106_v48 = vpack.c.bf16 %v668_v41, %v665_v42  ;;  %v561_v37 = vsel %vm272_vm0, %v112_v29, 0.0 }
 0x133   :  { %v2444_v55 = vsel %vm1706_vm2, %v2443_v46, %v2439_v51  ;;  %v1562_v57 = vunpack.c.l.b16 %v1106_v48  ;;  %v1563_v58 = vunpack.c.h.b16 %v1106_v48  ;;  %859 = vadd.xlane.f32.xlu1 %v858_v43  ;;  %856 = vadd.xlane.f32.xlu0 %v855_v44  ;;  %v131_v43 = vld [vmem:[%s5899_s0 + $0x398] sm:$0xff]  ;;  %v130_v44 = vld [vmem:[%s5899_s0 + $0x390] sm:$0xff] }
 0x134   :  { %v2449_v60 = vsel %vm1713_vm3, %v2448_v47, %v2444_v55  ;;  %v806_v61 = vpop.xlane.xlu1 %805  ;;  %v803_v0 = vpop.xlane.xlu0 %802  ;;  %v618_v53 = vsel %vm272_vm0, %v131_v43, 0.0  ;;  %v615_v54 = vsel %vm272_vm0, %v130_v44, 0.0  ;;  %v258_v43 = vld [vmem:[%s5899_s0 + $0x790] sm:$0xff] }
 0x135   :  { %v2364_v4 = vrot.slane %v1562_v57, %v4151_v32  ;;  %v2369_v5 = vrot.slane %v1563_v58, %v4163_v38  ;;  %v1129_v7 = vpack.c.bf16 %v806_v61, %v803_v0  ;;  %v229_v57 = vld [vmem:[%s5899_s0 + $0x6a8] sm:$0xff]  ;;  %v228_v58 = vld [vmem:[%s5899_s0 + $0x6a0] sm:$0xff] }
 0x137   :  { %v2365_v16 = vsel %vm1706_vm2, %v2364_v4, %v2360_v14  ;;  %997 = vadd.xlane.f32.xlu1 %v996_v1  ;;  %994 = vadd.xlane.f32.xlu0 %v993_v3  ;;  %v1608_v46 = vunpack.c.l.b16 %v1129_v7  ;;  %v1609_v47 = vunpack.c.h.b16 %v1129_v7  ;;  %v909_v7 = vsel %vm272_vm0, %v228_v58, 0.0 }
 0x138   :  { %v4807_v18 = vsel %vm1713_vm3, %v2369_v5, %v2365_v16  ;;  %v722_v19 = vpop.xlane.xlu1 %721  ;;  %v719_v21 = vpop.xlane.xlu0 %718  ;;  %v912_v5 = vsel %vm272_vm0, %v229_v57, 0.0  ;;  %v241_v16 = vld [vmem:[%s5899_s0 + $0x708] sm:$0xff]  ;;  %v999_v57 = vsel %vm272_vm0, %v258_v43, 0.0 }
 0x139   :  { %v1115_v26 = vpack.c.bf16 %v722_v19, %v719_v21  ;;  %v2596_v61 = vrot.slane %v1609_v47, %v4154_v34  ;;  %v240_v19 = vld [vmem:[%s5899_s0 + $0x700] sm:$0xff] }
 0x13b   :  { %v1580_v31 = vunpack.c.l.b16 %v1115_v26  ;;  %v1581_v33 = vunpack.c.h.b16 %v1115_v26  ;;  %529 = vadd.xlane.f32.xlu1 %v528_v22  ;;  %526 = vadd.xlane.f32.xlu0 %v525_v24 }
 0x13c   :  { %v758_v35 = vpop.xlane.xlu1 %757  ;;  %v755_v36 = vpop.xlane.xlu0 %754 }
 0x13d   :  { %v2453_v40 = vrot.slane %v1580_v31, %v4166_v39  ;;  %v2458_v41 = vrot.slane %v1581_v33, %v4183_v56  ;;  %v1121_v42 = vpack.c.bf16 %v758_v35, %v755_v36  ;;  %v948_v36 = vsel %vm272_vm0, %v241_v16, 0.0  ;;  %v212_v16 = vld [vmem:[%s5899_s0 + $0x620] sm:$0xff] }
 0x13f   :  { %v2454_v48 = vsel %vm1720_vm4, %v2453_v40, %v2449_v60  ;;  %565 = vadd.xlane.f32.xlu1 %v564_v20  ;;  %562 = vadd.xlane.f32.xlu0 %v561_v37  ;;  %v2592_v60 = vrot.slane %v1608_v46, %v4146_v28  ;;  %v1592_v22 = vunpack.c.l.b16 %v1121_v42  ;;  %v1593_v24 = vunpack.c.h.b16 %v1121_v42  ;;  %v259_v42 = vld [vmem:[%s5899_s0 + $0x798] sm:$0xff] }
 0x140   :  { %v4829_v49 = vsel %vm5910_vm5, %v2458_v41, %v2454_v48  ;;  %v812_v50 = vpop.xlane.xlu1 %811  ;;  %v809_v51 = vpop.xlane.xlu0 %808  ;;  %v945_v20 = vsel %vm272_vm0, %v240_v19, 0.0 }
 0x141   :  { %v1130_v55 = vpack.c.bf16 %v812_v50, %v809_v51  ;;  %v2597_v21 = vsel %vm1699_vm1, %v2596_v61, %v2592_v60  ;;  %v2513_v44 = vrot.slane %v1592_v22, %v4146_v28  ;;  %v2517_v46 = vrot.slane %v1593_v24, %v4154_v34  ;;  %v114_v61 = vld [vmem:[%s5899_s0 + $0x310] sm:$0xff] }
 0x143   :  { %v1610_v0 = vunpack.c.l.b16 %v1130_v55  ;;  %v1611_v1 = vunpack.c.h.b16 %v1130_v55  ;;  %619 = vadd.xlane.f32.xlu1 %v618_v53  ;;  %616 = vadd.xlane.f32.xlu0 %v615_v54  ;;  %v1002_v55 = vsel %vm272_vm0, %v259_v42, 0.0 }
 0x144   :  { %v674_v3 = vpop.xlane.xlu1 %673  ;;  %v671_v4 = vpop.xlane.xlu0 %670 }
 0x145   :  { %v2601_v11 = vrot.slane %v1610_v0, %v4151_v32  ;;  %v2606_v12 = vrot.slane %v1611_v1, %v4163_v38  ;;  %v1107_v14 = vpack.c.bf16 %v674_v3, %v671_v4  ;;  %v2518_v0 = vsel %vm1699_vm1, %v2517_v46, %v2513_v44  ;;  %v103_v44 = vld [vmem:[%s5899_s0 + $0x2b8] sm:$0xff] }
 0x147   :  { %v2602_v26 = vsel %vm1706_vm2, %v2601_v11, %v2597_v21  ;;  %v1564_v27 = vunpack.c.l.b16 %v1107_v14  ;;  %v1565_v29 = vunpack.c.h.b16 %v1107_v14  ;;  %913 = vadd.xlane.f32.xlu1 %v912_v5  ;;  %910 = vadd.xlane.f32.xlu0 %v909_v7  ;;  %v567_v11 = vsel %vm272_vm0, %v114_v61, 0.0  ;;  %v213_v14 = vld [vmem:[%s5899_s0 + $0x628] sm:$0xff] }
 0x148   :  { %v2607_v31 = vsel %vm1713_vm3, %v2606_v12, %v2602_v26  ;;  %v764_v33 = vpop.xlane.xlu1 %763  ;;  %v761_v35 = vpop.xlane.xlu0 %760  ;;  %v864_v26 = vsel %vm272_vm0, %v213_v14, 0.0  ;;  %v260_v14 = vld [vmem:[%s5899_s0 + $0x7a0] sm:$0xff] }
 0x149   :  { %v2374_v37 = vrot.slane %v1564_v27, %v4166_v39  ;;  %v2379_v40 = vrot.slane %v1565_v29, %v4183_v56  ;;  %v1122_v41 = vpack.c.bf16 %v764_v33, %v761_v35  ;;  %v861_v27 = vsel %vm272_vm0, %v212_v16, 0.0  ;;  %v243_v35 = vld [vmem:[%s5899_s0 + $0x718] sm:$0xff] }
 0x14a   :  { %v954_v42 = vsel %vm272_vm0, %v243_v35, 0.0 }
 0x14b   :  { %v2375_v47 = vsel %vm1720_vm4, %v2374_v37, %v4807_v18  ;;  %v1594_v48 = vunpack.c.l.b16 %v1122_v41  ;;  %v1595_v50 = vunpack.c.h.b16 %v1122_v41  ;;  %949 = vadd.xlane.f32.xlu1 %v948_v36  ;;  %946 = vadd.xlane.f32.xlu0 %v945_v20  ;;  %v115_v18 = vld [vmem:[%s5899_s0 + $0x318] sm:$0xff]  ;;  %v242_v36 = vld [vmem:[%s5899_s0 + $0x710] sm:$0xff] }
 0x14c   :  { %v4869_v51 = vsel %vm5910_vm5, %v2379_v40, %v2375_v47  ;;  %v4871_v53 = vpop.xlane.xlu1 %727  ;;  %v4873_v54 = vpop.xlane.xlu0 %724  ;;  %v570_v7 = vsel %vm272_vm0, %v115_v18, 0.0  ;;  %v951_v43 = vsel %vm272_vm0, %v242_v36, 0.0 }
 0x14d   :  { %v2522_v58 = vrot.slane %v1594_v48, %v4151_v32  ;;  %v2527_v60 = vrot.slane %v1595_v50, %v4163_v38  ;;  %v534_v48 = vsel %vm272_vm0, %v103_v44, 0.0 }
 0x14f   :  { %v2523_v1 = vsel %vm1706_vm2, %v2522_v58, %v2518_v0  ;;  %1003 = vadd.xlane.f32.xlu1 %v1002_v55  ;;  %1000 = vadd.xlane.f32.xlu0 %v999_v57  ;;  %v133_v55 = vld [vmem:[%s5899_s0 + $0x3a8] sm:$0xff]  ;;  %v132_v57 = vld [vmem:[%s5899_s0 + $0x3a0] sm:$0xff]  ;;  %v231_v0 = vld [vmem:[%s5899_s0 + $0x6b8] sm:$0xff] }
 0x150   :  { %v4888_v3 = vsel %vm1713_vm3, %v2527_v60, %v2523_v1  ;;  %v818_v4 = vpop.xlane.xlu1 %817  ;;  %v815_v5 = vpop.xlane.xlu0 %814  ;;  %v624_v18 = vsel %vm272_vm0, %v133_v55, 0.0  ;;  %v621_v61 = vsel %vm272_vm0, %v132_v57, 0.0  ;;  %v230_v1 = vld [vmem:[%s5899_s0 + $0x6b0] sm:$0xff]  ;;  %v245_v55 = vld [vmem:[%s5899_s0 + $0x728] sm:$0xff]  ;;  %v244_v57 = vld [vmem:[%s5899_s0 + $0x720] sm:$0xff] }
 0x151   :  { %v1131_v12 = vpack.c.bf16 %v818_v4, %v815_v5 }
 0x153   :  { %v1612_v19 = vunpack.c.l.b16 %v1131_v12  ;;  %v1613_v21 = vunpack.c.h.b16 %v1131_v12  ;;  %571 = vadd.xlane.f32.xlu1 %v570_v7  ;;  %568 = vadd.xlane.f32.xlu0 %v567_v11  ;;  %v918_v7 = vsel %vm272_vm0, %v231_v0, 0.0  ;;  %v915_v11 = vsel %vm272_vm0, %v230_v1, 0.0  ;;  %v261_v12 = vld [vmem:[%s5899_s0 + $0x7a8] sm:$0xff] }
 0x154   :  { %v4898_v22 = vpop.xlane.xlu1 %679  ;;  %v4900_v24 = vpop.xlane.xlu0 %676  ;;  %v960_v1 = vsel %vm272_vm0, %v245_v55, 0.0  ;;  %v217_v55 = vld [vmem:[%s5899_s0 + $0x648] sm:$0xff] }
 0x155   :  { %v2611_v29 = vrot.slane %v1612_v19, %v4166_v39  ;;  %v2616_v33 = vrot.slane %v1613_v21, %v4183_v56  ;;  %v1008_v21 = vsel %vm272_vm0, %v261_v12, 0.0  ;;  %v104_v12 = vld [vmem:[%s5899_s0 + $0x2c0] sm:$0xff] }
 0x157   :  { %v2612_v20 = vsel %vm1720_vm4, %v2611_v29, %v2607_v31  ;;  %865 = vadd.xlane.f32.xlu1 %v864_v26  ;;  %862 = vadd.xlane.f32.xlu0 %v861_v27  ;;  %v102_v31 = vld [vmem:[%s5899_s0 + $0x2b0] sm:$0xff]  ;;  %v1005_v26 = vsel %vm272_vm0, %v260_v14, 0.0  ;;  %v117_v27 = vld [vmem:[%s5899_s0 + $0x328] sm:$0xff]  ;;  %v116_v29 = vld [vmem:[%s5899_s0 + $0x320] sm:$0xff] }
 0x158   :  { %v4914_v37 = vsel %vm5910_vm5, %v2616_v33, %v2612_v20  ;;  %v4916_v40 = vpop.xlane.xlu1 %769  ;;  %v4918_v41 = vpop.xlane.xlu0 %766  ;;  %v531_v50 = vsel %vm272_vm0, %v102_v31, 0.0  ;;  %v576_v36 = vsel %vm272_vm0, %v117_v27, 0.0  ;;  %v573_v20 = vsel %vm272_vm0, %v116_v29, 0.0 }
 0x159   :  { %v537_v29 = vsel %vm272_vm0, %v104_v12, 0.0 }
 0x15b   :  { %955 = vadd.xlane.f32.xlu1 %v954_v42  ;;  %952 = vadd.xlane.f32.xlu0 %v951_v43  ;;  %v215_v42 = vld [vmem:[%s5899_s0 + $0x638] sm:$0xff]  ;;  %v214_v43 = vld [vmem:[%s5899_s0 + $0x630] sm:$0xff] }
 0x15c   :  { %v4928_v46 = vpop.xlane.xlu1 %733  ;;  %v4930_v47 = vpop.xlane.xlu0 %730 }
 0x15f   :  { %535 = vadd.xlane.f32.xlu1 %v534_v48  ;;  %532 = vadd.xlane.f32.xlu0 %v531_v50  ;;  %v870_v48 = vsel %vm272_vm0, %v215_v42, 0.0  ;;  %v867_v50 = vsel %vm272_vm0, %v214_v43, 0.0  ;;  %v263_v42 = vld [vmem:[%s5899_s0 + $0x7b8] sm:$0xff]  ;;  %v262_v43 = vld [vmem:[%s5899_s0 + $0x7b0] sm:$0xff] }
 0x160   :  { %v824_v58 = vpop.xlane.xlu1 %823  ;;  %v821_v60 = vpop.xlane.xlu0 %820 }
 0x163   :  { %625 = vadd.xlane.f32.xlu1 %v624_v18  ;;  %622 = vadd.xlane.f32.xlu0 %v621_v61  ;;  %v1116_v18 = vpack.c.bf16 %v4871_v53, %v4873_v54  ;;  %v1108_v53 = vpack.c.bf16 %v4898_v22, %v4900_v24  ;;  %v5014_v54 = vpack.c.bf16 %v4916_v40, %v4918_v41  ;;  %v134_v22 = vld [vmem:[%s5899_s0 + $0x3b0] sm:$0xff]  ;;  %v233_v40 = vld [vmem:[%s5899_s0 + $0x6c8] sm:$0xff]  ;;  %v232_v41 = vld [vmem:[%s5899_s0 + $0x6c0] sm:$0xff] }
 0x164   :  { %v4948_v4 = vpop.xlane.xlu1 %685  ;;  %v4950_v5 = vpop.xlane.xlu0 %682  ;;  %v1117_v24 = vpack.c.bf16 %v4928_v46, %v4930_v47  ;;  %v119_v46 = vld [vmem:[%s5899_s0 + $0x338] sm:$0xff]  ;;  %v921_v12 = vsel %vm272_vm0, %v232_v41, 0.0  ;;  %v216_v41 = vld [vmem:[%s5899_s0 + $0x640] sm:$0xff] }
 0x165   :  { %v1582_v14 = vunpack.c.l.b16 %v1116_v18  ;;  %v1583_v47 = vunpack.c.h.b16 %v1116_v18  ;;  %v5067_v15 = vpack.c.bf16 %v4948_v4, %v4950_v5  ;;  %v247_v5 = vld [vmem:[%s5899_s0 + $0x738] sm:$0xff]  ;;  %v5101_v38 = vsel %vm272_vm0, %v216_v41, 0.0 }
 0x167   :  { %919 = vadd.xlane.f32.xlu1 %v918_v7  ;;  %916 = vadd.xlane.f32.xlu0 %v915_v11  ;;  %v957_v7 = vsel %vm272_vm0, %v244_v57, 0.0  ;;  %v105_v11 = vld [vmem:[%s5899_s0 + $0x2c8] sm:$0xff]  ;;  %v1566_v57 = vunpack.c.l.b16 %v1108_v53 }
 0x168   :  { %v4960_v16 = vpop.xlane.xlu1 %775  ;;  %v4962_v19 = vpop.xlane.xlu0 %772  ;;  %v540_v27 = vsel %vm272_vm0, %v105_v11, 0.0  ;;  %v924_v11 = vsel %vm272_vm0, %v233_v40, 0.0  ;;  %v5073_v40 = vsel %vm272_vm0, %v217_v55, 0.0 }
 0x169   :  { %v2384_v55 = vrot.slane %v1566_v57, %v4200_v8 }
 0x16b   :  { %1009 = vadd.xlane.f32.xlu1 %v1008_v21  ;;  %1006 = vadd.xlane.f32.xlu0 %v1005_v26 }
 0x16c   :  { %v4972_v33 = vpop.xlane.xlu1 %739  ;;  %v4974_v35 = vpop.xlane.xlu0 %736 }
 0x16d   :  { %v1118_v4 = vpack.c.bf16 %v4972_v33, %v4974_v35 }
 0x16f   :  { %577 = vadd.xlane.f32.xlu1 %v576_v36  ;;  %574 = vadd.xlane.f32.xlu0 %v573_v20  ;;  %v135_v36 = vld [vmem:[%s5899_s0 + $0x3b8] sm:$0xff]  ;;  %v5036_v20 = vpack.c.bf16 %v824_v58, %v821_v60  ;;  %v627_v60 = vsel %vm272_vm0, %v134_v22, 0.0 }
 0x170   :  { %v4984_v44 = vpop.xlane.xlu1 %829  ;;  %v4986_v31 = vpop.xlane.xlu0 %826  ;;  %v630_v58 = vsel %vm272_vm0, %v135_v36, 0.0  ;;  %v5062_v36 = vsel %vm272_vm0, %v119_v46, 0.0  ;;  %v1567_v46 = vunpack.c.h.b16 %v1108_v53  ;;  %v1585_v53 = vunpack.c.h.b16 %v1117_v24 }
 0x171   :  { %v1614_v22 = vunpack.c.l.b16 %v5036_v20 }
 0x172   :  { %v2478_v41 = vrot.slane %v1585_v53, %v4217_v23 }
 0x173   :  { %871 = vadd.xlane.f32.xlu1 %v870_v48  ;;  %868 = vadd.xlane.f32.xlu0 %v867_v50  ;;  %v2463_v48 = vrot.slane %v1582_v14, %v4200_v8  ;;  %v118_v50 = vld [vmem:[%s5899_s0 + $0x330] sm:$0xff]  ;;  %v1584_v14 = vunpack.c.l.b16 %v1117_v24  ;;  %v2621_v57 = vrot.slane %v1614_v22, %v4200_v8  ;;  %v5106_v24 = vsel %vm272_vm0, %v247_v5, 0.0 }
 0x174   :  { %v4998_v61 = vpop.xlane.xlu1 %691  ;;  %v5000_v0 = vpop.xlane.xlu0 %688  ;;  %v5070_v2 = vsel %vm272_vm0, %v118_v50, 0.0  ;;  %v246_v50 = vld [vmem:[%s5899_s0 + $0x730] sm:$0xff] }
 0x175   :  { %v2473_v35 = vrot.slane %v1584_v14, %v4208_v13 }
 0x177   :  { %961 = vadd.xlane.f32.xlu1 %v960_v1  ;;  %958 = vadd.xlane.f32.xlu0 %v957_v7  ;;  %v1596_v1 = vunpack.c.l.b16 %v5014_v54 }
 0x178   :  { %v5016_v21 = vpop.xlane.xlu1 %781  ;;  %v5018_v26 = vpop.xlane.xlu0 %778 }
 0x17b   :  { %541 = vadd.xlane.f32.xlu1 %v540_v27  ;;  %538 = vadd.xlane.f32.xlu0 %v537_v29  ;;  %v1014_v27 = vsel %vm272_vm0, %v263_v42, 0.0  ;;  %v1011_v29 = vsel %vm272_vm0, %v262_v43, 0.0  ;;  %v2464_v42 = vsel %vm1734_vm6, %v2463_v48, %v4829_v49  ;;  %v2468_v43 = vrot.slane %v1583_v47, %v4203_v9 }
 0x17c   :  { %v746_v18 = vpop.xlane.xlu1 %745  ;;  %v743_v7 = vpop.xlane.xlu0 %742  ;;  %v1597_v49 = vunpack.c.h.b16 %v5014_v54  ;;  %v2532_v47 = vrot.slane %v1596_v1, %v4166_v39  ;;  %v1568_v54 = vunpack.c.l.b16 %v5067_v15  ;;  %v5109_v1 = vsel %vm272_vm0, %v246_v50, 0.0 }
 0x17d   :  { %v2469_v14 = vsel %vm1741_vm7, %v2468_v43, %v2464_v42  ;;  %v1586_v39 = vunpack.c.l.b16 %v1118_v4  ;;  %v1119_v32 = vpack.c.bf16 %v746_v18, %v743_v7  ;;  %v107_v42 = vld [vmem:[%s5899_s0 + $0x2d8] sm:$0xff]  ;;  %v106_v18 = vld [vmem:[%s5899_s0 + $0x2d0] sm:$0xff]  ;;  %v1569_v43 = vunpack.c.h.b16 %v5067_v15 }
 0x17e   :  { %v2537_v22 = vrot.slane %v1597_v49, %v4183_v56  ;;  %v2474_v7 = vsel %vm1748_vm8, %v2473_v35, %v2469_v14  ;;  %v5135_v53 = vsel %vm272_vm0, %v107_v42, 0.0  ;;  %v5138_v35 = vsel %vm272_vm0, %v106_v18, 0.0 }
 0x17f   :  { %631 = vadd.xlane.f32.xlu1 %v630_v58  ;;  %628 = vadd.xlane.f32.xlu0 %v627_v60  ;;  %v1615_v58 = vunpack.c.h.b16 %v5036_v20  ;;  %v1124_v60 = vpack.c.bf16 %v4960_v16, %v4962_v19  ;;  %v2389_v20 = vrot.slane %v1567_v46, %v4203_v9  ;;  %v2385_v16 = vsel %vm1734_vm6, %v2384_v55, %v4869_v51 }
 0x180   :  { %v5092_v48 = vpop.xlane.xlu1 %835  ;;  %v5094_v33 = vpop.xlane.xlu0 %832  ;;  %v2533_v19 = vsel %vm1720_vm4, %v2532_v47, %v4888_v3  ;;  %v1110_v3 = vpack.c.bf16 %v4998_v61, %v5000_v0  ;;  %v2394_v46 = vrot.slane %v1568_v54, %v4208_v13  ;;  %v1587_v55 = vunpack.c.h.b16 %v1118_v4 }
 0x181   :  { %v2626_v51 = vrot.slane %v1615_v58, %v4203_v9  ;;  %v2483_v49 = vrot.slane %v1586_v39, %v4235_v45  ;;  %v1588_v47 = vunpack.c.l.b16 %v1119_v32  ;;  %v2390_v61 = vsel %vm1741_vm7, %v2389_v20, %v2385_v16  ;;  %v137_v39 = vld [vmem:[%s5899_s0 + $0x3c8] sm:$0xff] }
 0x182   :  { %v1599_v0 = vunpack.c.h.b16 %v1124_v60  ;;  %v1133_v15 = vpack.c.bf16 %v4984_v44, %v4986_v31  ;;  %v1570_v54 = vunpack.c.l.b16 %v1110_v3  ;;  %v2395_v14 = vsel %vm1748_vm8, %v2394_v46, %v2390_v61 }
 0x183   :  { %925 = vadd.xlane.f32.xlu1 %v924_v11  ;;  %922 = vadd.xlane.f32.xlu0 %v921_v12  ;;  %v1598_v11 = vunpack.c.l.b16 %v1124_v60  ;;  %v2622_v12 = vsel %vm1734_vm6, %v2621_v57, %v4914_v37  ;;  %v2538_v37 = vsel %vm5910_vm5, %v2537_v22, %v2533_v19  ;;  %v2399_v60 = vrot.slane %v1569_v43, %v4217_v23 }
 0x184   :  { %v698_v5 = vpop.xlane.xlu1 %697  ;;  %v695_v50 = vpop.xlane.xlu0 %694  ;;  %v2488_v20 = vrot.slane %v1587_v55, %v4245_v52  ;;  %v1589_v44 = vunpack.c.h.b16 %v1119_v32  ;;  %vm5911_vm5 = vcmask 1041409   ;;  %v2493_v16 = vrot.slane %v1588_v47, %v4252_v62 }
 0x185   :  { %v2542_v57 = vrot.slane %v1598_v11, %v4200_v8  ;;  %v1111_v19 = vpack.c.bf16 %v698_v5, %v695_v50  ;;  %v5158_v22 = vsel %vm272_vm0, %v137_v39, 0.0  ;;  %v1616_v42 = vunpack.c.l.b16 %v1133_v15 }
 0x186   :  { %v1617_v18 = vunpack.c.h.b16 %v1133_v15  ;;  %v1125_v32 = vpack.c.bf16 %v5016_v21, %v5018_v26  ;;  %v2404_v5 = vrot.slane %v1570_v54, %v4235_v45  ;;  %v2498_v43 = vrot.slane %v1589_v44, %v4255_v63 }
 0x187   :  { %1015 = vadd.xlane.f32.xlu1 %v1014_v27  ;;  %1012 = vadd.xlane.f32.xlu0 %v1011_v29  ;;  %v2479_v27 = vsel %vm1755_vm9, %v2478_v41, %v2474_v7  ;;  %v2627_v29 = vsel %vm1741_vm7, %v2626_v51, %v2622_v12  ;;  %v2547_v41 = vrot.slane %v1599_v0, %v4203_v9  ;;  %v1571_v12 = vunpack.c.h.b16 %v1110_v3 }
 0x188   :  { %v788_v4 = vpop.xlane.xlu1 %787  ;;  %v785_v58 = vpop.xlane.xlu0 %784  ;;  %v2484_v31 = vsel %vm1762_vm10, %v2483_v49, %v2479_v27  ;;  %v2543_v11 = vsel %vm1734_vm6, %v2542_v57, %v2538_v37  ;;  %v1134_v46 = vpack.c.bf16 %v5092_v48, %v5094_v33  ;;  %v1572_v55 = vunpack.c.l.b16 %v1111_v19  ;;  %v136_v48 = vld [vmem:[%s5899_s0 + $0x3c0] sm:$0xff] }
 0x189   :  { %v2489_v50 = vsel %vm1769_vm11, %v2488_v20, %v2484_v31  ;;  %v2548_v3 = vsel %vm1741_vm7, %v2547_v41, %v2543_v11  ;;  %v2631_v47 = vrot.slane %v1616_v42, %v4208_v13  ;;  %v2636_v61 = vrot.slane %v1617_v18, %v4217_v23 }
 0x18a   :  { %v2494_v26 = vsel %vm1776_vm12, %v2493_v16, %v2489_v50  ;;  %v1600_v37 = vunpack.c.l.b16 %v1125_v32  ;;  %v1618_v27 = vunpack.c.l.b16 %v1134_v46  ;;  %v1573_v57 = vunpack.c.h.b16 %v1111_v19 }
 0x18b   :  { %583 = vadd.xlane.f32.xlu1 %v5062_v36  ;;  %580 = vadd.xlane.f32.xlu0 %v5070_v2  ;;  %v2400_v2 = vsel %vm1755_vm9, %v2399_v60, %v2395_v14  ;;  %v1126_v54 = vpack.c.bf16 %v788_v4, %v785_v58  ;;  %v2499_v14 = vsel %vm1783_vm13, %v2498_v43, %v2494_v26  ;;  %v633_v31 = vsel %vm272_vm0, %v136_v48, 0.0 }
 0x18c   :  { %v752_v7 = vpop.xlane.xlu1 %751  ;;  %v749_v51 = vpop.xlane.xlu0 %748  ;;  %v2405_v33 = vsel %vm1762_vm10, %v2404_v5, %v2400_v2  ;;  %v2414_v60 = vrot.slane %v1572_v55, %v4252_v62  ;;  %v1601_v16 = vunpack.c.h.b16 %v1125_v32  ;;  %v2552_v41 = vrot.slane %v1600_v37, %v4208_v13 }
 0x18d   :  { %v1120_v36 = vpack.c.bf16 %v752_v7, %v749_v51  ;;  %v1619_v42 = vunpack.c.h.b16 %v1134_v46  ;;  %v2632_v58 = vsel %vm1748_vm8, %v2631_v47, %v2627_v29  ;;  %v2419_v11 = vrot.slane %v1573_v57, %v4255_v63 }
 0x18e   :  { %v1602_v32 = vunpack.c.l.b16 %v1126_v54  ;;  %v2637_v29 = vsel %vm1755_vm9, %v2636_v61, %v2632_v58  ;;  %v2553_v43 = vsel %vm1748_vm8, %v2552_v41, %v2548_v3 }
 0x18f   :  { %v1590_v49 = vunpack.c.l.b16 %v1120_v36  ;;  %v1591_v21 = vunpack.c.h.b16 %v1120_v36  ;;  %877 = vadd.xlane.f32.xlu1 %v5073_v40  ;;  %874 = vadd.xlane.f32.xlu0 %v5101_v38  ;;  %v2409_v40 = vrot.slane %v1571_v12, %v4245_v52  ;;  %v2646_v46 = vrot.slane %v1619_v42, %v4245_v52 }
 0x190   :  { %v842_v0 = vpop.xlane.xlu1 %841  ;;  %v839_v15 = vpop.xlane.xlu0 %838 }
 0x191   :  { %v2503_v38 = vrot.slane %v1590_v49, %v4270_v17  ;;  %v2508_v39 = vrot.slane %v1591_v21, %v4277_v25  ;;  %v1135_v20 = vpack.c.bf16 %v842_v0, %v839_v15  ;;  %v2410_v7 = vsel %vm1769_vm11, %v2409_v40, %v2405_v33 }
 0x192   :  { %v2415_v5 = vsel %vm1776_vm12, %v2414_v60, %v2410_v7  ;;  %v1603_v21 = vunpack.c.h.b16 %v1126_v54  ;;  %v2562_v0 = vrot.slane %v1602_v32, %v4235_v45 }
 0x193   :  { %967 = vadd.xlane.f32.xlu1 %v5106_v24  ;;  %964 = vadd.xlane.f32.xlu0 %v5109_v1  ;;  %v2504_v44 = vsel %vm1790_vm14, %v2503_v38, %v2499_v14  ;;  %v2641_v1 = vrot.slane %v1618_v27, %v4235_v45  ;;  %v1620_v36 = vunpack.c.l.b16 %v1135_v20  ;;  %v2420_v61 = vsel %vm1783_vm13, %v2419_v11, %v2415_v5 }
 0x194   :  { %v704_v18 = vpop.xlane.xlu1 %703  ;;  %v701_v19 = vpop.xlane.xlu0 %700  ;;  %v2509_v4 = vsel %vm1797_vm15, %v2508_v39, %v2504_v44  ;;  %v1621_v15 = vunpack.c.h.b16 %v1135_v20  ;;  %v2567_v20 = vrot.slane %v1603_v21, %v4245_v52 }
 0x195   :  { %v1112_v51 = vpack.c.bf16 %v704_v18, %v701_v19  ;;  %v2986_v24 = vsel %vm5911_vm5, %v2509_v4, %v4404_v10  ;;  %v2557_v10 = vrot.slane %v1601_v16, %v4217_v23  ;;  %v2642_v3 = vsel %vm1762_vm10, %v2641_v1, %v2637_v29  ;;  %v264_v16 = vld [vmem:[%s5899_s0 + $0x7c0] sm:$0xff] }
 0x196   :  { %v2994_v12 = vpack.c.b16 %v2986_v24, %v2986_v24  ;;  %v2651_v48 = vrot.slane %v1620_v36, %v4252_v62  ;;  %v2647_v60 = vsel %vm1769_vm11, %v2646_v46, %v2642_v3  ;;  %v2656_v42 = vrot.slane %v1621_v15, %v4255_v63  ;;  %v121_v36 = vld [vmem:[%s5899_s0 + $0x348] sm:$0xff]  ;;  %v219_v15 = vld [vmem:[%s5899_s0 + $0x658] sm:$0xff] }
 0x197   :  { %v1574_v2 = vunpack.c.l.b16 %v1112_v51  ;;  %v1575_v50 = vunpack.c.h.b16 %v1112_v51  ;;  %547 = vadd.xlane.f32.xlu1 %v5135_v53  ;;  %544 = vadd.xlane.f32.xlu0 %v5138_v35  ;;  %v235_v53 = vld [vmem:[%s5899_s0 + $0x6d8] sm:$0xff]  ;;  %v234_v35 = vld [vmem:[%s5899_s0 + $0x6d0] sm:$0xff]  ;;  %v2558_v38 = vsel %vm1755_vm9, %v2557_v10, %v2553_v43  ;;  %v1017_v11 = vsel %vm272_vm0, %v264_v16, 0.0 }
 0x198   :  { %v794_v55 = vpop.xlane.xlu1 %793  ;;  %3425 = vmatprep.mubr.bf16.mxu0 %v2994_v12  ;;  %v791_v49 = vpop.xlane.xlu0 %790  ;;  %v930_v57 = vsel %vm272_vm0, %v235_v53, 0.0  ;;  %v927_v54 = vsel %vm272_vm0, %v234_v35, 0.0  ;;  %v2563_v41 = vsel %vm1762_vm10, %v2562_v0, %v2558_v38 }
 0x199   :  { %v2424_v26 = vrot.slane %v1574_v2, %v4270_v17  ;;  %v2429_v47 = vrot.slane %v1575_v50, %v4277_v25  ;;  %v1127_v37 = vpack.c.bf16 %v794_v55, %v791_v49  ;;  %v120_v2 = vld [vmem:[%s5899_s0 + $0x340] sm:$0xff]  ;;  %v2568_v50 = vsel %vm1769_vm11, %v2567_v20, %v2563_v41  ;;  %v249_v20 = vld [vmem:[%s5899_s0 + $0x748] sm:$0xff] }
 0x19b   :  { %v1604_v33 = vunpack.c.l.b16 %v1127_v37  ;;  %637 = vadd.xlane.f32.xlu1 %v5158_v22  ;;  %634 = vadd.xlane.f32.xlu0 %v633_v31  ;;  %v2425_v40 = vsel %vm1790_vm14, %v2424_v26, %v2420_v61  ;;  %v265_v31 = vld [vmem:[%s5899_s0 + $0x7c8] sm:$0xff]  ;;  %v1605_v18 = vunpack.c.h.b16 %v1127_v37  ;;  %v585_v37 = vsel %vm272_vm0, %v120_v2, 0.0  ;;  %v5918_v2 = vld [vmem:[#allocation7_spill] sm:$0xff] }
 0x19c   :  { %v848_v39 = vpop.xlane.xlu1 %847  ;;  %v845_v27 = vpop.xlane.xlu0 %844  ;;  %v2430_v14 = vsel %vm1797_vm15, %v2429_v47, %v2425_v40  ;;  %v1020_v1 = vsel %vm272_vm0, %v265_v31, 0.0  ;;  %v588_v47 = vsel %vm272_vm0, %v121_v36, 0.0 }
 0x19d   :  { %v1136_v44 = vpack.c.bf16 %v848_v39, %v845_v27  ;;  %v2985_v22 = vsel %vm5911_vm5, %v2430_v14, %v4307_v59  ;;  %v2572_v4 = vrot.slane %v1604_v33, %v4252_v62  ;;  %v2652_v59 = vsel %vm1776_vm12, %v2651_v48, %v2647_v60  ;;  %v218_v48 = vld [vmem:[%s5899_s0 + $0x650] sm:$0xff] }
 0x19e   :  { %v2993_v19 = vpack.c.b16 %v2985_v22, %v2985_v22  ;;  %v2577_v29 = vrot.slane %v1605_v18, %v4255_v63  ;;  %v2657_v43 = vsel %vm1783_vm13, %v2656_v42, %v2652_v59  ;;  %v972_v18 = vsel %vm272_vm0, %v249_v20, 0.0  ;;  %v266_v20 = vld [vmem:[%s5899_s0 + $0x7d0] sm:$0xff] }
 0x19f   :  { %v1622_v58 = vunpack.c.l.b16 %v1136_v44  ;;  %v1623_v7 = vunpack.c.h.b16 %v1136_v44  ;;  %931 = vadd.xlane.f32.xlu1 %v930_v57  ;;  %928 = vadd.xlane.f32.xlu0 %v927_v54  ;;  %v2573_v10 = vsel %vm1776_vm12, %v2572_v4, %v2568_v50  ;;  %v879_v57 = vsel %vm272_vm0, %v218_v48, 0.0  ;;  %v248_v44 = vld [vmem:[%s5899_s0 + $0x740] sm:$0xff]  ;;  %v109_v4 = vld [vmem:[%s5899_s0 + $0x2e8] sm:$0xff] }
 0x1a0   :  { %v800_v51 = vpop.xlane.xlu1 %799  ;;  %3426 = vmatmul.mubr.bf16.vlgmr.msra.gmra.mxu0 %v2993_v19  ;;  %v797_v24 = vpop.xlane.xlu0 %796  ;;  %v2578_v33 = vsel %vm1783_vm13, %v2577_v29, %v2573_v10  ;;  %v138_v10 = vld [vmem:[%s5899_s0 + $0x3d0] sm:$0xff] }
 0x1a1   :  { %v2661_v32 = vrot.slane %v1622_v58, %v4270_v17  ;;  %v2666_v12 = vrot.slane %v1623_v7, %v4277_v25  ;;  %v1128_v5 = vpack.c.bf16 %v800_v51, %v797_v24  ;;  %v108_v58 = vld [vmem:[%s5899_s0 + $0x2e0] sm:$0xff] }
 0x1a3   :  { %v1606_v46 = vunpack.c.l.b16 %v1128_v5  ;;  %v1607_v55 = vunpack.c.h.b16 %v1128_v5  ;;  %1021 = vadd.xlane.f32.xlu1 %v1020_v1  ;;  %1018 = vadd.xlane.f32.xlu0 %v1017_v11  ;;  %v2662_v49 = vsel %vm1790_vm14, %v2661_v32, %v2657_v43  ;;  %v552_v32 = vsel %vm272_vm0, %v109_v4, 0.0  ;;  %v5917_v5 = vld [vmem:[#allocation6_spill] sm:$0xff]  ;;  %v139_v43 = vld [vmem:[%s5899_s0 + $0x3d8] sm:$0xff] }
 0x1a4   :  { %v518_v21 = vpop.xlane.xlu1 %517  ;;  %v515_v26 = vpop.xlane.xlu0 %514  ;;  %v2667_v53 = vsel %vm1797_vm15, %v2666_v12, %v2662_v49  ;;  %v549_v12 = vsel %vm272_vm0, %v108_v58, 0.0  ;;  %v93_v58 = vld [vmem:[%s5899_s0 + $0x268] sm:$0xff] }
 0x1a5   :  { %v2582_v35 = vrot.slane %v1606_v46, %v4270_v17  ;;  %v2587_v3 = vrot.slane %v1607_v55, %v4277_v25  ;;  %v1081_v61 = vpack.c.bf16 %v518_v21, %v515_v26  ;;  %v2988_v0 = vsel %vm5911_vm5, %v2667_v53, %v4642_v6 }
 0x1a6   :  { %v2996_v40 = vpack.c.b16 %v2988_v0, %v2988_v0  ;;  %v882_v6 = vsel %vm272_vm0, %v219_v15, 0.0  ;;  %v642_v53 = vsel %vm272_vm0, %v139_v43, 0.0  ;;  %v236_v0 = vld [vmem:[%s5899_s0 + $0x6e0] sm:$0xff] }
 0x1a7   :  { %589 = vadd.xlane.f32.xlu1 %v588_v47  ;;  %586 = vadd.xlane.f32.xlu0 %v585_v37  ;;  %v2583_v38 = vsel %vm1790_vm14, %v2582_v35, %v2578_v33  ;;  %v1512_v22 = vunpack.c.l.b16 %v1081_v61  ;;  %v1513_v31 = vunpack.c.h.b16 %v1081_v61  ;;  %v639_v35 = vsel %vm272_vm0, %v138_v10, 0.0  ;;  %v237_v61 = vld [vmem:[%s5899_s0 + $0x6e8] sm:$0xff]  ;;  %v123_v10 = vld [vmem:[%s5899_s0 + $0x358] sm:$0xff] }
 0x1a8   :  { %v902_v39 = vpop.xlane.xlu1 %901  ;;  %3465 = vmatprep.mubr.bf16.mxu1 %v2996_v40  ;;  %v899_v27 = vpop.xlane.xlu0 %898  ;;  %v2588_v54 = vsel %vm1797_vm15, %v2587_v3, %v2583_v38 }
 0x1a9   :  { %v1145_v14 = vpack.c.bf16 %v902_v39, %v899_v27  ;;  %v2987_v60 = vsel %vm5911_vm5, %v2588_v54, %v4501_v30  ;;  %v969_v30 = vsel %vm272_vm0, %v248_v44, 0.0  ;;  %v2118_v7 = vrot.slane %v1512_v22, %v4146_v28 }
 0x1aa   :  { %v2995_v16 = vpack.c.b16 %v2987_v60, %v2987_v60  ;;  %v2122_v59 = vrot.slane %v1513_v31, %v4154_v34  ;;  %v936_v27 = vsel %vm272_vm0, %v237_v61, 0.0  ;;  %v267_v60 = vld [vmem:[%s5899_s0 + $0x7d8] sm:$0xff]  ;;  %v221_v61 = vld [vmem:[%s5899_s0 + $0x668] sm:$0xff]  ;;  %vm5920_vm5 = vcmask 392512  }
 0x1ab   :  { %883 = vadd.xlane.f32.xlu1 %v882_v6  ;;  %880 = vadd.xlane.f32.xlu0 %v879_v57  ;;  %v1640_v55 = vunpack.c.l.b16 %v1145_v14  ;;  %v1641_v49 = vunpack.c.h.b16 %v1145_v14  ;;  %v933_v6 = vsel %vm272_vm0, %v236_v0, 0.0  ;;  %v220_v0 = vld [vmem:[%s5899_s0 + $0x660] sm:$0xff] }
 0x1ac   :  { %v524_v41 = vpop.xlane.xlu1 %523  ;;  %3466 = vmatmul.mubr.bf16.vlgmr.msra.gmra.mxu1 %v2995_v16  ;;  %v521_v42 = vpop.xlane.xlu0 %520  ;;  %v2123_v46 = vsel %vm1699_vm1, %v2122_v59, %v2118_v7  ;;  %v92_v7 = vld [vmem:[%s5899_s0 + $0x260] sm:$0xff] }
 0x1ad   :  { %v1082_v19 = vpack.c.bf16 %v524_v41, %v521_v42  ;;  %v2750_v15 = vrot.slane %v1640_v55, %v4146_v28  ;;  %v2754_v48 = vrot.slane %v1641_v49, %v4154_v34 }
 0x1af   :  { %v1514_v51 = vunpack.c.l.b16 %v1082_v19  ;;  %v1515_v24 = vunpack.c.h.b16 %v1082_v19  ;;  %973 = vadd.xlane.f32.xlu1 %v972_v18  ;;  %970 = vadd.xlane.f32.xlu0 %v969_v30  ;;  %v2755_v44 = vsel %vm1699_vm1, %v2754_v48, %v2750_v15  ;;  %v1026_v30 = vsel %vm272_vm0, %v267_v60, 0.0  ;;  %v251_v60 = vld [vmem:[%s5899_s0 + $0x758] sm:$0xff] }
 0x1b0   :  { %v854_v1 = vpop.xlane.xlu1 %853  ;;  %v851_v11 = vpop.xlane.xlu0 %850  ;;  %v1023_v19 = vsel %vm272_vm0, %v266_v20, 0.0  ;;  %v250_v20 = vld [vmem:[%s5899_s0 + $0x750] sm:$0xff] }
 0x1b1   :  { %v2127_v36 = vrot.slane %v1514_v51, %v5917_v5  ;;  %v2132_v50 = vrot.slane %v1515_v24, %v5918_v2  ;;  %v1137_v29 = vpack.c.bf16 %v854_v1, %v851_v11 }
 0x1b3   :  { %v2128_v21 = vsel %vm1706_vm2, %v2127_v36, %v2123_v46  ;;  %553 = vadd.xlane.f32.xlu1 %v552_v32  ;;  %550 = vadd.xlane.f32.xlu0 %v549_v12  ;;  %v1624_v22 = vunpack.c.l.b16 %v1137_v29  ;;  %v1625_v31 = vunpack.c.h.b16 %v1137_v29  ;;  %v504_v12 = vsel %vm272_vm0, %v93_v58, 0.0  ;;  %v122_v46 = vld [vmem:[%s5899_s0 + $0x350] sm:$0xff]  ;;  %v111_v58 = vld [vmem:[%s5899_s0 + $0x2f8] sm:$0xff] }
 0x1b4   :  { %v5300_v26 = vsel %vm1713_vm3, %v2132_v50, %v2128_v21  ;;  %v908_v47 = vpop.xlane.xlu1 %907  ;;  %v905_v37 = vpop.xlane.xlu0 %904  ;;  %v501_v36 = vsel %vm272_vm0, %v92_v7, 0.0 }
 0x1b5   :  { %v1146_v3 = vpack.c.bf16 %v908_v47, %v905_v37  ;;  %v2671_v59 = vrot.slane %v1624_v22, %v4146_v28  ;;  %v2675_v51 = vrot.slane %v1625_v31, %v4154_v34 }
 0x1b7   :  { %v1642_v33 = vunpack.c.l.b16 %v1146_v3  ;;  %v1643_v40 = vunpack.c.h.b16 %v1146_v3  ;;  %643 = vadd.xlane.f32.xlu1 %v642_v53  ;;  %640 = vadd.xlane.f32.xlu0 %v639_v35  ;;  %v2676_v55 = vsel %vm1699_vm1, %v2675_v51, %v2671_v59  ;;  %v594_v53 = vsel %vm272_vm0, %v123_v10, 0.0  ;;  %v140_v10 = vld [vmem:[%s5899_s0 + $0x3e0] sm:$0xff] }
 0x1b8   :  { %v614_v38 = vpop.xlane.xlu1 %613  ;;  %v611_v39 = vpop.xlane.xlu0 %610  ;;  %v591_v35 = vsel %vm272_vm0, %v122_v46, 0.0 }
 0x1b9   :  { %v2759_v57 = vrot.slane %v1642_v33, %v5917_v5  ;;  %v2764_v54 = vrot.slane %v1643_v40, %v5918_v2  ;;  %v5316_v14 = vpack.c.bf16 %v614_v38, %v611_v39  ;;  %v888_v38 = vsel %vm272_vm0, %v221_v61, 0.0 }
 0x1ba   :  { %v885_v39 = vsel %vm272_vm0, %v220_v0, 0.0  ;;  %v645_v61 = vsel %vm272_vm0, %v140_v10, 0.0 }
 0x1bb   :  { %v2760_v16 = vsel %vm1706_vm2, %v2759_v57, %v2755_v44  ;;  %937 = vadd.xlane.f32.xlu1 %v936_v27  ;;  %934 = vadd.xlane.f32.xlu0 %v933_v6  ;;  %v5919_v27 = vld [vmem:[#allocation8_spill] sm:$0xff]  ;;  %v1544_v44 = vunpack.c.l.b16 %v5316_v14  ;;  %v1545_v22 = vunpack.c.h.b16 %v5316_v14 }
 0x1bc   :  { %v5327_v41 = vsel %vm1713_vm3, %v2764_v54, %v2760_v16  ;;  %v860_v42 = vpop.xlane.xlu1 %859  ;;  %v857_v18 = vpop.xlane.xlu0 %856 }
 0x1bd   :  { %v1138_v4 = vpack.c.bf16 %v860_v42, %v857_v18  ;;  %v2276_v14 = vrot.slane %v1544_v44, %v4146_v28  ;;  %v2280_v7 = vrot.slane %v1545_v22, %v4154_v34 }
 0x1bf   :  { %v1626_v24 = vunpack.c.l.b16 %v1138_v4  ;;  %v1627_v1 = vunpack.c.h.b16 %v1138_v4  ;;  %1027 = vadd.xlane.f32.xlu1 %v1026_v30  ;;  %1024 = vadd.xlane.f32.xlu0 %v1023_v19  ;;  %v978_v30 = vsel %vm272_vm0, %v251_v60, 0.0  ;;  %v975_v19 = vsel %vm272_vm0, %v250_v20, 0.0 }
 0x1c0   :  { %v998_v11 = vpop.xlane.xlu1 %997  ;;  %v995_v32 = vpop.xlane.xlu0 %994  ;;  %v2281_v46 = vsel %vm1699_vm1, %v2280_v7, %v2276_v14 }
 0x1c1   :  { %v2680_v50 = vrot.slane %v1626_v24, %v5917_v5  ;;  %v2685_v29 = vrot.slane %v1627_v1, %v5918_v2  ;;  %v5343_v43 = vpack.c.bf16 %v998_v11, %v995_v32  ;;  %v558_v11 = vsel %vm272_vm0, %v111_v58, 0.0 }
 0x1c3   :  { %v2681_v49 = vsel %vm1706_vm2, %v2680_v50, %v2676_v55  ;;  %505 = vadd.xlane.f32.xlu1 %v504_v12  ;;  %502 = vadd.xlane.f32.xlu0 %v501_v36 }
 0x1c4   :  { %v5354_v21 = vsel %vm1713_vm3, %v2685_v29, %v2681_v49  ;;  %v530_v47 = vpop.xlane.xlu1 %529  ;;  %v527_v37 = vpop.xlane.xlu0 %526  ;;  %v141_v29 = vld [vmem:[%s5899_s0 + $0x3e8] sm:$0xff] }
 0x1c5   :  { %v1083_v3 = vpack.c.bf16 %v530_v47, %v527_v37 }
 0x1c7   :  { %v1516_v15 = vunpack.c.l.b16 %v1083_v3  ;;  %v1517_v48 = vunpack.c.h.b16 %v1083_v3  ;;  %595 = vadd.xlane.f32.xlu1 %v594_v53  ;;  %592 = vadd.xlane.f32.xlu0 %v591_v35  ;;  %v648_v3 = vsel %vm272_vm0, %v141_v29, 0.0 }
 0x1c8   :  { %v566_v33 = vpop.xlane.xlu1 %565  ;;  %v563_v40 = vpop.xlane.xlu0 %562 }
 0x1c9   :  { %v2137_v6 = vrot.slane %v1516_v15, %v5919_v27  ;;  %v2142_v57 = vrot.slane %v1517_v48, %v4183_v56  ;;  %v5368_v54 = vpack.c.bf16 %v566_v33, %v563_v40  ;;  %v239_v33 = vld [vmem:[%s5899_s0 + $0x6f8] sm:$0xff]  ;;  %v238_v40 = vld [vmem:[%s5899_s0 + $0x6f0] sm:$0xff] }
 0x1ca   :  { %v942_v44 = vsel %vm272_vm0, %v239_v33, 0.0  ;;  %v939_v22 = vsel %vm272_vm0, %v238_v40, 0.0  ;;  %v124_v33 = vld [vmem:[%s5899_s0 + $0x360] sm:$0xff]  ;;  %v3764_v40 = vld [vmem:[%s5900_s1 + $0x138] sm:$0xff]  }
 0x1cb   :  { %v2138_v31 = vsel %vm1720_vm4, %v2137_v6, %v5300_v26  ;;  %889 = vadd.xlane.f32.xlu1 %v888_v38  ;;  %886 = vadd.xlane.f32.xlu0 %v885_v39  ;;  %v110_v26 = vld [vmem:[%s5899_s0 + $0x2f0] sm:$0xff]  ;;  %v1672_v38 = vunpack.c.l.b16 %v5343_v43  ;;  %v1673_v39 = vunpack.c.h.b16 %v5343_v43 }
 0x1cc   :  { %v5381_v16 = vsel %vm5920_vm5, %v2142_v57, %v2138_v31  ;;  %v620_v42 = vpop.xlane.xlu1 %619  ;;  %v617_v18 = vpop.xlane.xlu0 %616  ;;  %v555_v32 = vsel %vm272_vm0, %v110_v26, 0.0 }
 0x1cd   :  { %v1098_v4 = vpack.c.bf16 %v620_v42, %v617_v18  ;;  %v269_v42 = vld [vmem:[%s5899_s0 + $0x7e8] sm:$0xff]  ;;  %v2908_v43 = vrot.slane %v1672_v38, %v4146_v28  ;;  %v2912_v18 = vrot.slane %v1673_v39, %v4154_v34 }
 0x1ce   :  { %v1032_v7 = vsel %vm272_vm0, %v269_v42, 0.0 }
 0x1cf   :  { %v1546_v59 = vunpack.c.l.b16 %v1098_v4  ;;  %v1547_v51 = vunpack.c.h.b16 %v1098_v4  ;;  %979 = vadd.xlane.f32.xlu1 %v978_v30  ;;  %976 = vadd.xlane.f32.xlu0 %v975_v19  ;;  %v1528_v30 = vunpack.c.l.b16 %v5368_v54  ;;  %v1529_v19 = vunpack.c.h.b16 %v5368_v54  ;;  %v94_v54 = vld [vmem:[%s5899_s0 + $0x270] sm:$0xff] }
 0x1d0   :  { %v914_v24 = vpop.xlane.xlu1 %913  ;;  %v911_v1 = vpop.xlane.xlu0 %910 }
 0x1d1   :  { %v2285_v12 = vrot.slane %v1546_v59, %v5917_v5  ;;  %v2290_v36 = vrot.slane %v1547_v51, %v5918_v2  ;;  %v1147_v50 = vpack.c.bf16 %v914_v24, %v911_v1 }
 0x1d3   :  { %v2286_v55 = vsel %vm1706_vm2, %v2285_v12, %v2281_v46  ;;  %v1644_v49 = vunpack.c.l.b16 %v1147_v50  ;;  %v1645_v47 = vunpack.c.h.b16 %v1147_v50  ;;  %559 = vadd.xlane.f32.xlu1 %v558_v11  ;;  %556 = vadd.xlane.f32.xlu0 %v555_v32  ;;  %v95_v11 = vld [vmem:[%s5899_s0 + $0x278] sm:$0xff]  ;;  %v2913_v32 = vsel %vm1699_vm1, %v2912_v18, %v2908_v43 }
 0x1d4   :  { %v5406_v37 = vsel %vm1713_vm3, %v2290_v36, %v2286_v55  ;;  %v950_v53 = vpop.xlane.xlu1 %949  ;;  %v947_v35 = vpop.xlane.xlu0 %946  ;;  %v2197_v12 = vrot.slane %v1528_v30, %v4146_v28  ;;  %v2201_v36 = vrot.slane %v1529_v19, %v4154_v34  ;;  %v597_v43 = vsel %vm272_vm0, %v124_v33, 0.0 }
 0x1d5   :  { %v2769_v0 = vrot.slane %v1644_v49, %v5919_v27  ;;  %v2774_v15 = vrot.slane %v1645_v47, %v4183_v56  ;;  %v5412_v48 = vpack.c.bf16 %v950_v53, %v947_v35  ;;  %v510_v47 = vsel %vm272_vm0, %v95_v11, 0.0  ;;  %v3763_v35 = vld [vmem:[%s5900_s1 + $0x178] sm:$0xff]  }
 0x1d6   :  { %v507_v53 = vsel %vm272_vm0, %v94_v54, 0.0  ;;  %v2202_v38 = vsel %vm1699_vm1, %v2201_v36, %v2197_v12  ;;  %3686 = vmatprep.subr.bf16.mxu0 %v3763_v35 }
 0x1d7   :  { %v2770_v6 = vsel %vm1720_vm4, %v2769_v0, %v5327_v41  ;;  %649 = vadd.xlane.f32.xlu1 %v648_v3  ;;  %646 = vadd.xlane.f32.xlu0 %v645_v61  ;;  %v268_v41 = vld [vmem:[%s5899_s0 + $0x7e0] sm:$0xff]  ;;  %v1656_v39 = vunpack.c.l.b16 %v5412_v48 }
 0x1d8   :  { %v5425_v57 = vsel %vm5920_vm5, %v2774_v15, %v2770_v6  ;;  %v1004_v60 = vpop.xlane.xlu1 %1003  ;;  %v1001_v20 = vpop.xlane.xlu0 %1000  ;;  %v1029_v59 = vsel %vm272_vm0, %v268_v41, 0.0  ;;  %v125_v15 = vld [vmem:[%s5899_s0 + $0x368] sm:$0xff]  ;;  %v1657_v6 = vunpack.c.h.b16 %v5412_v48  ;;  %3687 = vmatpush3.bf16.msra.mxu0 %v3764_v40  ;;  %v3765_v48 = vld [vmem:[%s5900_s1 + $0x170] sm:$0xff]  }
 0x1d9   :  { %v1162_v31 = vpack.c.bf16 %v1004_v60, %v1001_v20  ;;  %v600_v41 = vsel %vm272_vm0, %v125_v15, 0.0  ;;  %3688 = vmatprep.subr.bf16.mxu0 %v3765_v48 }
 0x1db   :  { %v1674_v4 = vunpack.c.l.b16 %v1162_v31  ;;  %v1675_v58 = vunpack.c.h.b16 %v1162_v31  ;;  %943 = vadd.xlane.f32.xlu1 %v942_v44  ;;  %940 = vadd.xlane.f32.xlu0 %v939_v22 }
 0x1dc   :  { %v572_v26 = vpop.xlane.xlu1 %571  ;;  %v569_v14 = vpop.xlane.xlu0 %568 }
 0x1dd   :  { %v2917_v51 = vrot.slane %v1674_v4, %v5917_v5  ;;  %v2922_v24 = vrot.slane %v1675_v58, %v5918_v2  ;;  %v1090_v1 = vpack.c.bf16 %v572_v26, %v569_v14  ;;  %v223_v4 = vld [vmem:[%s5899_s0 + $0x678] sm:$0xff]  ;;  %v222_v58 = vld [vmem:[%s5899_s0 + $0x670] sm:$0xff]  ;;  %v2829_v14 = vrot.slane %v1656_v39, %v4146_v28  ;;  %v3767_v28 = vld [vmem:[%s5900_s1 + $0x168] sm:$0xff]  }
 0x1de   :  { %v3766_v26 = vld [vmem:[%s5900_s1 + $0x130] sm:$0xff]   ;;  %v891_v12 = vsel %vm272_vm0, %v222_v58, 0.0 }
 0x1df   :  { %v2918_v50 = vsel %vm1706_vm2, %v2917_v51, %v2913_v32  ;;  %v1530_v29 = vunpack.c.l.b16 %v1090_v1  ;;  %v1531_v10 = vunpack.c.h.b16 %v1090_v1  ;;  %1033 = vadd.xlane.f32.xlu1 %v1032_v7  ;;  %1030 = vadd.xlane.f32.xlu0 %v1029_v59  ;;  %v2833_v7 = vrot.slane %v1657_v6, %v4154_v34  ;;  %v142_v39 = vld [vmem:[%s5899_s0 + $0x3f0] sm:$0xff]  ;;  %v3770_v6 = vld [vmem:[%s5900_s1 + $0x120] sm:$0xff]  }
 0x1e0   :  { %v5454_v46 = vsel %vm1713_vm3, %v2922_v24, %v2918_v50  ;;  %v866_v55 = vpop.xlane.xlu1 %865  ;;  %v863_v49 = vpop.xlane.xlu0 %862  ;;  %v894_v32 = vsel %vm272_vm0, %v223_v4, 0.0  ;;  %3689 = vmatpush3.bf16.msra.mxu0 %v3766_v26  ;;  %v253_v50 = vld [vmem:[%s5899_s0 + $0x768] sm:$0xff]  ;;  %v651_v48 = vsel %vm272_vm0, %v142_v39, 0.0  ;;  %v271_v4 = vld [vmem:[%s5899_s0 + $0x7f8] sm:$0xff]  ;;  %v270_v58 = vld [vmem:[%s5899_s0 + $0x7f0] sm:$0xff] }
 0x1e1   :  { %v2206_v3 = vrot.slane %v1530_v29, %v5917_v5  ;;  %v2211_v61 = vrot.slane %v1531_v10, %v5918_v2  ;;  %v1139_v0 = vpack.c.bf16 %v866_v55, %v863_v49  ;;  %v252_v29 = vld [vmem:[%s5899_s0 + $0x760] sm:$0xff]  ;;  %v3768_v10 = vld [vmem:[%s5900_s1 + $0x128] sm:$0xff]   ;;  %v2834_v55 = vsel %vm1699_vm1, %v2833_v7, %v2829_v14  ;;  %3690 = vmatprep.subr.bf16.mxu0 %v3767_v28  ;;  %v3772_v26 = vld [vmem:[%s5900_s1 + $0x118] sm:$0xff]  }
 0x1e2   :  { %vm5921_vm1 = vmmov %vm5920_vm5  ;;  %v3774_v28 = vld [vmem:[%s5900_s1 + $0x150] sm:$0xff]  }
 0x1e3   :  { %v2207_v60 = vsel %vm1706_vm2, %v2206_v3, %v2202_v38  ;;  %v1628_v20 = vunpack.c.l.b16 %v1139_v0  ;;  %v1629_v44 = vunpack.c.h.b16 %v1139_v0  ;;  %511 = vadd.xlane.f32.xlu1 %v510_v47  ;;  %508 = vadd.xlane.f32.xlu0 %v507_v53  ;;  %v984_v3 = vsel %vm272_vm0, %v253_v50, 0.0  ;;  %v3769_v0 = vld [vmem:[%s5900_s1 + $0x160] sm:$0xff]   ;;  %v143_v38 = vld [vmem:[%s5899_s0 + $0x3f8] sm:$0xff]  ;;  %v126_v50 = vld [vmem:[%s5899_s0 + $0x370] sm:$0xff] }
 0x1e4   :  { %v5477_v22 = vsel %vm1713_vm3, %v2211_v61, %v2207_v60  ;;  %v956_v31 = vpop.xlane.xlu1 %955  ;;  %v953_v42 = vpop.xlane.xlu0 %952  ;;  %v981_v61 = vsel %vm272_vm0, %v252_v29, 0.0  ;;  %3691 = vmatpush3.bf16.msra.mxu0 %v3768_v10  ;;  %v3775_v29 = vld [vmem:[%s5900_s1 + $0x110] sm:$0xff]   ;;  %v3776_v10 = vld [vmem:[%s5900_s1 + $0x1b8] sm:$0xff]  }
 0x1e5   :  { %v2690_v18 = vrot.slane %v1628_v20, %v5919_v27  ;;  %v2695_v30 = vrot.slane %v1629_v44, %v4183_v56  ;;  %v1154_v19 = vpack.c.bf16 %v956_v31, %v953_v42  ;;  %3692 = vmatprep.subr.bf16.mxu0 %v3769_v0  ;;  %v255_v0 = vld [vmem:[%s5899_s0 + $0x778] sm:$0xff]  ;;  %v254_v39 = vld [vmem:[%s5899_s0 + $0x770] sm:$0xff] }
 0x1e7   :  { %v2691_v59 = vsel %vm1720_vm4, %v2690_v18, %v5354_v21  ;;  %v1658_v51 = vunpack.c.l.b16 %v1154_v19  ;;  %v1659_v24 = vunpack.c.h.b16 %v1154_v19  ;;  %601 = vadd.xlane.f32.xlu1 %v600_v41  ;;  %598 = vadd.xlane.f32.xlu0 %v597_v43  ;;  %v654_v43 = vsel %vm272_vm0, %v143_v38, 0.0  ;;  %v3771_v18 = vld [vmem:[%s5900_s1 + $0x158] sm:$0xff]  }
 0x1e8   :  { %v5500_v1 = vsel %vm5920_vm5, %v2695_v30, %v2691_v59  ;;  %v536_v11 = vpop.xlane.xlu1 %535  ;;  %v533_v54 = vpop.xlane.xlu0 %532  ;;  %3693 = vmatpush3.bf16.msra.mxu0 %v3770_v6  ;;  %v3779_v6 = vld [vmem:[%s5900_s1 + $0x108] sm:$0xff]  }
 0x1e9   :  { %v2838_v34 = vrot.slane %v1658_v51, %v5917_v5  ;;  %v2843_v21 = vrot.slane %v1659_v24, %v5918_v2  ;;  %v1084_v36 = vpack.c.bf16 %v536_v11, %v533_v54  ;;  %3694 = vmatprep.subr.bf16.mxu0 %v3771_v18  ;;  %v1038_v54 = vsel %vm272_vm0, %v271_v4, 0.0 }
 0x1ea   :  { %v990_v18 = vsel %vm272_vm0, %v255_v0, 0.0 }
 0x1eb   :  { %v2839_v5 = vsel %vm1706_vm2, %v2838_v34, %v2834_v55  ;;  %v1518_v49 = vunpack.c.l.b16 %v1084_v36  ;;  %v1519_v2 = vunpack.c.h.b16 %v1084_v36  ;;  %895 = vadd.xlane.f32.xlu1 %v894_v32  ;;  %892 = vadd.xlane.f32.xlu0 %v891_v12  ;;  %v1035_v32 = vsel %vm272_vm0, %v270_v58, 0.0  ;;  %v127_v12 = vld [vmem:[%s5899_s0 + $0x378] sm:$0xff]  ;;  %vm5922_vm2 = vmmov %vm5921_vm1 }
 0x1ec   :  { %v5521_v47 = vsel %vm1713_vm3, %v2843_v21, %v2839_v5  ;;  %v626_v53 = vpop.xlane.xlu1 %625  ;;  %v623_v35 = vpop.xlane.xlu0 %622  ;;  %3695 = vmatpush3.bf16.msra.mxu0 %v3772_v26  ;;  %v3783_v26 = vld [vmem:[%s5900_s1 + $0x100] sm:$0xff]  }
 0x1ed   :  { %v2147_v15 = vrot.slane %v1518_v49, %v4200_v8  ;;  %v2152_v33 = vrot.slane %v1519_v2, %v4203_v9  ;;  %v1099_v40 = vpack.c.bf16 %v626_v53, %v623_v35  ;;  %3696 = vmatprep.subr.bf16.mxu0 %v3774_v28 }
 0x1ef   :  { %v2148_v60 = vsel %vm1734_vm6, %v2147_v15, %v5381_v16  ;;  %v1548_v20 = vunpack.c.l.b16 %v1099_v40  ;;  %v1549_v44 = vunpack.c.h.b16 %v1099_v40  ;;  %985 = vadd.xlane.f32.xlu1 %v984_v3  ;;  %982 = vadd.xlane.f32.xlu0 %v981_v61  ;;  %v606_v3 = vsel %vm272_vm0, %v127_v12, 0.0  ;;  %v3778_v15 = vld [vmem:[%s5900_s1 + $0x1f0] sm:$0xff]   ;;  %v3785_v12 = vld [vmem:[%s5900_s1 + $0x1e0] sm:$0xff]  }
 0x1f0   :  { %v5542_v31 = vsel %vm1741_vm7, %v2152_v33, %v2148_v60  ;;  %v920_v42 = vpop.xlane.xlu1 %919  ;;  %v917_v41 = vpop.xlane.xlu0 %916  ;;  %v603_v61 = vsel %vm272_vm0, %v126_v50, 0.0  ;;  %3697 = vmatpush3.bf16.msra.mxu0 %v3775_v29  ;;  %v3780_v60 = vld [vmem:[%s5900_s1 + $0x1b0] sm:$0xff]  }
 0x1f1   :  { %v2295_v16 = vrot.slane %v1548_v20, %v5919_v27  ;;  %v2300_v30 = vrot.slane %v1549_v44, %v4183_v56  ;;  %v1148_v19 = vpack.c.bf16 %v920_v42, %v917_v41 }
 0x1f3   :  { %v2296_v14 = vsel %vm1720_vm4, %v2295_v16, %v5406_v37  ;;  %v1646_v7 = vunpack.c.l.b16 %v1148_v19  ;;  %v1647_v59 = vunpack.c.h.b16 %v1148_v19  ;;  %655 = vadd.xlane.f32.xlu1 %v654_v43  ;;  %652 = vadd.xlane.f32.xlu0 %v651_v48  ;;  %v3773_v37 = vld [vmem:[%s5900_s1 + $0x1f8] sm:$0xff]   ;;  %v987_v16 = vsel %vm272_vm0, %v254_v39, 0.0  ;;  %vm5923_vm0 = vmmov %vm5921_vm1 }
 0x1f4   :  { %v5563_v51 = vsel %vm5921_vm1, %v2300_v30, %v2296_v14  ;;  %v1010_v24 = vpop.xlane.xlu1 %1009  ;;  %v1007_v11 = vpop.xlane.xlu0 %1006  ;;  %3708 = vmatprep.subr.bf16.mxu1 %v3773_v37  ;;  %v3781_v30 = vld [vmem:[%s5900_s1 + $0x140] sm:$0xff]   ;;  %v3784_v14 = vld [vmem:[%s5900_s1 + $0x1a8] sm:$0xff]   ;;  %vm5924_vm3 = vmmov %vm5923_vm0 }
 0x1f5   :  { %v2779_v34 = vrot.slane %v1646_v7, %v4200_v8  ;;  %v2784_v21 = vrot.slane %v1647_v59, %v4203_v9  ;;  %v1163_v36 = vpack.c.bf16 %v1010_v24, %v1007_v11  ;;  %3709 = vmatpush3.bf16.msra.mxu1 %v3776_v10 }
 0x1f6   :  { %3710 = vmatprep.subr.bf16.mxu1 %v3778_v15 }
 0x1f7   :  { %v2780_v55 = vsel %vm1734_vm6, %v2779_v34, %v5425_v57  ;;  %v1676_v5 = vunpack.c.l.b16 %v1163_v36  ;;  %v1677_v49 = vunpack.c.h.b16 %v1163_v36  ;;  %1039 = vadd.xlane.f32.xlu1 %v1038_v54  ;;  %1036 = vadd.xlane.f32.xlu0 %v1035_v32  ;;  %v3777_v57 = vld [vmem:[%s5900_s1 + $0x148] sm:$0xff]   ;;  %v3786_v34 = vld [vmem:[%s5900_s1 + $0x1a0] sm:$0xff]  }
 0x1f8   :  { %v5590_v2 = vsel %vm1741_vm7, %v2784_v21, %v2780_v55  ;;  %v578_v53 = vpop.xlane.xlu1 %577  ;;  %v575_v35 = vpop.xlane.xlu0 %574  ;;  %3698 = vmatprep.subr.bf16.mxu0 %v3777_v57 }
 0x1f9   :  { %v2927_v33 = vrot.slane %v1676_v5, %v5919_v27  ;;  %v2932_v40 = vrot.slane %v1677_v49, %v4183_v56  ;;  %v1091_v38 = vpack.c.bf16 %v578_v53, %v575_v35  ;;  %3699 = vmatpush3.bf16.msra.mxu0 %v3779_v6  ;;  %3711 = vmatpush3.bf16.msra.mxu1 %v3780_v60  ;;  %v3787_v5 = vld [vmem:[%s5900_s1 + $0x1d8] sm:$0xff]  }
 0x1fa   :  { %3700 = vmatprep.subr.bf16.mxu0 %v3781_v30 }
 0x1fb   :  { %v2928_v20 = vsel %vm1720_vm4, %v2927_v33, %v5454_v46  ;;  %v1532_v44 = vunpack.c.l.b16 %v1091_v38  ;;  %v1533_v42 = vunpack.c.h.b16 %v1091_v38  ;;  %607 = vadd.xlane.f32.xlu1 %v606_v3  ;;  %604 = vadd.xlane.f32.xlu0 %v603_v61  ;;  %v3782_v46 = vld [vmem:[%s5900_s1 + $0x1e8] sm:$0xff]  }
 0x1fc   :  { %v5617_v41 = vsel %vm5922_vm2, %v2932_v40, %v2928_v20  ;;  %v872_v43 = vpop.xlane.xlu1 %871  ;;  %v869_v48 = vpop.xlane.xlu0 %868  ;;  %3712 = vmatprep.subr.bf16.mxu1 %v3782_v46 }
 0x1fd   :  { %v2216_v19 = vrot.slane %v1532_v44, %v5919_v27  ;;  %v2221_v4 = vrot.slane %v1533_v42, %v4183_v56  ;;  %v1140_v58 = vpack.c.bf16 %v872_v43, %v869_v48  ;;  %3701 = vmatpush3.bf16.msra.mxu0 %v3783_v26  ;;  %3713 = vmatpush3.bf16.msra.mxu1 %v3784_v14  ;;  %v3791_v43 = vld [vmem:[%s5900_s1 + $0x1c8] sm:$0xff]   ;;  %v3793_v14 = vld [vmem:[%s5900_s1 + $0x1c0] sm:$0xff]  }
 0x1fe   :  { %3714 = vmatprep.subr.bf16.mxu1 %v3785_v12 }
 0x1ff   :  { %v2217_v7 = vsel %vm1720_vm4, %v2216_v19, %v5477_v22  ;;  %v1630_v59 = vunpack.c.l.b16 %v1140_v58  ;;  %v1631_v24 = vunpack.c.h.b16 %v1140_v58  ;;  %991 = vadd.xlane.f32.xlu1 %v990_v18  ;;  %988 = vadd.xlane.f32.xlu0 %v987_v16 }
 0x200   :  { %v5638_v11 = vsel %vm5923_vm0, %v2221_v4, %v2217_v7  ;;  %v962_v54 = vpop.xlane.xlu1 %961  ;;  %v959_v32 = vpop.xlane.xlu0 %958 }
 0x201   :  { %v2700_v37 = vrot.slane %v1630_v59, %v4200_v8  ;;  %v2705_v28 = vrot.slane %v1631_v24, %v4203_v9  ;;  %v1155_v22 = vpack.c.bf16 %v962_v54, %v959_v32  ;;  %3715 = vmatpush3.bf16.msra.mxu1 %v3786_v34 }
 0x202   :  { %3716 = vmatprep.subr.bf16.mxu1 %v3787_v5 }
 0x203   :  { %v2701_v21 = vsel %vm1734_vm6, %v2700_v37, %v5500_v1  ;;  %v1660_v36 = vunpack.c.l.b16 %v1155_v22  ;;  %v1661_v50 = vunpack.c.h.b16 %v1155_v22  ;;  %v3788_v1 = vld [vmem:[%s5900_s1 + $0x198] sm:$0xff]  }
 0x204   :  { %v5651_v29 = vsel %vm1741_vm7, %v2705_v28, %v2701_v21  ;;  %v542_v10 = vpop.xlane.xlu1 %541  ;;  %v539_v55 = vpop.xlane.xlu0 %538 }
 0x205   :  { %v2848_v49 = vrot.slane %v1660_v36, %v5919_v27  ;;  %v2853_v53 = vrot.slane %v1661_v50, %v4183_v56  ;;  %v1085_v35 = vpack.c.bf16 %v542_v10, %v539_v55  ;;  %3717 = vmatpush3.bf16.msra.mxu1 %v3788_v1  ;;  %v3789_v56 = vld [vmem:[%s5900_s1 + $0x1d0] sm:$0xff]  }
 0x206   :  { %3718 = vmatprep.subr.bf16.mxu1 %v3789_v56 }
 0x207   :  { %v2849_v3 = vsel %vm1720_vm4, %v2848_v49, %v5521_v47  ;;  %v1520_v61 = vunpack.c.l.b16 %v1085_v35  ;;  %v1521_v0 = vunpack.c.h.b16 %v1085_v35  ;;  %v3790_v47 = vld [vmem:[%s5900_s1 + $0x190] sm:$0xff]   ;;  %vm5925_vm4 = vcmask 1041409  }
 0x208   :  { %v5664_v57 = vsel %vm5924_vm3, %v2853_v53, %v2849_v3  ;;  %v632_v15 = vpop.xlane.xlu1 %631  ;;  %v629_v33 = vpop.xlane.xlu0 %628 }
 0x209   :  { %v2157_v27 = vrot.slane %v1520_v61, %v4208_v13  ;;  %v2162_v40 = vrot.slane %v1521_v0, %v4217_v23  ;;  %v1100_v38 = vpack.c.bf16 %v632_v15, %v629_v33  ;;  %3719 = vmatpush3.bf16.msra.mxu1 %v3790_v47 }
 0x20a   :  { %3720 = vmatprep.subr.bf16.mxu1 %v3791_v43 }
 0x20b   :  { %v2158_v39 = vsel %vm1748_vm8, %v2157_v27, %v5542_v31  ;;  %v1550_v6 = vunpack.c.l.b16 %v1100_v38  ;;  %v1551_v60 = vunpack.c.h.b16 %v1100_v38  ;;  %v3792_v31 = vld [vmem:[%s5900_s1 + $0x188] sm:$0xff]  }
 0x20c   :  { %v5677_v20 = vsel %vm1755_vm9, %v2162_v40, %v2158_v39  ;;  %v926_v44 = vpop.xlane.xlu1 %925  ;;  %v923_v42 = vpop.xlane.xlu0 %922 }
 0x20d   :  { %v2305_v48 = vrot.slane %v1550_v6, %v4200_v8  ;;  %v2310_v18 = vrot.slane %v1551_v60, %v4203_v9  ;;  %v1149_v16 = vpack.c.bf16 %v926_v44, %v923_v42  ;;  %3721 = vmatpush3.bf16.msra.mxu1 %v3792_v31 }
 0x20e   :  { %3722 = vmatprep.subr.bf16.mxu1 %v3793_v14 }
 0x20f   :  { %v2306_v30 = vsel %vm1734_vm6, %v2305_v48, %v5563_v51  ;;  %v1648_v46 = vunpack.c.l.b16 %v1149_v16  ;;  %v1649_v19 = vunpack.c.h.b16 %v1149_v16  ;;  %v3794_v51 = vld [vmem:[%s5900_s1 + $0x180] sm:$0xff]  }
 0x210   :  { %v5690_v4 = vsel %vm1741_vm7, %v2310_v18, %v2306_v30  ;;  %v1016_v58 = vpop.xlane.xlu1 %1015  ;;  %v1013_v26 = vpop.xlane.xlu0 %1012 }
 0x211   :  { %v2789_v7 = vrot.slane %v1648_v46, %v4208_v13  ;;  %v2794_v59 = vrot.slane %v1649_v19, %v4217_v23  ;;  %v1164_v24 = vpack.c.bf16 %v1016_v58, %v1013_v26  ;;  %3723 = vmatpush3.bf16.msra.mxu1 %v3794_v51 }
 0x213   :  { %v2790_v54 = vsel %vm1748_vm8, %v2789_v7, %v5590_v2  ;;  %v1678_v32 = vunpack.c.l.b16 %v1164_v24  ;;  %v1679_v12 = vunpack.c.h.b16 %v1164_v24 }
 0x214   :  { %v5703_v37 = vsel %vm1755_vm9, %v2794_v59, %v2790_v54  ;;  %v584_v28 = vpop.xlane.xlu1 %583  ;;  %v581_v22 = vpop.xlane.xlu0 %580 }
 0x215   :  { %v2937_v34 = vrot.slane %v1678_v32, %v4200_v8  ;;  %v2942_v21 = vrot.slane %v1679_v12, %v4203_v9  ;;  %v1092_v36 = vpack.c.bf16 %v584_v28, %v581_v22 }
 0x217   :  { %v2938_v50 = vsel %vm1734_vm6, %v2937_v34, %v5617_v41  ;;  %v1534_v10 = vunpack.c.l.b16 %v1092_v36  ;;  %v1535_v55 = vunpack.c.h.b16 %v1092_v36 }
 0x218   :  { %v2943_v2 = vsel %vm1741_vm7, %v2942_v21, %v2938_v50  ;;  %v878_v5 = vpop.xlane.xlu1 %877  ;;  %v875_v49 = vpop.xlane.xlu0 %874 }
 0x219   :  { %v2226_v53 = vrot.slane %v1534_v10, %v4200_v8  ;;  %v2231_v35 = vrot.slane %v1535_v55, %v4203_v9  ;;  %v1141_v1 = vpack.c.bf16 %v878_v5, %v875_v49 }
 0x21b   :  { %v2227_v3 = vsel %vm1734_vm6, %v2226_v53, %v5638_v11  ;;  %v1632_v61 = vunpack.c.l.b16 %v1141_v1  ;;  %v1633_v0 = vunpack.c.h.b16 %v1141_v1 }
 0x21c   :  { %v2232_v15 = vsel %vm1741_vm7, %v2231_v35, %v2227_v3  ;;  %v968_v33 = vpop.xlane.xlu1 %967  ;;  %v965_v41 = vpop.xlane.xlu0 %964 }
 0x21d   :  { %v2710_v56 = vrot.slane %v1632_v61, %v4208_v13  ;;  %v2715_v27 = vrot.slane %v1633_v0, %v4217_v23  ;;  %v1156_v40 = vpack.c.bf16 %v968_v33, %v965_v41 }
 0x21f   :  { %v2711_v38 = vsel %vm1748_vm8, %v2710_v56, %v5651_v29  ;;  %v1662_v47 = vunpack.c.l.b16 %v1156_v40  ;;  %v1663_v39 = vunpack.c.h.b16 %v1156_v40 }
 0x220   :  { %v5720_v6 = vsel %vm1755_vm9, %v2715_v27, %v2711_v38  ;;  %v548_v11 = vpop.xlane.xlu1 %547  ;;  %v545_v60 = vpop.xlane.xlu0 %544 }
 0x221   :  { %v2858_v44 = vrot.slane %v1662_v47, %v4200_v8  ;;  %v2863_v42 = vrot.slane %v1663_v39, %v4203_v9  ;;  %v1086_v43 = vpack.c.bf16 %v548_v11, %v545_v60 }
 0x223   :  { %v2859_v48 = vsel %vm1734_vm6, %v2858_v44, %v5664_v57  ;;  %v1522_v18 = vunpack.c.l.b16 %v1086_v43  ;;  %v1523_v16 = vunpack.c.h.b16 %v1086_v43  ;;  %vm5927_vm6 = vmmov %vm5925_vm4 }
 0x224   :  { %v2864_v31 = vsel %vm1741_vm7, %v2863_v42, %v2859_v48  ;;  %v638_v29 = vpop.xlane.xlu1 %637  ;;  %v635_v30 = vpop.xlane.xlu0 %634  ;;  %vm5928_vm7 = vmmov %vm5925_vm4 }
 0x225   :  { %v2167_v46 = vrot.slane %v1522_v18, %v4235_v45  ;;  %v2172_v19 = vrot.slane %v1523_v16, %v4245_v52  ;;  %v1101_v58 = vpack.c.bf16 %v638_v29, %v635_v30 }
 0x227   :  { %v2168_v8 = vsel %vm1762_vm10, %v2167_v46, %v5677_v20  ;;  %v1552_v26 = vunpack.c.l.b16 %v1101_v58  ;;  %v1553_v9 = vunpack.c.h.b16 %v1101_v58 }
 0x228   :  { %v5732_v14 = vsel %vm1769_vm11, %v2172_v19, %v2168_v8  ;;  %v932_v57 = vpop.xlane.xlu1 %931  ;;  %v929_v7 = vpop.xlane.xlu0 %928 }
 0x229   :  { %v2315_v59 = vrot.slane %v1552_v26, %v4208_v13  ;;  %v2320_v24 = vrot.slane %v1553_v9, %v4217_v23  ;;  %v1150_v46 = vpack.c.bf16 %v932_v57, %v929_v7 }
 0x22b   :  { %v2316_v51 = vsel %vm1748_vm8, %v2315_v59, %v5690_v4  ;;  %v1650_v26 = vunpack.c.l.b16 %v1150_v46 }
 0x22c   :  { %v5739_v54 = vsel %vm1755_vm9, %v2320_v24, %v2316_v51  ;;  %v1022_v32 = vpop.xlane.xlu1 %1021  ;;  %v1019_v12 = vpop.xlane.xlu0 %1018 }
 0x22d   :  { %v1165_v20 = vpack.c.bf16 %v1022_v32, %v1019_v12  ;;  %v1651_v12 = vunpack.c.h.b16 %v1150_v46 }
 0x22f   :  { %v1680_v28 = vunpack.c.l.b16 %v1165_v20  ;;  %v1681_v22 = vunpack.c.h.b16 %v1165_v20  ;;  %v2799_v20 = vrot.slane %v1650_v26, %v4235_v45 }
 0x230   :  { %v590_v34 = vpop.xlane.xlu1 %589  ;;  %v587_v21 = vpop.xlane.xlu0 %586 }
 0x231   :  { %v2947_v36 = vrot.slane %v1680_v28, %v4208_v13  ;;  %v2952_v50 = vrot.slane %v1681_v22, %v4217_v23  ;;  %v1093_v10 = vpack.c.bf16 %v590_v34, %v587_v21 }
 0x233   :  { %v2948_v55 = vsel %vm1748_vm8, %v2947_v36, %v2943_v2  ;;  %v1536_v5 = vunpack.c.l.b16 %v1093_v10  ;;  %v1537_v49 = vunpack.c.h.b16 %v1093_v10  ;;  %v2804_v10 = vrot.slane %v1651_v12, %v4245_v52 }
 0x234   :  { %v5745_v4 = vsel %vm1755_vm9, %v2952_v50, %v2948_v55  ;;  %v884_v53 = vpop.xlane.xlu1 %883  ;;  %v881_v35 = vpop.xlane.xlu0 %880 }
 0x235   :  { %v2236_v1 = vrot.slane %v1536_v5, %v4208_v13  ;;  %v2241_v3 = vrot.slane %v1537_v49, %v4217_v23  ;;  %v2800_v49 = vsel %vm1762_vm10, %v2799_v20, %v5703_v37  ;;  %v3576_v20 = vld [vmem:[%s5901_s2] ss:$0 sm:$0xff]  ;;  %s3821_s2 = smov [#allocation2]  }
 0x236   :  { %s3568_s30 = sshll.u32 %s3821_s2, 4  ;;  %s3569_s30 = int_to_ptr.vmem [resolvable:$true] %s3568_s30 }
 0x237   :  { %v2237_v61 = vsel %vm1748_vm8, %v2236_v1, %v2232_v15  ;;  %s3799_s4 = scalar_lea.vmem %s3569_s30, 32  ;;  %p3804_p1 = scmp.lt.s32.totalorder %s3569_s30, %s3569_s30 }
 0x238   :  { %v5751_v0 = vsel %vm1755_vm9, %v2241_v3, %v2237_v61  ;;  %v974_v33 = vpop.xlane.xlu1 %973  ;;  %v971_v41 = vpop.xlane.xlu0 %970  ;;  %p3800_p0 = scmp.ne.s32.totalorder %s3569_s30, %s3799_s4  ;;  %p3805_p2 = scmp.lt.s32.totalorder %s3799_s4, %s3799_s4 }
 0x239   :  { %v1157_v56 = vpack.c.bf16 %v974_v33, %v971_v41  ;;  %v1142_v33 = vpack.c.bf16 %v884_v53, %v881_v35 }
 0x23a   :  { %p3806_p3 = por %p3805_p2, %p3804_p1 }
 0x23b   :  { %v1664_v2 = vunpack.c.l.b16 %v1157_v56  ;;  %v1665_v27 = vunpack.c.h.b16 %v1157_v56  ;;  %v1634_v35 = vunpack.c.l.b16 %v1142_v33 }
 0x23c   :  { %v554_v40 = vpop.xlane.xlu1 %553  ;;  %v551_v38 = vpop.xlane.xlu0 %550  ;;  %p3807_p4 = pnand %p3806_p3, %p3800_p0 }
 0x23d   :  { %v2868_v47 = vrot.slane %v1664_v2, %v4208_v13  ;;  %v2873_v39 = vrot.slane %v1665_v27, %v4217_v23  ;;  %v1087_v8 = vpack.c.bf16 %v554_v40, %v551_v38 }
 0x23f   :  { %v2869_v11 = vsel %vm1748_vm8, %v2868_v47, %v2864_v31  ;;  %v1524_v51 = vunpack.c.l.b16 %v1087_v8  ;;  %v1525_v21 = vunpack.c.h.b16 %v1087_v8  ;;  %vm5929_vm8 = vmmov %vm5925_vm4 }
 0x240   :  { %v5757_v60 = vsel %vm1755_vm9, %v2873_v39, %v2869_v11  ;;  %v5759_v15 = vpop.xlane.xlu1 %643  ;;  %v5761_v44 = vpop.xlane.xlu0 %640  ;;  %v2805_v39 = vsel %vm1769_vm11, %v2804_v10, %v2800_v49 }
 0x241   :  { %v2177_v7 = vrot.slane %v1524_v51, %v4252_v62  ;;  %v2182_v41 = vrot.slane %v1525_v21, %v4255_v63 }
 0x243   :  { %v2178_v27 = vsel %vm1776_vm12, %v2177_v7, %v5732_v14 }
 0x244   :  { %v938_v42 = vpop.xlane.xlu1 %937  ;;  %v935_v43 = vpop.xlane.xlu0 %934  ;;  %v2183_v46 = vsel %vm1783_vm13, %v2182_v41, %v2178_v27 }
 0x245   :  { %v1151_v9 = vpack.c.bf16 %v938_v42, %v935_v43 }
 0x247   :  { %v1652_v28 = vunpack.c.l.b16 %v1151_v9  ;;  %v1653_v55 = vunpack.c.h.b16 %v1151_v9 }
 0x248   :  { %v5763_v48 = vpop.xlane.xlu1 %1027  ;;  %v5765_v18 = vpop.xlane.xlu0 %1024 }
 0x249   :  { %v2809_v1 = vrot.slane %v1652_v28, %v4252_v62  ;;  %v2814_v37 = vrot.slane %v1653_v55, %v4255_v63  ;;  %v1166_v49 = vpack.c.bf16 %v5763_v48, %v5765_v18 }
 0x24b   :  { %v2810_v11 = vsel %vm1776_vm12, %v2809_v1, %v2805_v39 }
 0x24c   :  { %v506_v16 = vpop.xlane.xlu1 %505  ;;  %v503_v29 = vpop.xlane.xlu0 %502  ;;  %v2815_v51 = vsel %vm1783_vm13, %v2814_v37, %v2810_v11 }
 0x24d   :  { %v1079_v14 = vpack.c.bf16 %v506_v16, %v503_v29  ;;  %v2720_v16 = vrot.slane %v1634_v35, %v4235_v45  ;;  %v1102_v29 = vpack.c.bf16 %v5759_v15, %v5761_v44 }
 0x24f   :  { %v1508_v10 = vunpack.c.l.b16 %v1079_v14  ;;  %v1509_v27 = vunpack.c.h.b16 %v1079_v14  ;;  %v5926_v14 = vld [vmem:[#allocation9_spill] sm:$0xff] }
 0x250   :  { %v5767_v13 = vpop.xlane.xlu1 %595  ;;  %v5769_v23 = vpop.xlane.xlu0 %592 }
 0x251   :  { %v2103_v35 = vrot.slane %v1509_v27, %v4255_v63 }
 0x254   :  { %v890_v31 = vpop.xlane.xlu1 %889  ;;  %v887_v30 = vpop.xlane.xlu0 %886 }
 0x255   :  { %v1143_v12 = vpack.c.bf16 %v890_v31, %v887_v30 }
 0x257   :  { %v1636_v41 = vunpack.c.l.b16 %v1143_v12  ;;  %v1637_v39 = vunpack.c.h.b16 %v1143_v12 }
 0x258   :  { %v5771_v19 = vpop.xlane.xlu1 %979  ;;  %v5773_v58 = vpop.xlane.xlu0 %976 }
 0x259   :  { %v2730_v11 = vrot.slane %v1636_v41, %v4252_v62 }
 0x25c   :  { %v560_v59 = vpop.xlane.xlu1 %559  ;;  %v557_v24 = vpop.xlane.xlu0 %556 }
 0x25d   :  { %v1088_v32 = vpack.c.bf16 %v560_v59, %v557_v24 }
 0x25f   :  { %v1526_v36 = vunpack.c.l.b16 %v1088_v32  ;;  %v1527_v56 = vunpack.c.h.b16 %v1088_v32  ;;  %v1635_v32 = vunpack.c.h.b16 %v1142_v33 }
 0x260   :  { %v5776_v22 = vpop.xlane.xlu1 %649  ;;  %v3658_v34 = vpop.f32.mrf.mxu0 }
 0x261   :  { %v5778_v57 = vpop.xlane.xlu0 %646  ;;  %v2187_v40 = vrot.slane %v1526_v36, %v4270_v17  ;;  %v2192_v8 = vrot.slane %v1527_v56, %v4277_v25  ;;  %v2725_v33 = vrot.slane %v1635_v32, %v4245_v52  ;;  %v2721_v56 = vsel %vm1762_vm10, %v2720_v16, %v5720_v6 }
 0x262   :  { %v3659_v50 = vpop.f32.mrf.mxu0  ;;  %v1683_v32 = vunpack.c.h.b16 %v1166_v49 }
 0x263   :  { %v3660_v5 = vadd.f32 %v3659_v50, %v3658_v34  ;;  %v2188_v24 = vsel %vm1790_vm14, %v2187_v40, %v2183_v46  ;;  %v2726_v37 = vsel %vm1769_vm11, %v2725_v33, %v2721_v56 }
 0x264   :  { %v944_v3 = vpop.xlane.xlu1 %943  ;;  %v3661_v61 = vpop.f32.mrf.mxu0  ;;  %v2193_v36 = vsel %vm1797_vm15, %v2192_v8, %v2188_v24 }
 0x265   :  { %v941_v2 = vpop.xlane.xlu0 %940  ;;  %v3428_v1 = vadd.f32 %v3660_v5, %v3576_v20  ;;  %v1682_v5 = vunpack.c.l.b16 %v1166_v49  ;;  %v1094_v20 = vpack.c.bf16 %v5767_v13, %v5769_v23 }
 0x266   :  { %v1152_v38 = vpack.c.bf16 %v944_v3, %v941_v2  ;;  %v3662_v47 = vpop.f32.mrf.mxu0  ;;  %v1554_v2 = vunpack.c.l.b16 %v1102_v29 }
 0x267   :  { %v2098_v47 = vrot.slane %v1508_v10, %v4252_v62  ;;  %v2957_v12 = vrot.slane %v1682_v5, %v4235_v45  ;;  %v1539_v27 = vunpack.c.h.b16 %v1094_v20 }
 0x268   :  { %v1654_v42 = vunpack.c.l.b16 %v1152_v38  ;;  %v1655_v43 = vunpack.c.h.b16 %v1152_v38  ;;  %v1034_v53 = vpop.xlane.xlu1 %1033  ;;  %v2325_v6 = vrot.slane %v1554_v2, %v4235_v45 }
 0x269   :  { %v1031_v26 = vpop.xlane.xlu0 %1030  ;;  %v2958_v49 = vsel %vm1762_vm10, %v2957_v12, %v5745_v4 }
 0x26a   :  { %v2819_v9 = vrot.slane %v1654_v42, %v4270_v17  ;;  %v2824_v59 = vrot.slane %v1655_v43, %v4277_v25  ;;  %v1555_v43 = vunpack.c.h.b16 %v1102_v29 }
 0x26c   :  { %v512_v28 = vpop.xlane.xlu1 %511  ;;  %v3680_v34 = vpop.f32.mrf.mxu1  ;;  %v2820_v21 = vsel %vm1790_vm14, %v2819_v9, %v2815_v51  ;;  %v2099_v9 = vsel %vm1776_vm12, %v2098_v47, %v5926_v14 }
 0x26d   :  { %v509_v7 = vpop.xlane.xlu0 %508  ;;  %v2825_v50 = vsel %vm1797_vm15, %v2824_v59, %v2820_v21  ;;  %v1103_v59 = vpack.c.bf16 %v5776_v22, %v5778_v57  ;;  %v1167_v21 = vpack.c.bf16 %v1034_v53, %v1031_v26  ;;  %v2104_v22 = vsel %vm1783_vm13, %v2103_v35, %v2099_v9 }
 0x26e   :  { %v1080_v31 = vpack.c.bf16 %v512_v28, %v509_v7  ;;  %v3681_v30 = vpop.f32.mrf.mxu1  ;;  %v2990_v55 = vsel %vm5925_vm4, %v2825_v50, %v2193_v36  ;;  %v2735_v28 = vrot.slane %v1637_v39, %v4255_v63  ;;  %v2330_v36 = vrot.slane %v1555_v43, %v4245_v52 }
 0x26f   :  { %v3682_v3 = vadd.f32 %v3681_v30, %v3680_v34  ;;  %v2998_v61 = vpack.c.b16 %v2990_v55, %v2990_v55  ;;  %v2731_v34 = vsel %vm1776_vm12, %v2730_v11, %v2726_v37  ;;  %v1556_v10 = vunpack.c.l.b16 %v1103_v59 }
 0x270   :  { %v602_v15 = vpop.xlane.xlu1 %601  ;;  %v3683_v44 = vpop.f32.mrf.mxu1  ;;  %v1510_v48 = vunpack.c.l.b16 %v1080_v31  ;;  %v1511_v46 = vunpack.c.h.b16 %v1080_v31  ;;  %v2326_v53 = vsel %vm1762_vm10, %v2325_v6, %v5739_v54  ;;  %v1538_v26 = vunpack.c.l.b16 %v1094_v20 }
 0x271   :  { %v5813_v40 = vadd.f32 %v3682_v3, %v3428_v1  ;;  %3505 = vmatprep.mubr.bf16.mxu0 %v2998_v61  ;;  %v599_v38 = vpop.xlane.xlu0 %598  ;;  %v2736_v30 = vsel %vm1783_vm13, %v2735_v28, %v2731_v34  ;;  %v1158_v55 = vpack.c.bf16 %v5771_v19, %v5773_v58  ;;  %v2962_v1 = vrot.slane %v1683_v32, %v4245_v52 }
 0x272   :  { %v3684_v18 = vpop.f32.mrf.mxu1  ;;  %v2108_v24 = vrot.slane %v1510_v48, %v4270_v17  ;;  %v2113_v57 = vrot.slane %v1511_v46, %v4277_v25  ;;  %v1684_v3 = vunpack.c.l.b16 %v1167_v21  ;;  %v1557_v41 = vunpack.c.h.b16 %v1103_v59 }
 0x273   :  { %v1095_v56 = vpack.c.bf16 %v602_v15, %v599_v38  ;;  %v2335_v47 = vrot.slane %v1556_v10, %v4252_v62  ;;  %v2246_v4 = vrot.slane %v1538_v26, %v4235_v45  ;;  %v1666_v48 = vunpack.c.l.b16 %v1158_v55 }
 0x274   :  { %v896_v42 = vpop.xlane.xlu1 %895  ;;  %v2109_v31 = vsel %vm1790_vm14, %v2108_v24, %v2104_v22  ;;  %v1685_v18 = vunpack.c.h.b16 %v1167_v21  ;;  %v2331_v39 = vsel %vm1769_vm11, %v2330_v36, %v2326_v53  ;;  %v2967_v37 = vrot.slane %v1684_v3, %v4252_v62 }
 0x275   :  { %v893_v8 = vpop.xlane.xlu0 %892  ;;  %v2114_v44 = vsel %vm1797_vm15, %v2113_v57, %v2109_v31  ;;  %v2340_v43 = vrot.slane %v1557_v41, %v4255_v63  ;;  %v1540_v6 = vunpack.c.l.b16 %v1095_v56  ;;  %v2336_v14 = vsel %vm1776_vm12, %v2335_v47, %v2331_v39 }
 0x276   :  { %v1144_v51 = vpack.c.bf16 %v896_v42, %v893_v8  ;;  %v2963_v42 = vsel %vm1769_vm11, %v2962_v1, %v2958_v49  ;;  %v2251_v8 = vrot.slane %v1539_v27, %v4245_v52  ;;  %v2247_v24 = vsel %vm1762_vm10, %v2246_v4, %v5751_v0 }
 0x277   :  { %v2878_v32 = vrot.slane %v1666_v48, %v4235_v45  ;;  %v2972_v12 = vrot.slane %v1685_v18, %v4255_v63  ;;  %v2968_v20 = vsel %vm1776_vm12, %v2967_v37, %v2963_v42  ;;  %v2256_v36 = vrot.slane %v1540_v6, %v4252_v62 }
 0x278   :  { %v1638_v16 = vunpack.c.l.b16 %v1144_v51  ;;  %v1639_v29 = vunpack.c.h.b16 %v1144_v51  ;;  %v986_v7 = vpop.xlane.xlu1 %985  ;;  %v1667_v51 = vunpack.c.h.b16 %v1158_v55  ;;  %v2252_v31 = vsel %vm1769_vm11, %v2251_v8, %v2247_v24 }
 0x279   :  { %v983_v50 = vpop.xlane.xlu0 %982  ;;  %v2879_v26 = vsel %vm1762_vm10, %v2878_v32, %v5757_v60 }
 0x27a   :  { %v2740_v13 = vrot.slane %v1638_v16, %v4270_v17  ;;  %v2745_v23 = vrot.slane %v1639_v29, %v4277_v25  ;;  %v1159_v11 = vpack.c.bf16 %v986_v7, %v983_v50  ;;  %v2341_v29 = vsel %vm1783_vm13, %v2340_v43, %v2336_v14 }
 0x27b   :  { %v1541_v7 = vunpack.c.h.b16 %v1095_v56 }
 0x27c   :  { %v2741_v61 = vsel %vm1790_vm14, %v2740_v13, %v2736_v30  ;;  %v656_v33 = vpop.xlane.xlu1 %655  ;;  %v1668_v28 = vunpack.c.l.b16 %v1159_v11  ;;  %v2883_v13 = vrot.slane %v1667_v51, %v4245_v52  ;;  %v1669_v53 = vunpack.c.h.b16 %v1159_v11 }
 0x27d   :  { %v2746_v54 = vsel %vm1797_vm15, %v2745_v23, %v2741_v61  ;;  %v653_v2 = vpop.xlane.xlu0 %652  ;;  %v2973_v23 = vsel %vm1783_vm13, %v2972_v12, %v2968_v20  ;;  %v2261_v3 = vrot.slane %v1541_v7, %v4255_v63 }
 0x27e   :  { %v1104_v19 = vpack.c.bf16 %v656_v33, %v653_v2  ;;  %v2989_v58 = vsel %vm5927_vm6, %v2746_v54, %v2114_v44  ;;  %v2888_v30 = vrot.slane %v1668_v28, %v4252_v62  ;;  %v2257_v44 = vsel %vm1776_vm12, %v2256_v36, %v2252_v31  ;;  %v5930_v28 = vld [vmem:[#allocation5_spill] sm:$0xff] }
 0x27f   :  { %v2997_v5 = vpack.c.b16 %v2989_v58, %v2989_v58  ;;  %v2884_v62 = vsel %vm1769_vm11, %v2883_v13, %v2879_v26  ;;  %v2893_v2 = vrot.slane %v1669_v53, %v4255_v63  ;;  %v2262_v4 = vsel %vm1783_vm13, %v2261_v3, %v2257_v44 }
 0x280   :  { %v1558_v15 = vunpack.c.l.b16 %v1104_v19  ;;  %v1040_v38 = vpop.xlane.xlu1 %1039  ;;  %v1559_v35 = vunpack.c.h.b16 %v1104_v19  ;;  %v2889_v47 = vsel %vm1776_vm12, %v2888_v30, %v2884_v62  ;;  %vm3559_vm9 = vcmp.lt.s32.totalorder %v5930_v28, 14 }
 0x281   :  { %3506 = vmatmul.mubr.bf16.vlgmr.msra.gmra.mxu0 %v2997_v5  ;;  %v1037_v46 = vpop.xlane.xlu0 %1036  ;;  %v2894_v37 = vsel %vm1783_vm13, %v2893_v2, %v2889_v47 }
 0x282   :  { %v2345_v9 = vrot.slane %v1558_v15, %v4270_v17  ;;  %v1168_v59 = vpack.c.bf16 %v1040_v38, %v1037_v46  ;;  %v2350_v22 = vrot.slane %v1559_v35, %v4277_v25 }
 0x284   :  { %v1686_v34 = vunpack.c.l.b16 %v1168_v59  ;;  %v1687_v21 = vunpack.c.h.b16 %v1168_v59  ;;  %v608_v16 = vpop.xlane.xlu1 %607  ;;  %v2346_v10 = vsel %vm1790_vm14, %v2345_v9, %v2341_v29 }
 0x285   :  { %v605_v57 = vpop.xlane.xlu0 %604  ;;  %v2351_v41 = vsel %vm1797_vm15, %v2350_v22, %v2346_v10 }
 0x286   :  { %v2977_v0 = vrot.slane %v1686_v34, %v4270_v17  ;;  %v2982_v45 = vrot.slane %v1687_v21, %v4277_v25  ;;  %v1096_v50 = vpack.c.bf16 %v608_v16, %v605_v57 }
 0x288   :  { %v1542_v55 = vunpack.c.l.b16 %v1096_v50  ;;  %v992_v49 = vpop.xlane.xlu1 %991  ;;  %v2978_v1 = vsel %vm1790_vm14, %v2977_v0, %v2973_v23  ;;  %v1543_v61 = vunpack.c.h.b16 %v1096_v50 }
 0x289   :  { %v989_v33 = vpop.xlane.xlu0 %988  ;;  %v2983_v52 = vsel %vm1797_vm15, %v2982_v45, %v2978_v1 }
 0x28a   :  { %v2266_v56 = vrot.slane %v1542_v55, %v4270_v17  ;;  %v1160_v54 = vpack.c.bf16 %v992_v49, %v989_v33  ;;  %v2992_v60 = vsel %vm5928_vm7, %v2983_v52, %v2351_v41  ;;  %v2271_v48 = vrot.slane %v1543_v61, %v4277_v25 }
 0x28b   :  { %v3000_v27 = vpack.c.b16 %v2992_v60, %v2992_v60 }
 0x28c   :  { %v1670_v19 = vunpack.c.l.b16 %v1160_v54  ;;  %v1671_v58 = vunpack.c.h.b16 %v1160_v54  ;;  %v2267_v18 = vsel %vm1790_vm14, %v2266_v56, %v2262_v4 }
 0x28d   :  { %3545 = vmatprep.mubr.bf16.mxu1 %v3000_v27  ;;  %v2272_v11 = vsel %vm1797_vm15, %v2271_v48, %v2267_v18 }
 0x28e   :  { %v2898_v5 = vrot.slane %v1670_v19, %v4270_v17  ;;  %v2903_v39 = vrot.slane %v1671_v58, %v4277_v25 }
 0x290   :  { %v2899_v63 = vsel %vm1790_vm14, %v2898_v5, %v2894_v37 }
 0x291   :  { %v2904_v15 = vsel %vm1797_vm15, %v2903_v39, %v2899_v63 }
 0x292   :  { %v2991_v38 = vsel %vm5929_vm8, %v2904_v15, %v2272_v11 }
 0x293   :  { %v2999_v42 = vpack.c.b16 %v2991_v38, %v2991_v38 }
 0x295   :  { %3546 = vmatmul.mubr.bf16.vlgmr.msra.gmra.mxu1 %v2999_v42 }
 0x341   :  { %v3702_v43 = vpop.f32.mrf.mxu0 }
 0x343   :  { %v3703_v6 = vpop.f32.mrf.mxu0 }
 0x344   :  { %v3704_v8 = vadd.f32 %v3703_v6, %v3702_v43 }
 0x345   :  { %v3705_v35 = vpop.f32.mrf.mxu0 }
 0x346   :  { %v3508_v25 = vadd.f32 %v3704_v8, %v5813_v40 }
 0x347   :  { %v3706_v46 = vpop.f32.mrf.mxu0 }
 0x355   :  { %v3724_v17 = vpop.f32.mrf.mxu1 }
 0x357   :  { %v3725_v14 = vpop.f32.mrf.mxu1 }
 0x358   :  { %v3726_v9 = vadd.f32 %v3725_v14, %v3724_v17 }
 0x359   :  { %v3727_v59 = vpop.f32.mrf.mxu1 }
 0x35a   :  { %v3548_v24 = vadd.f32 %v3726_v9, %v3508_v25 }
 0x35b   :  { %v3728_v51 = vpop.f32.mrf.mxu1 }
 0x35c   :  { %v3641_v32 = vmul.f32 -1.442695, %v3548_v24 }
 0x35e   :  { %3795 = vpow2.f32 %v3641_v32 }
 0x36b   :  { %v3796_v12 = vpop.eup %3795 }
 0x36c   :  { %v3556_v20 = vadd.f32 1.0, %v3796_v12 }
 0x36e   :  { %3797 = vrcp.f32 %v3556_v20 }
 0x37b   :  { %v3798_v34 = vpop.eup %3797 }
 0x37c   :  { %v3560_v21 = vsel %vm3559_vm9, %v3798_v34, 0.0 }
 0x37d   :  { %3561 = vst [vmem:[#allocation2] sm:$0x3] %v3560_v21 }
 0x37e   :  { %3810 = shalt.err (!%p3807_p4)
}
 0x37f   :  { %3571 = dma.vmem_to_hbm [thread:$0]  %s3569_s30, 32, %s5902_s3, [#allocation3]  }
 0x380   :  { %3819 = dma.done.wait [#allocation3], 32  }
 0x381   :  { %3820 = vsyncadd [#allocation3], 4294967264 }
 0x382   :  { %3575 = vsyncpa [#allocation3], 1 }

</bundles_post_ra>
